<compile_context>
chip_gen: v7x
topology: tpu7x:2x2x1
jax: 0.10.0
libtpu: 0.0.40
codegen_flags: <defaults>
</compile_context>

<pallas_src>
import functools

import numpy as np
import jax
import jax.numpy as jnp
from jax import lax
from jax.experimental import pallas as pl
from jax.experimental.pallas import tpu as pltpu

DEGREE = 3
NUM_SPLINES = 10
NUM_POINTS = 100
BN_EPS = 1e-5

LANE = 128
SUBLANE = 8
CHUNK = 32          # rows processed per register-blocked gather chunk


def _round_up(x, m):
    return (x + m - 1) // m * m


# ----------------------------------------------------------------------------
# B-spline basis precomputation (identical math to the PyTorch helper).
# ----------------------------------------------------------------------------
def precompute_bspline_basis(num_splines, degree, num_points=100):
    knots = np.linspace(0, 1, num_splines + degree + 1)
    x = np.linspace(0, 1, num_points)
    basis = np.zeros((num_points, num_splines), dtype=np.float64)

    def cox_de_boor(x, k, d, knots):
        if d == 0:
            return np.where((knots[k] <= x) & (x < knots[k + 1]), 1.0, 0.0)
        a = (x - knots[k]) / (knots[k + d] - knots[k] + 1e-08)
        b = (knots[k + d + 1] - x) / (knots[k + d + 1] - knots[k + 1] + 1e-08)
        return a * cox_de_boor(x, k, d - 1, knots) + b * cox_de_boor(x, k + 1, d - 1, knots)

    for i in range(num_splines):
        basis[:, i] = cox_de_boor(x, i, degree, knots)
    return basis.astype(np.float32)  # (num_points, num_splines)


# ----------------------------------------------------------------------------
# Pass 1: KAN activations + per-tile partial BatchNorm statistics.
# ----------------------------------------------------------------------------
def _kan_pass1_kernel(x_ref, wt_ref, bias_ref, tbl_ref, wsc_ref,
                      y_ref, stat_ref, lc_ref, *, b_real, num_points, chunk):
    # x_ref:    (bt, In)       input tile
    # wt_ref:   (In, o_pad)    weights, pre-transposed (lane-dense outputs)
    # bias_ref: (1,  o_pad)
    # tbl_ref:  (p_pad, o_pad) spline table: tbl[p, o] = basis[p] . coeff[o]
    # wsc_ref:  (1,  o_pad)
    # y_ref:    (bt, o_pad)    pre-BN activations (output 0)
    # stat_ref: (8,  o_pad)    sublane 0 = partial sum, sublane 1 = partial sum sq
    # lc_ref:   (bt, o_pad)    VMEM scratch for the whole-tile linear combination
    bt, o_pad = y_ref.shape
    n_groups = tbl_ref.shape[0] // 8
    pm1 = jnp.float32(num_points - 1)

    # One whole-tile matmul on the MXU (In is tiny; negligible next to the gather).
    lc_ref[...] = jnp.dot(x_ref[...], wt_ref[...],
                          preferred_element_type=jnp.float32) + bias_ref[...]

    # Scratch-like accumulation directly into the (VMEM-resident) stats block.
    stat_ref[...] = jnp.zeros_like(stat_ref)

    wsc = wsc_ref[...]                                    # (1, o_pad)
    tile_row0 = pl.program_id(0) * bt
    sub = lax.broadcasted_iota(jnp.int32, (8, o_pad), 0)  # sublane ids for stats pack

    def chunk_body(c, _):
        r0 = pl.multiple_of(c * chunk, chunk)
        lc_c = lc_ref[pl.ds(r0, chunk), :]                 # (chunk, o_pad)

        # idx = clamp(trunc(lc * (P-1)), 0, P-1), kept as f32 so the compares
        # below stay pure float VPU work (integers 0..P-1 are exact in f32).
        idx_c = jnp.clip(jnp.trunc(lc_c * pm1), 0.0, pm1)

        # Register-blocked streaming gather:  spline[b, o] = tbl[idx[b, o], o].
        # Aligned (8, o_pad) table-group loads, statically-unrolled compares,
        # overwrite-select (each element matches exactly one p).
        spl = jnp.zeros((chunk, o_pad), jnp.float32)
        for g in range(n_groups):                          # static: unrolled
            rows8 = tbl_ref[pl.ds(g * 8, 8), :]            # aligned (8, o_pad)
            for r in range(8):
                p = g * 8 + r
                if p >= num_points:
                    break
                spl = jnp.where(idx_c == float(p), rows8[r], spl)

        # Exact SiLU (full-precision sigmoid); the approx reciprocal was the
        # source of the previous numeric failure.
        silu = lc_c / (1.0 + jnp.exp(-lc_c))

        y_c = wsc * (silu + spl)
        y_ref[pl.ds(r0, chunk), :] = y_c

        # Partial BatchNorm statistics; padded batch rows masked so full-batch
        # mean/var are exactly over the real B rows.
        row_id = tile_row0 + r0 + lax.broadcasted_iota(jnp.int32, (chunk, 1), 0)
        ym = jnp.where(row_id < b_real, y_c, 0.0)
        s = jnp.sum(ym, axis=0, keepdims=True)             # (1, o_pad)
        ss = jnp.sum(ym * ym, axis=0, keepdims=True)       # (1, o_pad)
        stat_ref[...] += jnp.where(sub == 0, s, jnp.where(sub == 1, ss, 0.0))
        return None

    lax.fori_loop(0, bt // chunk, chunk_body, None)


# ----------------------------------------------------------------------------
# Wrapper.
# ----------------------------------------------------------------------------
def kan_layer_forward(x, weights, bias, coeffs, w_scalars, basis, *, block_b=512):
    """x: (B, In); weights: (O, In); bias: (O,); coeffs: (O, K); w_scalars: (O,);
    basis: (P, K).  Returns (B, O) float32 (BatchNorm'd, training-mode stats)."""
    B, In = x.shape
    O = weights.shape[0]
    P = basis.shape[0]
    f32 = jnp.float32

    o_pad = _round_up(O, LANE)                 # lane-dense outputs / intermediates
    n_groups = (P + SUBLANE - 1) // SUBLANE
    p_pad = n_groups * SUBLANE

    # Batch tile: multiple of CHUNK, at most block_b, and small enough that the
    # grid has >= 2 tiles whenever B allows (v7x megacore uses the "parallel" axis).
    half = (B + 1) // 2
    bt = _round_up(max(min(block_b, half), 1), CHUNK)
    grid_b = pl.cdiv(B, bt)
    b_pad = grid_b * bt

    # Padded / pre-transposed parameters (padding columns are zero -> padded
    # outputs are exactly zero and are sliced off at the end).
    x32 = x.astype(f32)
    x_p = x32 if b_pad == B else jnp.zeros((b_pad, In), f32).at[:B].set(x32)
    wt_p = jnp.zeros((In, o_pad), f32).at[:, :O].set(weights.astype(f32).T)
    bias_p = jnp.zeros((1, o_pad), f32).at[:, :O].set(bias.astype(f32)[None])
    # Fold gather+dot: tbl[p, o] = basis[p, :] . coeffs[o, :] (lookup axis on
    # sublanes, outputs lane-dense).
    table_t = jnp.zeros((p_pad, o_pad), f32).at[:P, :O].set(
        basis.astype(f32) @ coeffs.astype(f32).T)
    wsc_p = jnp.zeros((1, o_pad), f32).at[:, :O].set(w_scalars.astype(f32)[None])

    kern = functools.partial(_kan_pass1_kernel, b_real=B, num_points=P, chunk=CHUNK)
    y_full, stats = pl.pallas_call(
        kern,
        out_shape=(jax.ShapeDtypeStruct((b_pad, o_pad), f32),
                   jax.ShapeDtypeStruct((grid_b * 8, o_pad), f32)),
        grid=(grid_b,),
        in_specs=[
            pl.BlockSpec((bt, In), lambda i: (i, 0)),
            pl.BlockSpec((In, o_pad), lambda i: (0, 0)),
            pl.BlockSpec((1, o_pad), lambda i: (0, 0)),
            pl.BlockSpec((p_pad, o_pad), lambda i: (0, 0)),
            pl.BlockSpec((1, o_pad), lambda i: (0, 0)),
        ],
        out_specs=(
            pl.BlockSpec((bt, o_pad), lambda i: (i, 0)),
            pl.BlockSpec((8, o_pad), lambda i: (i, 0)),
        ),
        scratch_shapes=[pltpu.VMEM((bt, o_pad), f32)],
        compiler_params=pltpu.CompilerParams(
            dimension_semantics=("parallel",)),
    )(x_p, wt_p, bias_p, table_t, wsc_p)

    # Tiny cross-tile reduction for the BatchNorm statistics (biased variance,
    # as torch BatchNorm1d uses for training-mode normalization), then a fused
    # XLA slice + normalize (replaces the old pass-2 kernel).
    stats = stats.reshape(grid_b, 8, o_pad)
    inv_b = jnp.float32(1.0 / B)
    mean = stats[:, 0, :O].sum(axis=0) * inv_b                      # (O,)
    ex2 = stats[:, 1, :O].sum(axis=0) * inv_b                       # (O,)
    var = jnp.maximum(ex2 - mean * mean, 0.0)
    istd = lax.rsqrt(var + jnp.float32(BN_EPS))
    return (y_full[:B, :O] - mean[None, :]) * istd[None, :]


# ----------------------------------------------------------------------------
# Pure-JAX reference (mirrors the PyTorch forward) for a sanity check.
# ----------------------------------------------------------------------------
def kan_layer_ref(x, weights, bias, coeffs, w_scalars, basis):
    lc = x @ weights.T + bias[None, :]                               # (B, O)
    P = basis.shape[0]
    idx = jnp.clip(jnp.trunc(lc * (P - 1)), 0, P - 1).astype(jnp.int32)
    basis_g = basis[idx]                                             # (B, O, K)
    spline = jnp.einsum("bok,ok->bo", basis_g, coeffs)               # (B, O)
    silu = lc / (1.0 + jnp.exp(-lc))
    y = w_scalars[None, :] * (silu + spline)
    mean = jnp.mean(y, axis=0, keepdims=True)
    var = jnp.mean((y - mean) ** 2, axis=0, keepdims=True)
    return (y - mean) / jnp.sqrt(var + BN_EPS)


if __name__ == "__main__":
    B, In, O = 100, 16, 32   # exercises batch padding (100 -> 2 tiles of 64),
                             # lane padding (O 32 -> 128) and table padding (P 100 -> 104)

    basis_np = precompute_bspline_basis(NUM_SPLINES, DEGREE, NUM_POINTS)  # (100, 10)
    basis = jnp.asarray(basis_np)

    key = jax.random.PRNGKey(0)
    kx, kw, kc = jax.random.split(key, 3)
    # Quantize x / weights to coarse dyadic grids so the linear combination is
    # exactly representable: the spline-index trunc() is discontinuous, and this
    # keeps the kernel's MXU matmul and the XLA reference bit-consistent at the
    # index boundaries (otherwise a 1-ulp difference could flip a bucket).
    x = jnp.round(jax.random.normal(kx, (B, In), dtype=jnp.float32) * 8.0) / 16.0
    weights = jnp.round(jax.random.normal(kw, (O, In), dtype=jnp.float32) * 4.0) / 32.0
    bias = jnp.zeros((O,), dtype=jnp.float32)
    coeffs = jax.random.normal(kc, (O, NUM_SPLINES), dtype=jnp.float32) * 0.1
    w_scalars = jnp.ones((O,), dtype=jnp.float32)

    out = kan_layer_forward(x, weights, bias, coeffs, w_scalars, basis)
    out = jax.block_until_ready(out)

    ref = kan_layer_ref(x, weights, bias, coeffs, w_scalars, basis)
    assert out.shape == (B, O)
    np.testing.assert_allclose(np.asarray(out), np.asarray(ref), rtol=1e-3, atol=1e-3)

    print("KERNEL_OK")
</pallas_src>

<mosaic_0001>
module attributes {stable_mosaic.version = 11 : i64} {
  func.func @_kan_pass1_kernel(%arg0: i32, %arg1: memref<64x16xf32, #tpu.memory_space<vmem>>, %arg2: memref<16x128xf32, #tpu.memory_space<vmem>>, %arg3: memref<1x128xf32, #tpu.memory_space<vmem>>, %arg4: memref<104x128xf32, #tpu.memory_space<vmem>>, %arg5: memref<1x128xf32, #tpu.memory_space<vmem>>, %arg6: memref<64x128xf32, #tpu.memory_space<vmem>>, %arg7: memref<8x128xf32, #tpu.memory_space<vmem>>, %arg8: memref<64x128xf32, #tpu.memory_space<vmem>>) attributes {dimension_semantics = [#tpu.dimension_semantics<parallel>], iteration_bounds = array<i64: 2>, scalar_prefetch = 0 : i64, scratch_operands = 1 : i64, tpu.core_type = #tpu.core_type<tc>, window_params = [{transform_indices = @transform_0, window_bounds = array<i64: 64, 16>}, {pipeline_mode = #tpu.pipeline_mode<synchronous>, transform_indices = @transform_1, window_bounds = array<i64: 16, 128>}, {pipeline_mode = #tpu.pipeline_mode<synchronous>, transform_indices = @transform_2, window_bounds = array<i64: 1, 128>}, {pipeline_mode = #tpu.pipeline_mode<synchronous>, transform_indices = @transform_3, window_bounds = array<i64: 104, 128>}, {pipeline_mode = #tpu.pipeline_mode<synchronous>, transform_indices = @transform_4, window_bounds = array<i64: 1, 128>}, {transform_indices = @transform_5, window_bounds = array<i64: 64, 128>}, {transform_indices = @transform_6, window_bounds = array<i64: 8, 128>}]} {
    %c0 = arith.constant 0 : index
    %c0_0 = arith.constant 0 : index
    %0 = vector.load %arg1[%c0, %c0_0] : memref<64x16xf32, #tpu.memory_space<vmem>>, vector<64x16xf32>
    %c0_1 = arith.constant 0 : index
    %c0_2 = arith.constant 0 : index
    %1 = vector.load %arg2[%c0_1, %c0_2] : memref<16x128xf32, #tpu.memory_space<vmem>>, vector<16x128xf32>
    %cst = arith.constant dense<0.000000e+00> : vector<64x128xf32>
    %2 = tpu.matmul %0, %1, %cst {dimension_numbers = #tpu.dot_dimension_numbers<[1], [0], [0], [1], [0, 0, 1, 1], [], []>} : vector<64x16xf32>, vector<16x128xf32>, vector<64x128xf32> -> vector<64x128xf32>
    %c0_3 = arith.constant 0 : index
    %c0_4 = arith.constant 0 : index
    %3 = vector.load %arg3[%c0_3, %c0_4] : memref<1x128xf32, #tpu.memory_space<vmem>>, vector<1x128xf32>
    %4 = vector.broadcast %3 : vector<1x128xf32> to vector<64x128xf32>
    %5 = arith.addf %2, %4 : vector<64x128xf32>
    %c0_5 = arith.constant 0 : index
    %c0_6 = arith.constant 0 : index
    %6 = vector.load %arg8[%c0_5, %c0_6] : memref<64x128xf32, #tpu.memory_space<vmem>>, vector<64x128xf32>
    tpu.vector_store %arg8[%c0_5, %c0_6], %5 {strides = array<i32>} : memref<64x128xf32, #tpu.memory_space<vmem>>, vector<64x128xf32>,
    %cst_7 = arith.constant 0.000000e+00 : f32
    %7 = vector.broadcast %cst_7 : f32 to vector<8x128xf32>
    %c0_8 = arith.constant 0 : index
    %c0_9 = arith.constant 0 : index
    %8 = vector.load %arg7[%c0_8, %c0_9] : memref<8x128xf32, #tpu.memory_space<vmem>>, vector<8x128xf32>
    tpu.vector_store %arg7[%c0_8, %c0_9], %7 {strides = array<i32>} : memref<8x128xf32, #tpu.memory_space<vmem>>, vector<8x128xf32>,
    %c0_10 = arith.constant 0 : index
    %c0_11 = arith.constant 0 : index
    %9 = vector.load %arg5[%c0_10, %c0_11] : memref<1x128xf32, #tpu.memory_space<vmem>>, vector<1x128xf32>
    %c64_i32 = arith.constant 64 : i32
    %10 = arith.muli %arg0, %c64_i32 : i32
    %11 = tpu.iota {dimensions = array<i32: 0>} : vector<8x128xi32>
    %cst_12 = arith.constant 9.900000e+01 : f32
    %c0_i32 = arith.constant 0 : i32
    %c2_i32 = arith.constant 2 : i32
    %12 = arith.addi %c0_i32, %c2_i32 : i32
    %c1_i32 = arith.constant 1 : i32
    scf.for %arg9 = %c0_i32 to %12 step %c1_i32  : i32 {
      %c32_i32 = arith.constant 32 : i32
      %13 = arith.muli %arg9, %c32_i32 : i32
      %14 = tpu.assume_multiple %13, 32 : i32
      %15 = arith.index_cast %14 : i32 to index
      %c0_14 = arith.constant 0 : index
      %16 = vector.load %arg8[%15, %c0_14] : memref<64x128xf32, #tpu.memory_space<vmem>>, vector<32x128xf32>
      %17 = vector.broadcast %cst_12 : f32 to vector<32x128xf32>
      %18 = arith.mulf %16, %17 : vector<32x128xf32>
      %cst_15 = arith.constant 0.000000e+00 : f32
      %19 = vector.broadcast %cst_15 : f32 to vector<32x128xf32>
      %20 = arith.cmpf olt, %18, %19 : vector<32x128xf32>
      %21 = math.ceil %18 : vector<32x128xf32>
      %22 = math.floor %18 : vector<32x128xf32>
      %23 = arith.select %20, %21, %22 : vector<32x128xi1>, vector<32x128xf32>
      %cst_16 = arith.constant 0.000000e+00 : f32
      %24 = vector.broadcast %cst_16 : f32 to vector<32x128xf32>
      %25 = arith.maximumf %24, %23 : vector<32x128xf32>
      %26 = vector.broadcast %cst_12 : f32 to vector<32x128xf32>
      %27 = arith.minimumf %26, %25 : vector<32x128xf32>
      %cst_17 = arith.constant 0.000000e+00 : f32
      %28 = vector.broadcast %cst_17 : f32 to vector<32x128xf32>
      %c0_18 = arith.constant 0 : index
      %c0_19 = arith.constant 0 : index
      %29 = vector.load %arg4[%c0_18, %c0_19] : memref<104x128xf32, #tpu.memory_space<vmem>>, vector<8x128xf32>
      %cst_20 = arith.constant 0.000000e+00 : f32
      %30 = vector.broadcast %cst_20 : f32 to vector<32x128xf32>
      %31 = arith.cmpf oeq, %27, %30 : vector<32x128xf32>
      %32 = vector.extract_strided_slice %29 {offsets = [0, 0], sizes = [1, 128], strides = [1, 1]} : vector<8x128xf32> to vector<1x128xf32>
      %33 = vector.shape_cast %32 : vector<1x128xf32> to vector<128xf32>
      %34 = vector.shape_cast %33 : vector<128xf32> to vector<1x128xf32>
      %35 = vector.broadcast %34 : vector<1x128xf32> to vector<32x128xf32>
      %36 = arith.select %31, %35, %28 : vector<32x128xi1>, vector<32x128xf32>
      %cst_21 = arith.constant 1.000000e+00 : f32
      %37 = vector.broadcast %cst_21 : f32 to vector<32x128xf32>
      %38 = arith.cmpf oeq, %27, %37 : vector<32x128xf32>
      %39 = vector.extract_strided_slice %29 {offsets = [1, 0], sizes = [1, 128], strides = [1, 1]} : vector<8x128xf32> to vector<1x128xf32>
      %40 = vector.shape_cast %39 : vector<1x128xf32> to vector<128xf32>
      %41 = vector.shape_cast %40 : vector<128xf32> to vector<1x128xf32>
      %42 = vector.broadcast %41 : vector<1x128xf32> to vector<32x128xf32>
      %43 = arith.select %38, %42, %36 : vector<32x128xi1>, vector<32x128xf32>
      %cst_22 = arith.constant 2.000000e+00 : f32
      %44 = vector.broadcast %cst_22 : f32 to vector<32x128xf32>
      %45 = arith.cmpf oeq, %27, %44 : vector<32x128xf32>
      %46 = vector.extract_strided_slice %29 {offsets = [2, 0], sizes = [1, 128], strides = [1, 1]} : vector<8x128xf32> to vector<1x128xf32>
      %47 = vector.shape_cast %46 : vector<1x128xf32> to vector<128xf32>
      %48 = vector.shape_cast %47 : vector<128xf32> to vector<1x128xf32>
      %49 = vector.broadcast %48 : vector<1x128xf32> to vector<32x128xf32>
      %50 = arith.select %45, %49, %43 : vector<32x128xi1>, vector<32x128xf32>
      %cst_23 = arith.constant 3.000000e+00 : f32
      %51 = vector.broadcast %cst_23 : f32 to vector<32x128xf32>
      %52 = arith.cmpf oeq, %27, %51 : vector<32x128xf32>
      %53 = vector.extract_strided_slice %29 {offsets = [3, 0], sizes = [1, 128], strides = [1, 1]} : vector<8x128xf32> to vector<1x128xf32>
      %54 = vector.shape_cast %53 : vector<1x128xf32> to vector<128xf32>
      %55 = vector.shape_cast %54 : vector<128xf32> to vector<1x128xf32>
      %56 = vector.broadcast %55 : vector<1x128xf32> to vector<32x128xf32>
      %57 = arith.select %52, %56, %50 : vector<32x128xi1>, vector<32x128xf32>
      %cst_24 = arith.constant 4.000000e+00 : f32
      %58 = vector.broadcast %cst_24 : f32 to vector<32x128xf32>
      %59 = arith.cmpf oeq, %27, %58 : vector<32x128xf32>
      %60 = vector.extract_strided_slice %29 {offsets = [4, 0], sizes = [1, 128], strides = [1, 1]} : vector<8x128xf32> to vector<1x128xf32>
      %61 = vector.shape_cast %60 : vector<1x128xf32> to vector<128xf32>
      %62 = vector.shape_cast %61 : vector<128xf32> to vector<1x128xf32>
      %63 = vector.broadcast %62 : vector<1x128xf32> to vector<32x128xf32>
      %64 = arith.select %59, %63, %57 : vector<32x128xi1>, vector<32x128xf32>
      %cst_25 = arith.constant 5.000000e+00 : f32
      %65 = vector.broadcast %cst_25 : f32 to vector<32x128xf32>
      %66 = arith.cmpf oeq, %27, %65 : vector<32x128xf32>
      %67 = vector.extract_strided_slice %29 {offsets = [5, 0], sizes = [1, 128], strides = [1, 1]} : vector<8x128xf32> to vector<1x128xf32>
      %68 = vector.shape_cast %67 : vector<1x128xf32> to vector<128xf32>
      %69 = vector.shape_cast %68 : vector<128xf32> to vector<1x128xf32>
      %70 = vector.broadcast %69 : vector<1x128xf32> to vector<32x128xf32>
      %71 = arith.select %66, %70, %64 : vector<32x128xi1>, vector<32x128xf32>
      %cst_26 = arith.constant 6.000000e+00 : f32
      %72 = vector.broadcast %cst_26 : f32 to vector<32x128xf32>
      %73 = arith.cmpf oeq, %27, %72 : vector<32x128xf32>
      %74 = vector.extract_strided_slice %29 {offsets = [6, 0], sizes = [1, 128], strides = [1, 1]} : vector<8x128xf32> to vector<1x128xf32>
      %75 = vector.shape_cast %74 : vector<1x128xf32> to vector<128xf32>
      %76 = vector.shape_cast %75 : vector<128xf32> to vector<1x128xf32>
      %77 = vector.broadcast %76 : vector<1x128xf32> to vector<32x128xf32>
      %78 = arith.select %73, %77, %71 : vector<32x128xi1>, vector<32x128xf32>
      %cst_27 = arith.constant 7.000000e+00 : f32
      %79 = vector.broadcast %cst_27 : f32 to vector<32x128xf32>
      %80 = arith.cmpf oeq, %27, %79 : vector<32x128xf32>
      %81 = vector.extract_strided_slice %29 {offsets = [7, 0], sizes = [1, 128], strides = [1, 1]} : vector<8x128xf32> to vector<1x128xf32>
      %82 = vector.shape_cast %81 : vector<1x128xf32> to vector<128xf32>
      %83 = vector.shape_cast %82 : vector<128xf32> to vector<1x128xf32>
      %84 = vector.broadcast %83 : vector<1x128xf32> to vector<32x128xf32>
      %85 = arith.select %80, %84, %78 : vector<32x128xi1>, vector<32x128xf32>
      %c8 = arith.constant 8 : index
      %c0_28 = arith.constant 0 : index
      %86 = vector.load %arg4[%c8, %c0_28] : memref<104x128xf32, #tpu.memory_space<vmem>>, vector<8x128xf32>
      %cst_29 = arith.constant 8.000000e+00 : f32
      %87 = vector.broadcast %cst_29 : f32 to vector<32x128xf32>
      %88 = arith.cmpf oeq, %27, %87 : vector<32x128xf32>
      %89 = vector.extract_strided_slice %86 {offsets = [0, 0], sizes = [1, 128], strides = [1, 1]} : vector<8x128xf32> to vector<1x128xf32>
      %90 = vector.shape_cast %89 : vector<1x128xf32> to vector<128xf32>
      %91 = vector.shape_cast %90 : vector<128xf32> to vector<1x128xf32>
      %92 = vector.broadcast %91 : vector<1x128xf32> to vector<32x128xf32>
      %93 = arith.select %88, %92, %85 : vector<32x128xi1>, vector<32x128xf32>
      %cst_30 = arith.constant 9.000000e+00 : f32
      %94 = vector.broadcast %cst_30 : f32 to vector<32x128xf32>
      %95 = arith.cmpf oeq, %27, %94 : vector<32x128xf32>
      %96 = vector.extract_strided_slice %86 {offsets = [1, 0], sizes = [1, 128], strides = [1, 1]} : vector<8x128xf32> to vector<1x128xf32>
      %97 = vector.shape_cast %96 : vector<1x128xf32> to vector<128xf32>
      %98 = vector.shape_cast %97 : vector<128xf32> to vector<1x128xf32>
      %99 = vector.broadcast %98 : vector<1x128xf32> to vector<32x128xf32>
      %100 = arith.select %95, %99, %93 : vector<32x128xi1>, vector<32x128xf32>
      %cst_31 = arith.constant 1.000000e+01 : f32
      %101 = vector.broadcast %cst_31 : f32 to vector<32x128xf32>
      %102 = arith.cmpf oeq, %27, %101 : vector<32x128xf32>
      %103 = vector.extract_strided_slice %86 {offsets = [2, 0], sizes = [1, 128], strides = [1, 1]} : vector<8x128xf32> to vector<1x128xf32>
      %104 = vector.shape_cast %103 : vector<1x128xf32> to vector<128xf32>
      %105 = vector.shape_cast %104 : vector<128xf32> to vector<1x128xf32>
      %106 = vector.broadcast %105 : vector<1x128xf32> to vector<32x128xf32>
      %107 = arith.select %102, %106, %100 : vector<32x128xi1>, vector<32x128xf32>
      %cst_32 = arith.constant 1.100000e+01 : f32
      %108 = vector.broadcast %cst_32 : f32 to vector<32x128xf32>
      %109 = arith.cmpf oeq, %27, %108 : vector<32x128xf32>
      %110 = vector.extract_strided_slice %86 {offsets = [3, 0], sizes = [1, 128], strides = [1, 1]} : vector<8x128xf32> to vector<1x128xf32>
      %111 = vector.shape_cast %110 : vector<1x128xf32> to vector<128xf32>
      %112 = vector.shape_cast %111 : vector<128xf32> to vector<1x128xf32>
      %113 = vector.broadcast %112 : vector<1x128xf32> to vector<32x128xf32>
      %114 = arith.select %109, %113, %107 : vector<32x128xi1>, vector<32x128xf32>
      %cst_33 = arith.constant 1.200000e+01 : f32
      %115 = vector.broadcast %cst_33 : f32 to vector<32x128xf32>
      %116 = arith.cmpf oeq, %27, %115 : vector<32x128xf32>
      %117 = vector.extract_strided_slice %86 {offsets = [4, 0], sizes = [1, 128], strides = [1, 1]} : vector<8x128xf32> to vector<1x128xf32>
      %118 = vector.shape_cast %117 : vector<1x128xf32> to vector<128xf32>
      %119 = vector.shape_cast %118 : vector<128xf32> to vector<1x128xf32>
      %120 = vector.broadcast %119 : vector<1x128xf32> to vector<32x128xf32>
      %121 = arith.select %116, %120, %114 : vector<32x128xi1>, vector<32x128xf32>
      %cst_34 = arith.constant 1.300000e+01 : f32
      %122 = vector.broadcast %cst_34 : f32 to vector<32x128xf32>
      %123 = arith.cmpf oeq, %27, %122 : vector<32x128xf32>
      %124 = vector.extract_strided_slice %86 {offsets = [5, 0], sizes = [1, 128], strides = [1, 1]} : vector<8x128xf32> to vector<1x128xf32>
      %125 = vector.shape_cast %124 : vector<1x128xf32> to vector<128xf32>
      %126 = vector.shape_cast %125 : vector<128xf32> to vector<1x128xf32>
      %127 = vector.broadcast %126 : vector<1x128xf32> to vector<32x128xf32>
      %128 = arith.select %123, %127, %121 : vector<32x128xi1>, vector<32x128xf32>
      %cst_35 = arith.constant 1.400000e+01 : f32
      %129 = vector.broadcast %cst_35 : f32 to vector<32x128xf32>
      %130 = arith.cmpf oeq, %27, %129 : vector<32x128xf32>
      %131 = vector.extract_strided_slice %86 {offsets = [6, 0], sizes = [1, 128], strides = [1, 1]} : vector<8x128xf32> to vector<1x128xf32>
      %132 = vector.shape_cast %131 : vector<1x128xf32> to vector<128xf32>
      %133 = vector.shape_cast %132 : vector<128xf32> to vector<1x128xf32>
      %134 = vector.broadcast %133 : vector<1x128xf32> to vector<32x128xf32>
      %135 = arith.select %130, %134, %128 : vector<32x128xi1>, vector<32x128xf32>
      %cst_36 = arith.constant 1.500000e+01 : f32
      %136 = vector.broadcast %cst_36 : f32 to vector<32x128xf32>
      %137 = arith.cmpf oeq, %27, %136 : vector<32x128xf32>
      %138 = vector.extract_strided_slice %86 {offsets = [7, 0], sizes = [1, 128], strides = [1, 1]} : vector<8x128xf32> to vector<1x128xf32>
      %139 = vector.shape_cast %138 : vector<1x128xf32> to vector<128xf32>
      %140 = vector.shape_cast %139 : vector<128xf32> to vector<1x128xf32>
      %141 = vector.broadcast %140 : vector<1x128xf32> to vector<32x128xf32>
      %142 = arith.select %137, %141, %135 : vector<32x128xi1>, vector<32x128xf32>
      %c16 = arith.constant 16 : index
      %c0_37 = arith.constant 0 : index
      %143 = vector.load %arg4[%c16, %c0_37] : memref<104x128xf32, #tpu.memory_space<vmem>>, vector<8x128xf32>
      %cst_38 = arith.constant 1.600000e+01 : f32
      %144 = vector.broadcast %cst_38 : f32 to vector<32x128xf32>
      %145 = arith.cmpf oeq, %27, %144 : vector<32x128xf32>
      %146 = vector.extract_strided_slice %143 {offsets = [0, 0], sizes = [1, 128], strides = [1, 1]} : vector<8x128xf32> to vector<1x128xf32>
      %147 = vector.shape_cast %146 : vector<1x128xf32> to vector<128xf32>
      %148 = vector.shape_cast %147 : vector<128xf32> to vector<1x128xf32>
      %149 = vector.broadcast %148 : vector<1x128xf32> to vector<32x128xf32>
      %150 = arith.select %145, %149, %142 : vector<32x128xi1>, vector<32x128xf32>
      %cst_39 = arith.constant 1.700000e+01 : f32
      %151 = vector.broadcast %cst_39 : f32 to vector<32x128xf32>
      %152 = arith.cmpf oeq, %27, %151 : vector<32x128xf32>
      %153 = vector.extract_strided_slice %143 {offsets = [1, 0], sizes = [1, 128], strides = [1, 1]} : vector<8x128xf32> to vector<1x128xf32>
      %154 = vector.shape_cast %153 : vector<1x128xf32> to vector<128xf32>
      %155 = vector.shape_cast %154 : vector<128xf32> to vector<1x128xf32>
      %156 = vector.broadcast %155 : vector<1x128xf32> to vector<32x128xf32>
      %157 = arith.select %152, %156, %150 : vector<32x128xi1>, vector<32x128xf32>
      %cst_40 = arith.constant 1.800000e+01 : f32
      %158 = vector.broadcast %cst_40 : f32 to vector<32x128xf32>
      %159 = arith.cmpf oeq, %27, %158 : vector<32x128xf32>
      %160 = vector.extract_strided_slice %143 {offsets = [2, 0], sizes = [1, 128], strides = [1, 1]} : vector<8x128xf32> to vector<1x128xf32>
      %161 = vector.shape_cast %160 : vector<1x128xf32> to vector<128xf32>
      %162 = vector.shape_cast %161 : vector<128xf32> to vector<1x128xf32>
      %163 = vector.broadcast %162 : vector<1x128xf32> to vector<32x128xf32>
      %164 = arith.select %159, %163, %157 : vector<32x128xi1>, vector<32x128xf32>
      %cst_41 = arith.constant 1.900000e+01 : f32
      %165 = vector.broadcast %cst_41 : f32 to vector<32x128xf32>
      %166 = arith.cmpf oeq, %27, %165 : vector<32x128xf32>
      %167 = vector.extract_strided_slice %143 {offsets = [3, 0], sizes = [1, 128], strides = [1, 1]} : vector<8x128xf32> to vector<1x128xf32>
      %168 = vector.shape_cast %167 : vector<1x128xf32> to vector<128xf32>
      %169 = vector.shape_cast %168 : vector<128xf32> to vector<1x128xf32>
      %170 = vector.broadcast %169 : vector<1x128xf32> to vector<32x128xf32>
      %171 = arith.select %166, %170, %164 : vector<32x128xi1>, vector<32x128xf32>
      %cst_42 = arith.constant 2.000000e+01 : f32
      %172 = vector.broadcast %cst_42 : f32 to vector<32x128xf32>
      %173 = arith.cmpf oeq, %27, %172 : vector<32x128xf32>
      %174 = vector.extract_strided_slice %143 {offsets = [4, 0], sizes = [1, 128], strides = [1, 1]} : vector<8x128xf32> to vector<1x128xf32>
      %175 = vector.shape_cast %174 : vector<1x128xf32> to vector<128xf32>
      %176 = vector.shape_cast %175 : vector<128xf32> to vector<1x128xf32>
      %177 = vector.broadcast %176 : vector<1x128xf32> to vector<32x128xf32>
      %178 = arith.select %173, %177, %171 : vector<32x128xi1>, vector<32x128xf32>
      %cst_43 = arith.constant 2.100000e+01 : f32
      %179 = vector.broadcast %cst_43 : f32 to vector<32x128xf32>
      %180 = arith.cmpf oeq, %27, %179 : vector<32x128xf32>
      %181 = vector.extract_strided_slice %143 {offsets = [5, 0], sizes = [1, 128], strides = [1, 1]} : vector<8x128xf32> to vector<1x128xf32>
      %182 = vector.shape_cast %181 : vector<1x128xf32> to vector<128xf32>
      %183 = vector.shape_cast %182 : vector<128xf32> to vector<1x128xf32>
      %184 = vector.broadcast %183 : vector<1x128xf32> to vector<32x128xf32>
      %185 = arith.select %180, %184, %178 : vector<32x128xi1>, vector<32x128xf32>
      %cst_44 = arith.constant 2.200000e+01 : f32
      %186 = vector.broadcast %cst_44 : f32 to vector<32x128xf32>
      %187 = arith.cmpf oeq, %27, %186 : vector<32x128xf32>
      %188 = vector.extract_strided_slice %143 {offsets = [6, 0], sizes = [1, 128], strides = [1, 1]} : vector<8x128xf32> to vector<1x128xf32>
      %189 = vector.shape_cast %188 : vector<1x128xf32> to vector<128xf32>
      %190 = vector.shape_cast %189 : vector<128xf32> to vector<1x128xf32>
      %191 = vector.broadcast %190 : vector<1x128xf32> to vector<32x128xf32>
      %192 = arith.select %187, %191, %185 : vector<32x128xi1>, vector<32x128xf32>
      %cst_45 = arith.constant 2.300000e+01 : f32
      %193 = vector.broadcast %cst_45 : f32 to vector<32x128xf32>
      %194 = arith.cmpf oeq, %27, %193 : vector<32x128xf32>
      %195 = vector.extract_strided_slice %143 {offsets = [7, 0], sizes = [1, 128], strides = [1, 1]} : vector<8x128xf32> to vector<1x128xf32>
      %196 = vector.shape_cast %195 : vector<1x128xf32> to vector<128xf32>
      %197 = vector.shape_cast %196 : vector<128xf32> to vector<1x128xf32>
      %198 = vector.broadcast %197 : vector<1x128xf32> to vector<32x128xf32>
      %199 = arith.select %194, %198, %192 : vector<32x128xi1>, vector<32x128xf32>
      %c24 = arith.constant 24 : index
      %c0_46 = arith.constant 0 : index
      %200 = vector.load %arg4[%c24, %c0_46] : memref<104x128xf32, #tpu.memory_space<vmem>>, vector<8x128xf32>
      %cst_47 = arith.constant 2.400000e+01 : f32
      %201 = vector.broadcast %cst_47 : f32 to vector<32x128xf32>
      %202 = arith.cmpf oeq, %27, %201 : vector<32x128xf32>
      %203 = vector.extract_strided_slice %200 {offsets = [0, 0], sizes = [1, 128], strides = [1, 1]} : vector<8x128xf32> to vector<1x128xf32>
      %204 = vector.shape_cast %203 : vector<1x128xf32> to vector<128xf32>
      %205 = vector.shape_cast %204 : vector<128xf32> to vector<1x128xf32>
      %206 = vector.broadcast %205 : vector<1x128xf32> to vector<32x128xf32>
      %207 = arith.select %202, %206, %199 : vector<32x128xi1>, vector<32x128xf32>
      %cst_48 = arith.constant 2.500000e+01 : f32
      %208 = vector.broadcast %cst_48 : f32 to vector<32x128xf32>
      %209 = arith.cmpf oeq, %27, %208 : vector<32x128xf32>
      %210 = vector.extract_strided_slice %200 {offsets = [1, 0], sizes = [1, 128], strides = [1, 1]} : vector<8x128xf32> to vector<1x128xf32>
      %211 = vector.shape_cast %210 : vector<1x128xf32> to vector<128xf32>
      %212 = vector.shape_cast %211 : vector<128xf32> to vector<1x128xf32>
      %213 = vector.broadcast %212 : vector<1x128xf32> to vector<32x128xf32>
      %214 = arith.select %209, %213, %207 : vector<32x128xi1>, vector<32x128xf32>
      %cst_49 = arith.constant 2.600000e+01 : f32
      %215 = vector.broadcast %cst_49 : f32 to vector<32x128xf32>
      %216 = arith.cmpf oeq, %27, %215 : vector<32x128xf32>
      %217 = vector.extract_strided_slice %200 {offsets = [2, 0], sizes = [1, 128], strides = [1, 1]} : vector<8x128xf32> to vector<1x128xf32>
      %218 = vector.shape_cast %217 : vector<1x128xf32> to vector<128xf32>
      %219 = vector.shape_cast %218 : vector<128xf32> to vector<1x128xf32>
      %220 = vector.broadcast %219 : vector<1x128xf32> to vector<32x128xf32>
      %221 = arith.select %216, %220, %214 : vector<32x128xi1>, vector<32x128xf32>
      %cst_50 = arith.constant 2.700000e+01 : f32
      %222 = vector.broadcast %cst_50 : f32 to vector<32x128xf32>
      %223 = arith.cmpf oeq, %27, %222 : vector<32x128xf32>
      %224 = vector.extract_strided_slice %200 {offsets = [3, 0], sizes = [1, 128], strides = [1, 1]} : vector<8x128xf32> to vector<1x128xf32>
      %225 = vector.shape_cast %224 : vector<1x128xf32> to vector<128xf32>
      %226 = vector.shape_cast %225 : vector<128xf32> to vector<1x128xf32>
      %227 = vector.broadcast %226 : vector<1x128xf32> to vector<32x128xf32>
      %228 = arith.select %223, %227, %221 : vector<32x128xi1>, vector<32x128xf32>
      %cst_51 = arith.constant 2.800000e+01 : f32
      %229 = vector.broadcast %cst_51 : f32 to vector<32x128xf32>
      %230 = arith.cmpf oeq, %27, %229 : vector<32x128xf32>
      %231 = vector.extract_strided_slice %200 {offsets = [4, 0], sizes = [1, 128], strides = [1, 1]} : vector<8x128xf32> to vector<1x128xf32>
      %232 = vector.shape_cast %231 : vector<1x128xf32> to vector<128xf32>
      %233 = vector.shape_cast %232 : vector<128xf32> to vector<1x128xf32>
      %234 = vector.broadcast %233 : vector<1x128xf32> to vector<32x128xf32>
      %235 = arith.select %230, %234, %228 : vector<32x128xi1>, vector<32x128xf32>
      %cst_52 = arith.constant 2.900000e+01 : f32
      %236 = vector.broadcast %cst_52 : f32 to vector<32x128xf32>
      %237 = arith.cmpf oeq, %27, %236 : vector<32x128xf32>
      %238 = vector.extract_strided_slice %200 {offsets = [5, 0], sizes = [1, 128], strides = [1, 1]} : vector<8x128xf32> to vector<1x128xf32>
      %239 = vector.shape_cast %238 : vector<1x128xf32> to vector<128xf32>
      %240 = vector.shape_cast %239 : vector<128xf32> to vector<1x128xf32>
      %241 = vector.broadcast %240 : vector<1x128xf32> to vector<32x128xf32>
      %242 = arith.select %237, %241, %235 : vector<32x128xi1>, vector<32x128xf32>
      %cst_53 = arith.constant 3.000000e+01 : f32
      %243 = vector.broadcast %cst_53 : f32 to vector<32x128xf32>
      %244 = arith.cmpf oeq, %27, %243 : vector<32x128xf32>
      %245 = vector.extract_strided_slice %200 {offsets = [6, 0], sizes = [1, 128], strides = [1, 1]} : vector<8x128xf32> to vector<1x128xf32>
      %246 = vector.shape_cast %245 : vector<1x128xf32> to vector<128xf32>
      %247 = vector.shape_cast %246 : vector<128xf32> to vector<1x128xf32>
      %248 = vector.broadcast %247 : vector<1x128xf32> to vector<32x128xf32>
      %249 = arith.select %244, %248, %242 : vector<32x128xi1>, vector<32x128xf32>
      %cst_54 = arith.constant 3.100000e+01 : f32
      %250 = vector.broadcast %cst_54 : f32 to vector<32x128xf32>
      %251 = arith.cmpf oeq, %27, %250 : vector<32x128xf32>
      %252 = vector.extract_strided_slice %200 {offsets = [7, 0], sizes = [1, 128], strides = [1, 1]} : vector<8x128xf32> to vector<1x128xf32>
      %253 = vector.shape_cast %252 : vector<1x128xf32> to vector<128xf32>
      %254 = vector.shape_cast %253 : vector<128xf32> to vector<1x128xf32>
      %255 = vector.broadcast %254 : vector<1x128xf32> to vector<32x128xf32>
      %256 = arith.select %251, %255, %249 : vector<32x128xi1>, vector<32x128xf32>
      %c32 = arith.constant 32 : index
      %c0_55 = arith.constant 0 : index
      %257 = vector.load %arg4[%c32, %c0_55] : memref<104x128xf32, #tpu.memory_space<vmem>>, vector<8x128xf32>
      %cst_56 = arith.constant 3.200000e+01 : f32
      %258 = vector.broadcast %cst_56 : f32 to vector<32x128xf32>
      %259 = arith.cmpf oeq, %27, %258 : vector<32x128xf32>
      %260 = vector.extract_strided_slice %257 {offsets = [0, 0], sizes = [1, 128], strides = [1, 1]} : vector<8x128xf32> to vector<1x128xf32>
      %261 = vector.shape_cast %260 : vector<1x128xf32> to vector<128xf32>
      %262 = vector.shape_cast %261 : vector<128xf32> to vector<1x128xf32>
      %263 = vector.broadcast %262 : vector<1x128xf32> to vector<32x128xf32>
      %264 = arith.select %259, %263, %256 : vector<32x128xi1>, vector<32x128xf32>
      %cst_57 = arith.constant 3.300000e+01 : f32
      %265 = vector.broadcast %cst_57 : f32 to vector<32x128xf32>
      %266 = arith.cmpf oeq, %27, %265 : vector<32x128xf32>
      %267 = vector.extract_strided_slice %257 {offsets = [1, 0], sizes = [1, 128], strides = [1, 1]} : vector<8x128xf32> to vector<1x128xf32>
      %268 = vector.shape_cast %267 : vector<1x128xf32> to vector<128xf32>
      %269 = vector.shape_cast %268 : vector<128xf32> to vector<1x128xf32>
      %270 = vector.broadcast %269 : vector<1x128xf32> to vector<32x128xf32>
      %271 = arith.select %266, %270, %264 : vector<32x128xi1>, vector<32x128xf32>
      %cst_58 = arith.constant 3.400000e+01 : f32
      %272 = vector.broadcast %cst_58 : f32 to vector<32x128xf32>
      %273 = arith.cmpf oeq, %27, %272 : vector<32x128xf32>
      %274 = vector.extract_strided_slice %257 {offsets = [2, 0], sizes = [1, 128], strides = [1, 1]} : vector<8x128xf32> to vector<1x128xf32>
      %275 = vector.shape_cast %274 : vector<1x128xf32> to vector<128xf32>
      %276 = vector.shape_cast %275 : vector<128xf32> to vector<1x128xf32>
      %277 = vector.broadcast %276 : vector<1x128xf32> to vector<32x128xf32>
      %278 = arith.select %273, %277, %271 : vector<32x128xi1>, vector<32x128xf32>
      %cst_59 = arith.constant 3.500000e+01 : f32
      %279 = vector.broadcast %cst_59 : f32 to vector<32x128xf32>
      %280 = arith.cmpf oeq, %27, %279 : vector<32x128xf32>
      %281 = vector.extract_strided_slice %257 {offsets = [3, 0], sizes = [1, 128], strides = [1, 1]} : vector<8x128xf32> to vector<1x128xf32>
      %282 = vector.shape_cast %281 : vector<1x128xf32> to vector<128xf32>
      %283 = vector.shape_cast %282 : vector<128xf32> to vector<1x128xf32>
      %284 = vector.broadcast %283 : vector<1x128xf32> to vector<32x128xf32>
      %285 = arith.select %280, %284, %278 : vector<32x128xi1>, vector<32x128xf32>
      %cst_60 = arith.constant 3.600000e+01 : f32
      %286 = vector.broadcast %cst_60 : f32 to vector<32x128xf32>
      %287 = arith.cmpf oeq, %27, %286 : vector<32x128xf32>
      %288 = vector.extract_strided_slice %257 {offsets = [4, 0], sizes = [1, 128], strides = [1, 1]} : vector<8x128xf32> to vector<1x128xf32>
      %289 = vector.shape_cast %288 : vector<1x128xf32> to vector<128xf32>
      %290 = vector.shape_cast %289 : vector<128xf32> to vector<1x128xf32>
      %291 = vector.broadcast %290 : vector<1x128xf32> to vector<32x128xf32>
      %292 = arith.select %287, %291, %285 : vector<32x128xi1>, vector<32x128xf32>
      %cst_61 = arith.constant 3.700000e+01 : f32
      %293 = vector.broadcast %cst_61 : f32 to vector<32x128xf32>
      %294 = arith.cmpf oeq, %27, %293 : vector<32x128xf32>
      %295 = vector.extract_strided_slice %257 {offsets = [5, 0], sizes = [1, 128], strides = [1, 1]} : vector<8x128xf32> to vector<1x128xf32>
      %296 = vector.shape_cast %295 : vector<1x128xf32> to vector<128xf32>
      %297 = vector.shape_cast %296 : vector<128xf32> to vector<1x128xf32>
      %298 = vector.broadcast %297 : vector<1x128xf32> to vector<32x128xf32>
      %299 = arith.select %294, %298, %292 : vector<32x128xi1>, vector<32x128xf32>
      %cst_62 = arith.constant 3.800000e+01 : f32
      %300 = vector.broadcast %cst_62 : f32 to vector<32x128xf32>
      %301 = arith.cmpf oeq, %27, %300 : vector<32x128xf32>
      %302 = vector.extract_strided_slice %257 {offsets = [6, 0], sizes = [1, 128], strides = [1, 1]} : vector<8x128xf32> to vector<1x128xf32>
      %303 = vector.shape_cast %302 : vector<1x128xf32> to vector<128xf32>
      %304 = vector.shape_cast %303 : vector<128xf32> to vector<1x128xf32>
      %305 = vector.broadcast %304 : vector<1x128xf32> to vector<32x128xf32>
      %306 = arith.select %301, %305, %299 : vector<32x128xi1>, vector<32x128xf32>
      %cst_63 = arith.constant 3.900000e+01 : f32
      %307 = vector.broadcast %cst_63 : f32 to vector<32x128xf32>
      %308 = arith.cmpf oeq, %27, %307 : vector<32x128xf32>
      %309 = vector.extract_strided_slice %257 {offsets = [7, 0], sizes = [1, 128], strides = [1, 1]} : vector<8x128xf32> to vector<1x128xf32>
      %310 = vector.shape_cast %309 : vector<1x128xf32> to vector<128xf32>
      %311 = vector.shape_cast %310 : vector<128xf32> to vector<1x128xf32>
      %312 = vector.broadcast %311 : vector<1x128xf32> to vector<32x128xf32>
      %313 = arith.select %308, %312, %306 : vector<32x128xi1>, vector<32x128xf32>
      %c40 = arith.constant 40 : index
      %c0_64 = arith.constant 0 : index
      %314 = vector.load %arg4[%c40, %c0_64] : memref<104x128xf32, #tpu.memory_space<vmem>>, vector<8x128xf32>
      %cst_65 = arith.constant 4.000000e+01 : f32
      %315 = vector.broadcast %cst_65 : f32 to vector<32x128xf32>
      %316 = arith.cmpf oeq, %27, %315 : vector<32x128xf32>
      %317 = vector.extract_strided_slice %314 {offsets = [0, 0], sizes = [1, 128], strides = [1, 1]} : vector<8x128xf32> to vector<1x128xf32>
      %318 = vector.shape_cast %317 : vector<1x128xf32> to vector<128xf32>
      %319 = vector.shape_cast %318 : vector<128xf32> to vector<1x128xf32>
      %320 = vector.broadcast %319 : vector<1x128xf32> to vector<32x128xf32>
      %321 = arith.select %316, %320, %313 : vector<32x128xi1>, vector<32x128xf32>
      %cst_66 = arith.constant 4.100000e+01 : f32
      %322 = vector.broadcast %cst_66 : f32 to vector<32x128xf32>
      %323 = arith.cmpf oeq, %27, %322 : vector<32x128xf32>
      %324 = vector.extract_strided_slice %314 {offsets = [1, 0], sizes = [1, 128], strides = [1, 1]} : vector<8x128xf32> to vector<1x128xf32>
      %325 = vector.shape_cast %324 : vector<1x128xf32> to vector<128xf32>
      %326 = vector.shape_cast %325 : vector<128xf32> to vector<1x128xf32>
      %327 = vector.broadcast %326 : vector<1x128xf32> to vector<32x128xf32>
      %328 = arith.select %323, %327, %321 : vector<32x128xi1>, vector<32x128xf32>
      %cst_67 = arith.constant 4.200000e+01 : f32
      %329 = vector.broadcast %cst_67 : f32 to vector<32x128xf32>
      %330 = arith.cmpf oeq, %27, %329 : vector<32x128xf32>
      %331 = vector.extract_strided_slice %314 {offsets = [2, 0], sizes = [1, 128], strides = [1, 1]} : vector<8x128xf32> to vector<1x128xf32>
      %332 = vector.shape_cast %331 : vector<1x128xf32> to vector<128xf32>
      %333 = vector.shape_cast %332 : vector<128xf32> to vector<1x128xf32>
      %334 = vector.broadcast %333 : vector<1x128xf32> to vector<32x128xf32>
      %335 = arith.select %330, %334, %328 : vector<32x128xi1>, vector<32x128xf32>
      %cst_68 = arith.constant 4.300000e+01 : f32
      %336 = vector.broadcast %cst_68 : f32 to vector<32x128xf32>
      %337 = arith.cmpf oeq, %27, %336 : vector<32x128xf32>
      %338 = vector.extract_strided_slice %314 {offsets = [3, 0], sizes = [1, 128], strides = [1, 1]} : vector<8x128xf32> to vector<1x128xf32>
      %339 = vector.shape_cast %338 : vector<1x128xf32> to vector<128xf32>
      %340 = vector.shape_cast %339 : vector<128xf32> to vector<1x128xf32>
      %341 = vector.broadcast %340 : vector<1x128xf32> to vector<32x128xf32>
      %342 = arith.select %337, %341, %335 : vector<32x128xi1>, vector<32x128xf32>
      %cst_69 = arith.constant 4.400000e+01 : f32
      %343 = vector.broadcast %cst_69 : f32 to vector<32x128xf32>
      %344 = arith.cmpf oeq, %27, %343 : vector<32x128xf32>
      %345 = vector.extract_strided_slice %314 {offsets = [4, 0], sizes = [1, 128], strides = [1, 1]} : vector<8x128xf32> to vector<1x128xf32>
      %346 = vector.shape_cast %345 : vector<1x128xf32> to vector<128xf32>
      %347 = vector.shape_cast %346 : vector<128xf32> to vector<1x128xf32>
      %348 = vector.broadcast %347 : vector<1x128xf32> to vector<32x128xf32>
      %349 = arith.select %344, %348, %342 : vector<32x128xi1>, vector<32x128xf32>
      %cst_70 = arith.constant 4.500000e+01 : f32
      %350 = vector.broadcast %cst_70 : f32 to vector<32x128xf32>
      %351 = arith.cmpf oeq, %27, %350 : vector<32x128xf32>
      %352 = vector.extract_strided_slice %314 {offsets = [5, 0], sizes = [1, 128], strides = [1, 1]} : vector<8x128xf32> to vector<1x128xf32>
      %353 = vector.shape_cast %352 : vector<1x128xf32> to vector<128xf32>
      %354 = vector.shape_cast %353 : vector<128xf32> to vector<1x128xf32>
      %355 = vector.broadcast %354 : vector<1x128xf32> to vector<32x128xf32>
      %356 = arith.select %351, %355, %349 : vector<32x128xi1>, vector<32x128xf32>
      %cst_71 = arith.constant 4.600000e+01 : f32
      %357 = vector.broadcast %cst_71 : f32 to vector<32x128xf32>
      %358 = arith.cmpf oeq, %27, %357 : vector<32x128xf32>
      %359 = vector.extract_strided_slice %314 {offsets = [6, 0], sizes = [1, 128], strides = [1, 1]} : vector<8x128xf32> to vector<1x128xf32>
      %360 = vector.shape_cast %359 : vector<1x128xf32> to vector<128xf32>
      %361 = vector.shape_cast %360 : vector<128xf32> to vector<1x128xf32>
      %362 = vector.broadcast %361 : vector<1x128xf32> to vector<32x128xf32>
      %363 = arith.select %358, %362, %356 : vector<32x128xi1>, vector<32x128xf32>
      %cst_72 = arith.constant 4.700000e+01 : f32
      %364 = vector.broadcast %cst_72 : f32 to vector<32x128xf32>
      %365 = arith.cmpf oeq, %27, %364 : vector<32x128xf32>
      %366 = vector.extract_strided_slice %314 {offsets = [7, 0], sizes = [1, 128], strides = [1, 1]} : vector<8x128xf32> to vector<1x128xf32>
      %367 = vector.shape_cast %366 : vector<1x128xf32> to vector<128xf32>
      %368 = vector.shape_cast %367 : vector<128xf32> to vector<1x128xf32>
      %369 = vector.broadcast %368 : vector<1x128xf32> to vector<32x128xf32>
      %370 = arith.select %365, %369, %363 : vector<32x128xi1>, vector<32x128xf32>
      %c48 = arith.constant 48 : index
      %c0_73 = arith.constant 0 : index
      %371 = vector.load %arg4[%c48, %c0_73] : memref<104x128xf32, #tpu.memory_space<vmem>>, vector<8x128xf32>
      %cst_74 = arith.constant 4.800000e+01 : f32
      %372 = vector.broadcast %cst_74 : f32 to vector<32x128xf32>
      %373 = arith.cmpf oeq, %27, %372 : vector<32x128xf32>
      %374 = vector.extract_strided_slice %371 {offsets = [0, 0], sizes = [1, 128], strides = [1, 1]} : vector<8x128xf32> to vector<1x128xf32>
      %375 = vector.shape_cast %374 : vector<1x128xf32> to vector<128xf32>
      %376 = vector.shape_cast %375 : vector<128xf32> to vector<1x128xf32>
      %377 = vector.broadcast %376 : vector<1x128xf32> to vector<32x128xf32>
      %378 = arith.select %373, %377, %370 : vector<32x128xi1>, vector<32x128xf32>
      %cst_75 = arith.constant 4.900000e+01 : f32
      %379 = vector.broadcast %cst_75 : f32 to vector<32x128xf32>
      %380 = arith.cmpf oeq, %27, %379 : vector<32x128xf32>
      %381 = vector.extract_strided_slice %371 {offsets = [1, 0], sizes = [1, 128], strides = [1, 1]} : vector<8x128xf32> to vector<1x128xf32>
      %382 = vector.shape_cast %381 : vector<1x128xf32> to vector<128xf32>
      %383 = vector.shape_cast %382 : vector<128xf32> to vector<1x128xf32>
      %384 = vector.broadcast %383 : vector<1x128xf32> to vector<32x128xf32>
      %385 = arith.select %380, %384, %378 : vector<32x128xi1>, vector<32x128xf32>
      %cst_76 = arith.constant 5.000000e+01 : f32
      %386 = vector.broadcast %cst_76 : f32 to vector<32x128xf32>
      %387 = arith.cmpf oeq, %27, %386 : vector<32x128xf32>
      %388 = vector.extract_strided_slice %371 {offsets = [2, 0], sizes = [1, 128], strides = [1, 1]} : vector<8x128xf32> to vector<1x128xf32>
      %389 = vector.shape_cast %388 : vector<1x128xf32> to vector<128xf32>
      %390 = vector.shape_cast %389 : vector<128xf32> to vector<1x128xf32>
      %391 = vector.broadcast %390 : vector<1x128xf32> to vector<32x128xf32>
      %392 = arith.select %387, %391, %385 : vector<32x128xi1>, vector<32x128xf32>
      %cst_77 = arith.constant 5.100000e+01 : f32
      %393 = vector.broadcast %cst_77 : f32 to vector<32x128xf32>
      %394 = arith.cmpf oeq, %27, %393 : vector<32x128xf32>
      %395 = vector.extract_strided_slice %371 {offsets = [3, 0], sizes = [1, 128], strides = [1, 1]} : vector<8x128xf32> to vector<1x128xf32>
      %396 = vector.shape_cast %395 : vector<1x128xf32> to vector<128xf32>
      %397 = vector.shape_cast %396 : vector<128xf32> to vector<1x128xf32>
      %398 = vector.broadcast %397 : vector<1x128xf32> to vector<32x128xf32>
      %399 = arith.select %394, %398, %392 : vector<32x128xi1>, vector<32x128xf32>
      %cst_78 = arith.constant 5.200000e+01 : f32
      %400 = vector.broadcast %cst_78 : f32 to vector<32x128xf32>
      %401 = arith.cmpf oeq, %27, %400 : vector<32x128xf32>
      %402 = vector.extract_strided_slice %371 {offsets = [4, 0], sizes = [1, 128], strides = [1, 1]} : vector<8x128xf32> to vector<1x128xf32>
      %403 = vector.shape_cast %402 : vector<1x128xf32> to vector<128xf32>
      %404 = vector.shape_cast %403 : vector<128xf32> to vector<1x128xf32>
      %405 = vector.broadcast %404 : vector<1x128xf32> to vector<32x128xf32>
      %406 = arith.select %401, %405, %399 : vector<32x128xi1>, vector<32x128xf32>
      %cst_79 = arith.constant 5.300000e+01 : f32
      %407 = vector.broadcast %cst_79 : f32 to vector<32x128xf32>
      %408 = arith.cmpf oeq, %27, %407 : vector<32x128xf32>
      %409 = vector.extract_strided_slice %371 {offsets = [5, 0], sizes = [1, 128], strides = [1, 1]} : vector<8x128xf32> to vector<1x128xf32>
      %410 = vector.shape_cast %409 : vector<1x128xf32> to vector<128xf32>
      %411 = vector.shape_cast %410 : vector<128xf32> to vector<1x128xf32>
      %412 = vector.broadcast %411 : vector<1x128xf32> to vector<32x128xf32>
      %413 = arith.select %408, %412, %406 : vector<32x128xi1>, vector<32x128xf32>
      %cst_80 = arith.constant 5.400000e+01 : f32
      %414 = vector.broadcast %cst_80 : f32 to vector<32x128xf32>
      %415 = arith.cmpf oeq, %27, %414 : vector<32x128xf32>
      %416 = vector.extract_strided_slice %371 {offsets = [6, 0], sizes = [1, 128], strides = [1, 1]} : vector<8x128xf32> to vector<1x128xf32>
      %417 = vector.shape_cast %416 : vector<1x128xf32> to vector<128xf32>
      %418 = vector.shape_cast %417 : vector<128xf32> to vector<1x128xf32>
      %419 = vector.broadcast %418 : vector<1x128xf32> to vector<32x128xf32>
      %420 = arith.select %415, %419, %413 : vector<32x128xi1>, vector<32x128xf32>
      %cst_81 = arith.constant 5.500000e+01 : f32
      %421 = vector.broadcast %cst_81 : f32 to vector<32x128xf32>
      %422 = arith.cmpf oeq, %27, %421 : vector<32x128xf32>
      %423 = vector.extract_strided_slice %371 {offsets = [7, 0], sizes = [1, 128], strides = [1, 1]} : vector<8x128xf32> to vector<1x128xf32>
      %424 = vector.shape_cast %423 : vector<1x128xf32> to vector<128xf32>
      %425 = vector.shape_cast %424 : vector<128xf32> to vector<1x128xf32>
      %426 = vector.broadcast %425 : vector<1x128xf32> to vector<32x128xf32>
      %427 = arith.select %422, %426, %420 : vector<32x128xi1>, vector<32x128xf32>
      %c56 = arith.constant 56 : index
      %c0_82 = arith.constant 0 : index
      %428 = vector.load %arg4[%c56, %c0_82] : memref<104x128xf32, #tpu.memory_space<vmem>>, vector<8x128xf32>
      %cst_83 = arith.constant 5.600000e+01 : f32
      %429 = vector.broadcast %cst_83 : f32 to vector<32x128xf32>
      %430 = arith.cmpf oeq, %27, %429 : vector<32x128xf32>
      %431 = vector.extract_strided_slice %428 {offsets = [0, 0], sizes = [1, 128], strides = [1, 1]} : vector<8x128xf32> to vector<1x128xf32>
      %432 = vector.shape_cast %431 : vector<1x128xf32> to vector<128xf32>
      %433 = vector.shape_cast %432 : vector<128xf32> to vector<1x128xf32>
      %434 = vector.broadcast %433 : vector<1x128xf32> to vector<32x128xf32>
      %435 = arith.select %430, %434, %427 : vector<32x128xi1>, vector<32x128xf32>
      %cst_84 = arith.constant 5.700000e+01 : f32
      %436 = vector.broadcast %cst_84 : f32 to vector<32x128xf32>
      %437 = arith.cmpf oeq, %27, %436 : vector<32x128xf32>
      %438 = vector.extract_strided_slice %428 {offsets = [1, 0], sizes = [1, 128], strides = [1, 1]} : vector<8x128xf32> to vector<1x128xf32>
      %439 = vector.shape_cast %438 : vector<1x128xf32> to vector<128xf32>
      %440 = vector.shape_cast %439 : vector<128xf32> to vector<1x128xf32>
      %441 = vector.broadcast %440 : vector<1x128xf32> to vector<32x128xf32>
      %442 = arith.select %437, %441, %435 : vector<32x128xi1>, vector<32x128xf32>
      %cst_85 = arith.constant 5.800000e+01 : f32
      %443 = vector.broadcast %cst_85 : f32 to vector<32x128xf32>
      %444 = arith.cmpf oeq, %27, %443 : vector<32x128xf32>
      %445 = vector.extract_strided_slice %428 {offsets = [2, 0], sizes = [1, 128], strides = [1, 1]} : vector<8x128xf32> to vector<1x128xf32>
      %446 = vector.shape_cast %445 : vector<1x128xf32> to vector<128xf32>
      %447 = vector.shape_cast %446 : vector<128xf32> to vector<1x128xf32>
      %448 = vector.broadcast %447 : vector<1x128xf32> to vector<32x128xf32>
      %449 = arith.select %444, %448, %442 : vector<32x128xi1>, vector<32x128xf32>
      %cst_86 = arith.constant 5.900000e+01 : f32
      %450 = vector.broadcast %cst_86 : f32 to vector<32x128xf32>
      %451 = arith.cmpf oeq, %27, %450 : vector<32x128xf32>
      %452 = vector.extract_strided_slice %428 {offsets = [3, 0], sizes = [1, 128], strides = [1, 1]} : vector<8x128xf32> to vector<1x128xf32>
      %453 = vector.shape_cast %452 : vector<1x128xf32> to vector<128xf32>
      %454 = vector.shape_cast %453 : vector<128xf32> to vector<1x128xf32>
      %455 = vector.broadcast %454 : vector<1x128xf32> to vector<32x128xf32>
      %456 = arith.select %451, %455, %449 : vector<32x128xi1>, vector<32x128xf32>
      %cst_87 = arith.constant 6.000000e+01 : f32
      %457 = vector.broadcast %cst_87 : f32 to vector<32x128xf32>
      %458 = arith.cmpf oeq, %27, %457 : vector<32x128xf32>
      %459 = vector.extract_strided_slice %428 {offsets = [4, 0], sizes = [1, 128], strides = [1, 1]} : vector<8x128xf32> to vector<1x128xf32>
      %460 = vector.shape_cast %459 : vector<1x128xf32> to vector<128xf32>
      %461 = vector.shape_cast %460 : vector<128xf32> to vector<1x128xf32>
      %462 = vector.broadcast %461 : vector<1x128xf32> to vector<32x128xf32>
      %463 = arith.select %458, %462, %456 : vector<32x128xi1>, vector<32x128xf32>
      %cst_88 = arith.constant 6.100000e+01 : f32
      %464 = vector.broadcast %cst_88 : f32 to vector<32x128xf32>
      %465 = arith.cmpf oeq, %27, %464 : vector<32x128xf32>
      %466 = vector.extract_strided_slice %428 {offsets = [5, 0], sizes = [1, 128], strides = [1, 1]} : vector<8x128xf32> to vector<1x128xf32>
      %467 = vector.shape_cast %466 : vector<1x128xf32> to vector<128xf32>
      %468 = vector.shape_cast %467 : vector<128xf32> to vector<1x128xf32>
      %469 = vector.broadcast %468 : vector<1x128xf32> to vector<32x128xf32>
      %470 = arith.select %465, %469, %463 : vector<32x128xi1>, vector<32x128xf32>
      %cst_89 = arith.constant 6.200000e+01 : f32
      %471 = vector.broadcast %cst_89 : f32 to vector<32x128xf32>
      %472 = arith.cmpf oeq, %27, %471 : vector<32x128xf32>
      %473 = vector.extract_strided_slice %428 {offsets = [6, 0], sizes = [1, 128], strides = [1, 1]} : vector<8x128xf32> to vector<1x128xf32>
      %474 = vector.shape_cast %473 : vector<1x128xf32> to vector<128xf32>
      %475 = vector.shape_cast %474 : vector<128xf32> to vector<1x128xf32>
      %476 = vector.broadcast %475 : vector<1x128xf32> to vector<32x128xf32>
      %477 = arith.select %472, %476, %470 : vector<32x128xi1>, vector<32x128xf32>
      %cst_90 = arith.constant 6.300000e+01 : f32
      %478 = vector.broadcast %cst_90 : f32 to vector<32x128xf32>
      %479 = arith.cmpf oeq, %27, %478 : vector<32x128xf32>
      %480 = vector.extract_strided_slice %428 {offsets = [7, 0], sizes = [1, 128], strides = [1, 1]} : vector<8x128xf32> to vector<1x128xf32>
      %481 = vector.shape_cast %480 : vector<1x128xf32> to vector<128xf32>
      %482 = vector.shape_cast %481 : vector<128xf32> to vector<1x128xf32>
      %483 = vector.broadcast %482 : vector<1x128xf32> to vector<32x128xf32>
      %484 = arith.select %479, %483, %477 : vector<32x128xi1>, vector<32x128xf32>
      %c64 = arith.constant 64 : index
      %c0_91 = arith.constant 0 : index
      %485 = vector.load %arg4[%c64, %c0_91] : memref<104x128xf32, #tpu.memory_space<vmem>>, vector<8x128xf32>
      %cst_92 = arith.constant 6.400000e+01 : f32
      %486 = vector.broadcast %cst_92 : f32 to vector<32x128xf32>
      %487 = arith.cmpf oeq, %27, %486 : vector<32x128xf32>
      %488 = vector.extract_strided_slice %485 {offsets = [0, 0], sizes = [1, 128], strides = [1, 1]} : vector<8x128xf32> to vector<1x128xf32>
      %489 = vector.shape_cast %488 : vector<1x128xf32> to vector<128xf32>
      %490 = vector.shape_cast %489 : vector<128xf32> to vector<1x128xf32>
      %491 = vector.broadcast %490 : vector<1x128xf32> to vector<32x128xf32>
      %492 = arith.select %487, %491, %484 : vector<32x128xi1>, vector<32x128xf32>
      %cst_93 = arith.constant 6.500000e+01 : f32
      %493 = vector.broadcast %cst_93 : f32 to vector<32x128xf32>
      %494 = arith.cmpf oeq, %27, %493 : vector<32x128xf32>
      %495 = vector.extract_strided_slice %485 {offsets = [1, 0], sizes = [1, 128], strides = [1, 1]} : vector<8x128xf32> to vector<1x128xf32>
      %496 = vector.shape_cast %495 : vector<1x128xf32> to vector<128xf32>
      %497 = vector.shape_cast %496 : vector<128xf32> to vector<1x128xf32>
      %498 = vector.broadcast %497 : vector<1x128xf32> to vector<32x128xf32>
      %499 = arith.select %494, %498, %492 : vector<32x128xi1>, vector<32x128xf32>
      %cst_94 = arith.constant 6.600000e+01 : f32
      %500 = vector.broadcast %cst_94 : f32 to vector<32x128xf32>
      %501 = arith.cmpf oeq, %27, %500 : vector<32x128xf32>
      %502 = vector.extract_strided_slice %485 {offsets = [2, 0], sizes = [1, 128], strides = [1, 1]} : vector<8x128xf32> to vector<1x128xf32>
      %503 = vector.shape_cast %502 : vector<1x128xf32> to vector<128xf32>
      %504 = vector.shape_cast %503 : vector<128xf32> to vector<1x128xf32>
      %505 = vector.broadcast %504 : vector<1x128xf32> to vector<32x128xf32>
      %506 = arith.select %501, %505, %499 : vector<32x128xi1>, vector<32x128xf32>
      %cst_95 = arith.constant 6.700000e+01 : f32
      %507 = vector.broadcast %cst_95 : f32 to vector<32x128xf32>
      %508 = arith.cmpf oeq, %27, %507 : vector<32x128xf32>
      %509 = vector.extract_strided_slice %485 {offsets = [3, 0], sizes = [1, 128], strides = [1, 1]} : vector<8x128xf32> to vector<1x128xf32>
      %510 = vector.shape_cast %509 : vector<1x128xf32> to vector<128xf32>
      %511 = vector.shape_cast %510 : vector<128xf32> to vector<1x128xf32>
      %512 = vector.broadcast %511 : vector<1x128xf32> to vector<32x128xf32>
      %513 = arith.select %508, %512, %506 : vector<32x128xi1>, vector<32x128xf32>
      %cst_96 = arith.constant 6.800000e+01 : f32
      %514 = vector.broadcast %cst_96 : f32 to vector<32x128xf32>
      %515 = arith.cmpf oeq, %27, %514 : vector<32x128xf32>
      %516 = vector.extract_strided_slice %485 {offsets = [4, 0], sizes = [1, 128], strides = [1, 1]} : vector<8x128xf32> to vector<1x128xf32>
      %517 = vector.shape_cast %516 : vector<1x128xf32> to vector<128xf32>
      %518 = vector.shape_cast %517 : vector<128xf32> to vector<1x128xf32>
      %519 = vector.broadcast %518 : vector<1x128xf32> to vector<32x128xf32>
      %520 = arith.select %515, %519, %513 : vector<32x128xi1>, vector<32x128xf32>
      %cst_97 = arith.constant 6.900000e+01 : f32
      %521 = vector.broadcast %cst_97 : f32 to vector<32x128xf32>
      %522 = arith.cmpf oeq, %27, %521 : vector<32x128xf32>
      %523 = vector.extract_strided_slice %485 {offsets = [5, 0], sizes = [1, 128], strides = [1, 1]} : vector<8x128xf32> to vector<1x128xf32>
      %524 = vector.shape_cast %523 : vector<1x128xf32> to vector<128xf32>
      %525 = vector.shape_cast %524 : vector<128xf32> to vector<1x128xf32>
      %526 = vector.broadcast %525 : vector<1x128xf32> to vector<32x128xf32>
      %527 = arith.select %522, %526, %520 : vector<32x128xi1>, vector<32x128xf32>
      %cst_98 = arith.constant 7.000000e+01 : f32
      %528 = vector.broadcast %cst_98 : f32 to vector<32x128xf32>
      %529 = arith.cmpf oeq, %27, %528 : vector<32x128xf32>
      %530 = vector.extract_strided_slice %485 {offsets = [6, 0], sizes = [1, 128], strides = [1, 1]} : vector<8x128xf32> to vector<1x128xf32>
      %531 = vector.shape_cast %530 : vector<1x128xf32> to vector<128xf32>
      %532 = vector.shape_cast %531 : vector<128xf32> to vector<1x128xf32>
      %533 = vector.broadcast %532 : vector<1x128xf32> to vector<32x128xf32>
      %534 = arith.select %529, %533, %527 : vector<32x128xi1>, vector<32x128xf32>
      %cst_99 = arith.constant 7.100000e+01 : f32
      %535 = vector.broadcast %cst_99 : f32 to vector<32x128xf32>
      %536 = arith.cmpf oeq, %27, %535 : vector<32x128xf32>
      %537 = vector.extract_strided_slice %485 {offsets = [7, 0], sizes = [1, 128], strides = [1, 1]} : vector<8x128xf32> to vector<1x128xf32>
      %538 = vector.shape_cast %537 : vector<1x128xf32> to vector<128xf32>
      %539 = vector.shape_cast %538 : vector<128xf32> to vector<1x128xf32>
      %540 = vector.broadcast %539 : vector<1x128xf32> to vector<32x128xf32>
      %541 = arith.select %536, %540, %534 : vector<32x128xi1>, vector<32x128xf32>
      %c72 = arith.constant 72 : index
      %c0_100 = arith.constant 0 : index
      %542 = vector.load %arg4[%c72, %c0_100] : memref<104x128xf32, #tpu.memory_space<vmem>>, vector<8x128xf32>
      %cst_101 = arith.constant 7.200000e+01 : f32
      %543 = vector.broadcast %cst_101 : f32 to vector<32x128xf32>
      %544 = arith.cmpf oeq, %27, %543 : vector<32x128xf32>
      %545 = vector.extract_strided_slice %542 {offsets = [0, 0], sizes = [1, 128], strides = [1, 1]} : vector<8x128xf32> to vector<1x128xf32>
      %546 = vector.shape_cast %545 : vector<1x128xf32> to vector<128xf32>
      %547 = vector.shape_cast %546 : vector<128xf32> to vector<1x128xf32>
      %548 = vector.broadcast %547 : vector<1x128xf32> to vector<32x128xf32>
      %549 = arith.select %544, %548, %541 : vector<32x128xi1>, vector<32x128xf32>
      %cst_102 = arith.constant 7.300000e+01 : f32
      %550 = vector.broadcast %cst_102 : f32 to vector<32x128xf32>
      %551 = arith.cmpf oeq, %27, %550 : vector<32x128xf32>
      %552 = vector.extract_strided_slice %542 {offsets = [1, 0], sizes = [1, 128], strides = [1, 1]} : vector<8x128xf32> to vector<1x128xf32>
      %553 = vector.shape_cast %552 : vector<1x128xf32> to vector<128xf32>
      %554 = vector.shape_cast %553 : vector<128xf32> to vector<1x128xf32>
      %555 = vector.broadcast %554 : vector<1x128xf32> to vector<32x128xf32>
      %556 = arith.select %551, %555, %549 : vector<32x128xi1>, vector<32x128xf32>
      %cst_103 = arith.constant 7.400000e+01 : f32
      %557 = vector.broadcast %cst_103 : f32 to vector<32x128xf32>
      %558 = arith.cmpf oeq, %27, %557 : vector<32x128xf32>
      %559 = vector.extract_strided_slice %542 {offsets = [2, 0], sizes = [1, 128], strides = [1, 1]} : vector<8x128xf32> to vector<1x128xf32>
      %560 = vector.shape_cast %559 : vector<1x128xf32> to vector<128xf32>
      %561 = vector.shape_cast %560 : vector<128xf32> to vector<1x128xf32>
      %562 = vector.broadcast %561 : vector<1x128xf32> to vector<32x128xf32>
      %563 = arith.select %558, %562, %556 : vector<32x128xi1>, vector<32x128xf32>
      %cst_104 = arith.constant 7.500000e+01 : f32
      %564 = vector.broadcast %cst_104 : f32 to vector<32x128xf32>
      %565 = arith.cmpf oeq, %27, %564 : vector<32x128xf32>
      %566 = vector.extract_strided_slice %542 {offsets = [3, 0], sizes = [1, 128], strides = [1, 1]} : vector<8x128xf32> to vector<1x128xf32>
      %567 = vector.shape_cast %566 : vector<1x128xf32> to vector<128xf32>
      %568 = vector.shape_cast %567 : vector<128xf32> to vector<1x128xf32>
      %569 = vector.broadcast %568 : vector<1x128xf32> to vector<32x128xf32>
      %570 = arith.select %565, %569, %563 : vector<32x128xi1>, vector<32x128xf32>
      %cst_105 = arith.constant 7.600000e+01 : f32
      %571 = vector.broadcast %cst_105 : f32 to vector<32x128xf32>
      %572 = arith.cmpf oeq, %27, %571 : vector<32x128xf32>
      %573 = vector.extract_strided_slice %542 {offsets = [4, 0], sizes = [1, 128], strides = [1, 1]} : vector<8x128xf32> to vector<1x128xf32>
      %574 = vector.shape_cast %573 : vector<1x128xf32> to vector<128xf32>
      %575 = vector.shape_cast %574 : vector<128xf32> to vector<1x128xf32>
      %576 = vector.broadcast %575 : vector<1x128xf32> to vector<32x128xf32>
      %577 = arith.select %572, %576, %570 : vector<32x128xi1>, vector<32x128xf32>
      %cst_106 = arith.constant 7.700000e+01 : f32
      %578 = vector.broadcast %cst_106 : f32 to vector<32x128xf32>
      %579 = arith.cmpf oeq, %27, %578 : vector<32x128xf32>
      %580 = vector.extract_strided_slice %542 {offsets = [5, 0], sizes = [1, 128], strides = [1, 1]} : vector<8x128xf32> to vector<1x128xf32>
      %581 = vector.shape_cast %580 : vector<1x128xf32> to vector<128xf32>
      %582 = vector.shape_cast %581 : vector<128xf32> to vector<1x128xf32>
      %583 = vector.broadcast %582 : vector<1x128xf32> to vector<32x128xf32>
      %584 = arith.select %579, %583, %577 : vector<32x128xi1>, vector<32x128xf32>
      %cst_107 = arith.constant 7.800000e+01 : f32
      %585 = vector.broadcast %cst_107 : f32 to vector<32x128xf32>
      %586 = arith.cmpf oeq, %27, %585 : vector<32x128xf32>
      %587 = vector.extract_strided_slice %542 {offsets = [6, 0], sizes = [1, 128], strides = [1, 1]} : vector<8x128xf32> to vector<1x128xf32>
      %588 = vector.shape_cast %587 : vector<1x128xf32> to vector<128xf32>
      %589 = vector.shape_cast %588 : vector<128xf32> to vector<1x128xf32>
      %590 = vector.broadcast %589 : vector<1x128xf32> to vector<32x128xf32>
      %591 = arith.select %586, %590, %584 : vector<32x128xi1>, vector<32x128xf32>
      %cst_108 = arith.constant 7.900000e+01 : f32
      %592 = vector.broadcast %cst_108 : f32 to vector<32x128xf32>
      %593 = arith.cmpf oeq, %27, %592 : vector<32x128xf32>
      %594 = vector.extract_strided_slice %542 {offsets = [7, 0], sizes = [1, 128], strides = [1, 1]} : vector<8x128xf32> to vector<1x128xf32>
      %595 = vector.shape_cast %594 : vector<1x128xf32> to vector<128xf32>
      %596 = vector.shape_cast %595 : vector<128xf32> to vector<1x128xf32>
      %597 = vector.broadcast %596 : vector<1x128xf32> to vector<32x128xf32>
      %598 = arith.select %593, %597, %591 : vector<32x128xi1>, vector<32x128xf32>
      %c80 = arith.constant 80 : index
      %c0_109 = arith.constant 0 : index
      %599 = vector.load %arg4[%c80, %c0_109] : memref<104x128xf32, #tpu.memory_space<vmem>>, vector<8x128xf32>
      %cst_110 = arith.constant 8.000000e+01 : f32
      %600 = vector.broadcast %cst_110 : f32 to vector<32x128xf32>
      %601 = arith.cmpf oeq, %27, %600 : vector<32x128xf32>
      %602 = vector.extract_strided_slice %599 {offsets = [0, 0], sizes = [1, 128], strides = [1, 1]} : vector<8x128xf32> to vector<1x128xf32>
      %603 = vector.shape_cast %602 : vector<1x128xf32> to vector<128xf32>
      %604 = vector.shape_cast %603 : vector<128xf32> to vector<1x128xf32>
      %605 = vector.broadcast %604 : vector<1x128xf32> to vector<32x128xf32>
      %606 = arith.select %601, %605, %598 : vector<32x128xi1>, vector<32x128xf32>
      %cst_111 = arith.constant 8.100000e+01 : f32
      %607 = vector.broadcast %cst_111 : f32 to vector<32x128xf32>
      %608 = arith.cmpf oeq, %27, %607 : vector<32x128xf32>
      %609 = vector.extract_strided_slice %599 {offsets = [1, 0], sizes = [1, 128], strides = [1, 1]} : vector<8x128xf32> to vector<1x128xf32>
      %610 = vector.shape_cast %609 : vector<1x128xf32> to vector<128xf32>
      %611 = vector.shape_cast %610 : vector<128xf32> to vector<1x128xf32>
      %612 = vector.broadcast %611 : vector<1x128xf32> to vector<32x128xf32>
      %613 = arith.select %608, %612, %606 : vector<32x128xi1>, vector<32x128xf32>
      %cst_112 = arith.constant 8.200000e+01 : f32
      %614 = vector.broadcast %cst_112 : f32 to vector<32x128xf32>
      %615 = arith.cmpf oeq, %27, %614 : vector<32x128xf32>
      %616 = vector.extract_strided_slice %599 {offsets = [2, 0], sizes = [1, 128], strides = [1, 1]} : vector<8x128xf32> to vector<1x128xf32>
      %617 = vector.shape_cast %616 : vector<1x128xf32> to vector<128xf32>
      %618 = vector.shape_cast %617 : vector<128xf32> to vector<1x128xf32>
      %619 = vector.broadcast %618 : vector<1x128xf32> to vector<32x128xf32>
      %620 = arith.select %615, %619, %613 : vector<32x128xi1>, vector<32x128xf32>
      %cst_113 = arith.constant 8.300000e+01 : f32
      %621 = vector.broadcast %cst_113 : f32 to vector<32x128xf32>
      %622 = arith.cmpf oeq, %27, %621 : vector<32x128xf32>
      %623 = vector.extract_strided_slice %599 {offsets = [3, 0], sizes = [1, 128], strides = [1, 1]} : vector<8x128xf32> to vector<1x128xf32>
      %624 = vector.shape_cast %623 : vector<1x128xf32> to vector<128xf32>
      %625 = vector.shape_cast %624 : vector<128xf32> to vector<1x128xf32>
      %626 = vector.broadcast %625 : vector<1x128xf32> to vector<32x128xf32>
      %627 = arith.select %622, %626, %620 : vector<32x128xi1>, vector<32x128xf32>
      %cst_114 = arith.constant 8.400000e+01 : f32
      %628 = vector.broadcast %cst_114 : f32 to vector<32x128xf32>
      %629 = arith.cmpf oeq, %27, %628 : vector<32x128xf32>
      %630 = vector.extract_strided_slice %599 {offsets = [4, 0], sizes = [1, 128], strides = [1, 1]} : vector<8x128xf32> to vector<1x128xf32>
      %631 = vector.shape_cast %630 : vector<1x128xf32> to vector<128xf32>
      %632 = vector.shape_cast %631 : vector<128xf32> to vector<1x128xf32>
      %633 = vector.broadcast %632 : vector<1x128xf32> to vector<32x128xf32>
      %634 = arith.select %629, %633, %627 : vector<32x128xi1>, vector<32x128xf32>
      %cst_115 = arith.constant 8.500000e+01 : f32
      %635 = vector.broadcast %cst_115 : f32 to vector<32x128xf32>
      %636 = arith.cmpf oeq, %27, %635 : vector<32x128xf32>
      %637 = vector.extract_strided_slice %599 {offsets = [5, 0], sizes = [1, 128], strides = [1, 1]} : vector<8x128xf32> to vector<1x128xf32>
      %638 = vector.shape_cast %637 : vector<1x128xf32> to vector<128xf32>
      %639 = vector.shape_cast %638 : vector<128xf32> to vector<1x128xf32>
      %640 = vector.broadcast %639 : vector<1x128xf32> to vector<32x128xf32>
      %641 = arith.select %636, %640, %634 : vector<32x128xi1>, vector<32x128xf32>
      %cst_116 = arith.constant 8.600000e+01 : f32
      %642 = vector.broadcast %cst_116 : f32 to vector<32x128xf32>
      %643 = arith.cmpf oeq, %27, %642 : vector<32x128xf32>
      %644 = vector.extract_strided_slice %599 {offsets = [6, 0], sizes = [1, 128], strides = [1, 1]} : vector<8x128xf32> to vector<1x128xf32>
      %645 = vector.shape_cast %644 : vector<1x128xf32> to vector<128xf32>
      %646 = vector.shape_cast %645 : vector<128xf32> to vector<1x128xf32>
      %647 = vector.broadcast %646 : vector<1x128xf32> to vector<32x128xf32>
      %648 = arith.select %643, %647, %641 : vector<32x128xi1>, vector<32x128xf32>
      %cst_117 = arith.constant 8.700000e+01 : f32
      %649 = vector.broadcast %cst_117 : f32 to vector<32x128xf32>
      %650 = arith.cmpf oeq, %27, %649 : vector<32x128xf32>
      %651 = vector.extract_strided_slice %599 {offsets = [7, 0], sizes = [1, 128], strides = [1, 1]} : vector<8x128xf32> to vector<1x128xf32>
      %652 = vector.shape_cast %651 : vector<1x128xf32> to vector<128xf32>
      %653 = vector.shape_cast %652 : vector<128xf32> to vector<1x128xf32>
      %654 = vector.broadcast %653 : vector<1x128xf32> to vector<32x128xf32>
      %655 = arith.select %650, %654, %648 : vector<32x128xi1>, vector<32x128xf32>
      %c88 = arith.constant 88 : index
      %c0_118 = arith.constant 0 : index
      %656 = vector.load %arg4[%c88, %c0_118] : memref<104x128xf32, #tpu.memory_space<vmem>>, vector<8x128xf32>
      %cst_119 = arith.constant 8.800000e+01 : f32
      %657 = vector.broadcast %cst_119 : f32 to vector<32x128xf32>
      %658 = arith.cmpf oeq, %27, %657 : vector<32x128xf32>
      %659 = vector.extract_strided_slice %656 {offsets = [0, 0], sizes = [1, 128], strides = [1, 1]} : vector<8x128xf32> to vector<1x128xf32>
      %660 = vector.shape_cast %659 : vector<1x128xf32> to vector<128xf32>
      %661 = vector.shape_cast %660 : vector<128xf32> to vector<1x128xf32>
      %662 = vector.broadcast %661 : vector<1x128xf32> to vector<32x128xf32>
      %663 = arith.select %658, %662, %655 : vector<32x128xi1>, vector<32x128xf32>
      %cst_120 = arith.constant 8.900000e+01 : f32
      %664 = vector.broadcast %cst_120 : f32 to vector<32x128xf32>
      %665 = arith.cmpf oeq, %27, %664 : vector<32x128xf32>
      %666 = vector.extract_strided_slice %656 {offsets = [1, 0], sizes = [1, 128], strides = [1, 1]} : vector<8x128xf32> to vector<1x128xf32>
      %667 = vector.shape_cast %666 : vector<1x128xf32> to vector<128xf32>
      %668 = vector.shape_cast %667 : vector<128xf32> to vector<1x128xf32>
      %669 = vector.broadcast %668 : vector<1x128xf32> to vector<32x128xf32>
      %670 = arith.select %665, %669, %663 : vector<32x128xi1>, vector<32x128xf32>
      %cst_121 = arith.constant 9.000000e+01 : f32
      %671 = vector.broadcast %cst_121 : f32 to vector<32x128xf32>
      %672 = arith.cmpf oeq, %27, %671 : vector<32x128xf32>
      %673 = vector.extract_strided_slice %656 {offsets = [2, 0], sizes = [1, 128], strides = [1, 1]} : vector<8x128xf32> to vector<1x128xf32>
      %674 = vector.shape_cast %673 : vector<1x128xf32> to vector<128xf32>
      %675 = vector.shape_cast %674 : vector<128xf32> to vector<1x128xf32>
      %676 = vector.broadcast %675 : vector<1x128xf32> to vector<32x128xf32>
      %677 = arith.select %672, %676, %670 : vector<32x128xi1>, vector<32x128xf32>
      %cst_122 = arith.constant 9.100000e+01 : f32
      %678 = vector.broadcast %cst_122 : f32 to vector<32x128xf32>
      %679 = arith.cmpf oeq, %27, %678 : vector<32x128xf32>
      %680 = vector.extract_strided_slice %656 {offsets = [3, 0], sizes = [1, 128], strides = [1, 1]} : vector<8x128xf32> to vector<1x128xf32>
      %681 = vector.shape_cast %680 : vector<1x128xf32> to vector<128xf32>
      %682 = vector.shape_cast %681 : vector<128xf32> to vector<1x128xf32>
      %683 = vector.broadcast %682 : vector<1x128xf32> to vector<32x128xf32>
      %684 = arith.select %679, %683, %677 : vector<32x128xi1>, vector<32x128xf32>
      %cst_123 = arith.constant 9.200000e+01 : f32
      %685 = vector.broadcast %cst_123 : f32 to vector<32x128xf32>
      %686 = arith.cmpf oeq, %27, %685 : vector<32x128xf32>
      %687 = vector.extract_strided_slice %656 {offsets = [4, 0], sizes = [1, 128], strides = [1, 1]} : vector<8x128xf32> to vector<1x128xf32>
      %688 = vector.shape_cast %687 : vector<1x128xf32> to vector<128xf32>
      %689 = vector.shape_cast %688 : vector<128xf32> to vector<1x128xf32>
      %690 = vector.broadcast %689 : vector<1x128xf32> to vector<32x128xf32>
      %691 = arith.select %686, %690, %684 : vector<32x128xi1>, vector<32x128xf32>
      %cst_124 = arith.constant 9.300000e+01 : f32
      %692 = vector.broadcast %cst_124 : f32 to vector<32x128xf32>
      %693 = arith.cmpf oeq, %27, %692 : vector<32x128xf32>
      %694 = vector.extract_strided_slice %656 {offsets = [5, 0], sizes = [1, 128], strides = [1, 1]} : vector<8x128xf32> to vector<1x128xf32>
      %695 = vector.shape_cast %694 : vector<1x128xf32> to vector<128xf32>
      %696 = vector.shape_cast %695 : vector<128xf32> to vector<1x128xf32>
      %697 = vector.broadcast %696 : vector<1x128xf32> to vector<32x128xf32>
      %698 = arith.select %693, %697, %691 : vector<32x128xi1>, vector<32x128xf32>
      %cst_125 = arith.constant 9.400000e+01 : f32
      %699 = vector.broadcast %cst_125 : f32 to vector<32x128xf32>
      %700 = arith.cmpf oeq, %27, %699 : vector<32x128xf32>
      %701 = vector.extract_strided_slice %656 {offsets = [6, 0], sizes = [1, 128], strides = [1, 1]} : vector<8x128xf32> to vector<1x128xf32>
      %702 = vector.shape_cast %701 : vector<1x128xf32> to vector<128xf32>
      %703 = vector.shape_cast %702 : vector<128xf32> to vector<1x128xf32>
      %704 = vector.broadcast %703 : vector<1x128xf32> to vector<32x128xf32>
      %705 = arith.select %700, %704, %698 : vector<32x128xi1>, vector<32x128xf32>
      %cst_126 = arith.constant 9.500000e+01 : f32
      %706 = vector.broadcast %cst_126 : f32 to vector<32x128xf32>
      %707 = arith.cmpf oeq, %27, %706 : vector<32x128xf32>
      %708 = vector.extract_strided_slice %656 {offsets = [7, 0], sizes = [1, 128], strides = [1, 1]} : vector<8x128xf32> to vector<1x128xf32>
      %709 = vector.shape_cast %708 : vector<1x128xf32> to vector<128xf32>
      %710 = vector.shape_cast %709 : vector<128xf32> to vector<1x128xf32>
      %711 = vector.broadcast %710 : vector<1x128xf32> to vector<32x128xf32>
      %712 = arith.select %707, %711, %705 : vector<32x128xi1>, vector<32x128xf32>
      %c96 = arith.constant 96 : index
      %c0_127 = arith.constant 0 : index
      %713 = vector.load %arg4[%c96, %c0_127] : memref<104x128xf32, #tpu.memory_space<vmem>>, vector<8x128xf32>
      %cst_128 = arith.constant 9.600000e+01 : f32
      %714 = vector.broadcast %cst_128 : f32 to vector<32x128xf32>
      %715 = arith.cmpf oeq, %27, %714 : vector<32x128xf32>
      %716 = vector.extract_strided_slice %713 {offsets = [0, 0], sizes = [1, 128], strides = [1, 1]} : vector<8x128xf32> to vector<1x128xf32>
      %717 = vector.shape_cast %716 : vector<1x128xf32> to vector<128xf32>
      %718 = vector.shape_cast %717 : vector<128xf32> to vector<1x128xf32>
      %719 = vector.broadcast %718 : vector<1x128xf32> to vector<32x128xf32>
      %720 = arith.select %715, %719, %712 : vector<32x128xi1>, vector<32x128xf32>
      %cst_129 = arith.constant 9.700000e+01 : f32
      %721 = vector.broadcast %cst_129 : f32 to vector<32x128xf32>
      %722 = arith.cmpf oeq, %27, %721 : vector<32x128xf32>
      %723 = vector.extract_strided_slice %713 {offsets = [1, 0], sizes = [1, 128], strides = [1, 1]} : vector<8x128xf32> to vector<1x128xf32>
      %724 = vector.shape_cast %723 : vector<1x128xf32> to vector<128xf32>
      %725 = vector.shape_cast %724 : vector<128xf32> to vector<1x128xf32>
      %726 = vector.broadcast %725 : vector<1x128xf32> to vector<32x128xf32>
      %727 = arith.select %722, %726, %720 : vector<32x128xi1>, vector<32x128xf32>
      %cst_130 = arith.constant 9.800000e+01 : f32
      %728 = vector.broadcast %cst_130 : f32 to vector<32x128xf32>
      %729 = arith.cmpf oeq, %27, %728 : vector<32x128xf32>
      %730 = vector.extract_strided_slice %713 {offsets = [2, 0], sizes = [1, 128], strides = [1, 1]} : vector<8x128xf32> to vector<1x128xf32>
      %731 = vector.shape_cast %730 : vector<1x128xf32> to vector<128xf32>
      %732 = vector.shape_cast %731 : vector<128xf32> to vector<1x128xf32>
      %733 = vector.broadcast %732 : vector<1x128xf32> to vector<32x128xf32>
      %734 = arith.select %729, %733, %727 : vector<32x128xi1>, vector<32x128xf32>
      %cst_131 = arith.constant 9.900000e+01 : f32
      %735 = vector.broadcast %cst_131 : f32 to vector<32x128xf32>
      %736 = arith.cmpf oeq, %27, %735 : vector<32x128xf32>
      %737 = vector.extract_strided_slice %713 {offsets = [3, 0], sizes = [1, 128], strides = [1, 1]} : vector<8x128xf32> to vector<1x128xf32>
      %738 = vector.shape_cast %737 : vector<1x128xf32> to vector<128xf32>
      %739 = vector.shape_cast %738 : vector<128xf32> to vector<1x128xf32>
      %740 = vector.broadcast %739 : vector<1x128xf32> to vector<32x128xf32>
      %741 = arith.select %736, %740, %734 : vector<32x128xi1>, vector<32x128xf32>
      %cst_132 = arith.constant 0.000000e+00 : f32
      %742 = vector.broadcast %cst_132 : f32 to vector<32x128xf32>
      %743 = arith.subf %742, %16 : vector<32x128xf32>
      %744 = math.exp %743 : vector<32x128xf32>
      %cst_133 = arith.constant 1.000000e+00 : f32
      %745 = vector.broadcast %cst_133 : f32 to vector<32x128xf32>
      %746 = arith.addf %745, %744 : vector<32x128xf32>
      %747 = arith.divf %16, %746 : vector<32x128xf32>
      %748 = arith.addf %747, %741 : vector<32x128xf32>
      %749 = vector.broadcast %9 : vector<1x128xf32> to vector<32x128xf32>
      %750 = arith.mulf %749, %748 : vector<32x128xf32>
      %751 = arith.index_cast %14 : i32 to index
      %c0_134 = arith.constant 0 : index
      %752 = vector.load %arg6[%751, %c0_134] : memref<64x128xf32, #tpu.memory_space<vmem>>, vector<32x128xf32>
      tpu.vector_store %arg6[%751, %c0_134], %750 {strides = array<i32>} : memref<64x128xf32, #tpu.memory_space<vmem>>, vector<32x128xf32>,
      %753 = arith.addi %10, %14 : i32
      %754 = tpu.iota {dimensions = array<i32: 0>} : vector<32x1xi32>
      %755 = vector.broadcast %753 : i32 to vector<32x1xi32>
      %756 = arith.addi %755, %754 : vector<32x1xi32>
      %c100_i32 = arith.constant 100 : i32
      %757 = vector.broadcast %c100_i32 : i32 to vector<32x1xi32>
      %758 = arith.cmpi slt, %756, %757 : vector<32x1xi32>
      %cst_135 = arith.constant 0.000000e+00 : f32
      %759 = vector.shape_cast %758 : vector<32x1xi1> to vector<32x1xi1>
      %760 = vector.broadcast %759 : vector<32x1xi1> to vector<32x128xi1>
      %761 = vector.broadcast %cst_135 : f32 to vector<32x128xf32>
      %762 = arith.select %760, %750, %761 : vector<32x128xi1>, vector<32x128xf32>
      %cst_136 = arith.constant dense<0.000000e+00> : vector<128xf32>
      %763 = vector.multi_reduction <add>, %762, %cst_136 [0] : vector<32x128xf32> to vector<128xf32>
      %764 = vector.shape_cast %763 : vector<128xf32> to vector<1x128xf32>
      %765 = arith.mulf %762, %762 : vector<32x128xf32>
      %cst_137 = arith.constant dense<0.000000e+00> : vector<128xf32>
      %766 = vector.multi_reduction <add>, %765, %cst_137 [0] : vector<32x128xf32> to vector<128xf32>
      %767 = vector.shape_cast %766 : vector<128xf32> to vector<1x128xf32>
      %c0_138 = arith.constant 0 : index
      %c0_139 = arith.constant 0 : index
      %768 = vector.load %arg7[%c0_138, %c0_139] : memref<8x128xf32, #tpu.memory_space<vmem>>, vector<8x128xf32>
      %c0_i32_140 = arith.constant 0 : i32
      %769 = vector.broadcast %c0_i32_140 : i32 to vector<8x128xi32>
      %770 = arith.cmpi eq, %11, %769 : vector<8x128xi32>
      %c1_i32_141 = arith.constant 1 : i32
      %771 = vector.broadcast %c1_i32_141 : i32 to vector<8x128xi32>
      %772 = arith.cmpi eq, %11, %771 : vector<8x128xi32>
      %cst_142 = arith.constant 0.000000e+00 : f32
      %773 = vector.shape_cast %767 : vector<1x128xf32> to vector<1x128xf32>
      %774 = vector.broadcast %773 : vector<1x128xf32> to vector<8x128xf32>
      %775 = vector.broadcast %cst_142 : f32 to vector<8x128xf32>
      %776 = arith.select %772, %774, %775 : vector<8x128xi1>, vector<8x128xf32>
      %777 = vector.shape_cast %764 : vector<1x128xf32> to vector<1x128xf32>
      %778 = vector.broadcast %777 : vector<1x128xf32> to vector<8x128xf32>
      %779 = arith.select %770, %778, %776 : vector<8x128xi1>, vector<8x128xf32>
      %780 = arith.addf %768, %779 : vector<8x128xf32>
      %c0_143 = arith.constant 0 : index
      %c0_144 = arith.constant 0 : index
      %781 = vector.load %arg7[%c0_143, %c0_144] : memref<8x128xf32, #tpu.memory_space<vmem>>, vector<8x128xf32>
      tpu.vector_store %arg7[%c0_143, %c0_144], %780 {strides = array<i32>} : memref<8x128xf32, #tpu.memory_space<vmem>>, vector<8x128xf32>,
    }
    %c2_i32_13 = arith.constant 2 : i32
    return
  }
  func.func @transform_0(%arg0: i32) -> (i32, i32) {
    %c0_i32 = arith.constant 0 : i32
    %c0_i32_0 = arith.constant 0 : i32
    return %arg0, %c0_i32 : i32, i32
  }
  func.func @transform_1(%arg0: i32) -> (i32, i32) {
    %c0_i32 = arith.constant 0 : i32
    %c0_i32_0 = arith.constant 0 : i32
    %c0_i32_1 = arith.constant 0 : i32
    return %c0_i32, %c0_i32_0 : i32, i32
  }
  func.func @transform_2(%arg0: i32) -> (i32, i32) {
    %c0_i32 = arith.constant 0 : i32
    %c0_i32_0 = arith.constant 0 : i32
    %c0_i32_1 = arith.constant 0 : i32
    return %c0_i32, %c0_i32_0 : i32, i32
  }
  func.func @transform_3(%arg0: i32) -> (i32, i32) {
    %c0_i32 = arith.constant 0 : i32
    %c0_i32_0 = arith.constant 0 : i32
    %c0_i32_1 = arith.constant 0 : i32
    return %c0_i32, %c0_i32_0 : i32, i32
  }
  func.func @transform_4(%arg0: i32) -> (i32, i32) {
    %c0_i32 = arith.constant 0 : i32
    %c0_i32_0 = arith.constant 0 : i32
    %c0_i32_1 = arith.constant 0 : i32
    return %c0_i32, %c0_i32_0 : i32, i32
  }
  func.func @transform_5(%arg0: i32) -> (i32, i32) {
    %c0_i32 = arith.constant 0 : i32
    %c0_i32_0 = arith.constant 0 : i32
    return %arg0, %c0_i32 : i32, i32
  }
  func.func @transform_6(%arg0: i32) -> (i32, i32) {
    %c0_i32 = arith.constant 0 : i32
    %c0_i32_0 = arith.constant 0 : i32
    return %arg0, %c0_i32 : i32, i32
  }
}

</mosaic_0001>

<bundles_post_ra>
// kernel: tpu_custom_call.1
= control target key start
LH: loop header
LB: loop body
LE: loop exit
PB: predicated region body
PF: predicated region fallthrough
CT: control target
= control target key end

     0   :  { %s3285_s0 = inlined_call_operand.vmem [shape: f32[128,16], index: 0, kind: input, shape index: {}]   ;;  %s3286_s1 = inlined_call_operand.vmem [shape: f32[16,128], index: 1, kind: input, shape index: {}]   ;;  %s3287_s2 = inlined_call_operand.vmem [shape: f32[1,128], index: 2, kind: input, shape index: {}]   ;;  %s3288_s3 = inlined_call_operand.vmem [shape: f32[104,128], index: 3, kind: input, shape index: {}]   ;;  %s3289_s4 = inlined_call_operand.vmem [shape: f32[1,128], index: 4, kind: input, shape index: {}]   ;;  %s3290_s5 = inlined_call_operand.hbm [shape: f32[128,128], index: 5, kind: output, shape index: {0}]   ;;  %s3291_s6 = inlined_call_operand.hbm [shape: f32[16,128], index: 6, kind: output, shape index: {1}]  }
   0x1   :  { %3292 = sst [smem:[#allocation9_spill]] %s3285_s0 }
   0x2   :  { %3293 = sst [smem:[#allocation10_spill]] %s3286_s1 }
   0x3   :  { %12 = vsyncpa [#allocation4], 0 }
   0x4   :  { %14 = vsyncpa [#allocation4 + $0x1], 0 }
   0x5   :  { %15 = vsyncpa [#allocation6], 0 }
   0x6   :  { %17 = vsyncpa [#allocation6 + $0x1], 0  ;;  %s2188_s21 = smov 0   ;;  %s2190_s22 = smov 0  }
   0x7   :  { %s2192_s23 = smov 0   ;;  %s2194_s24 = smov 0  }
   0x8 LB: > { %s2209_s25 = sadd.s32 4294967295, %s2142_s24   ;;  %s1909_s26 = sadd.s32 4294967294, %s2142_s24   ;;  %s2142_s24 = sphi %s2194_s24, %s3301_s24   ;;  %s2138_s23 = sphi %s2192_s23, %s3300_s23   ;;  %s2134_s22 = sphi %s2190_s22, %s3299_s22   ;;  %s2130_s21 = sphi %s2188_s21, %s3298_s21  }
   0x9   : > { %s2213_s27 = sadd.s32 1, %s2142_s24   ;;  %s140_s28 = sadd.s32 1, %s2138_s23 }
   0xa   : > { %s137_s29 = ssub.s32 %s2142_s24, %s2213_s27  ;;  %p150_p0 = scmp.ne.s32.totalorder %s2138_s23, %s2134_s22 }
   0xb   : > { %p138_p1 = scmp.eq.s32.totalorder %s137_s29, 0  ;;  %p151_p2 = scmp.eq.s32.totalorder %s2209_s25, 1 }
   0xc   : > { %p156_p3 = scmp.ne.s32.totalorder %s2134_s22, %s2130_s21  ;;  %p157_p4 = scmp.eq.s32.totalorder %s1909_s26, 1 }
   0xd   : > { %s2224_s30 = scalar_select %p138_p1, %s2138_s23, %s140_s28  }
   0xe   : > { %p2226_p5 = por %p151_p2, %p150_p0  ;;  %p2230_p6 = por %p157_p4, %p156_p3 }
   0xf   : > { %p1912_p7 = scmp.ge.s32.totalorder %s2142_s24, 1  ;;  %p222_p8 = scmp.lt.s32.totalorder %s2142_s24, 3 }
  0x11   : > { %p223_p9 = pnand %p1912_p7, %p222_p8 }
  0x12   : > { %s2237_s9 = sand.u32 (!%p223_p9), 1, %s2134_s22   ;;  %s3296_s1 = sld [smem:[#allocation10_spill]] (!%p223_p9)  ;;  %vm281_vm0 = vcmask (!%p223_p9), 130048   ;;  %v422_v11 = vlaneseq (!%p223_p9)  ;;  %v2148_v12 = vmov (!%p223_p9), 0.0   ;;  %v2265_v13 = vld [vmem:[%s3289_s4] ss:$0 sm:$0xff] (!%p223_p9) }
  0x13   : > { %226 = sbr.rel (%p223_p9) target bundleno = 569 (0x239), region = 40  ;;  %s1915_s14 = sshll.u32 (!%p223_p9), %s2209_s25, 3  ;;  %v1917_v15 = vld [vmem:[%s3287_s2] ss:$0 sm:$0xff] (!%p223_p9) }
  0x14   : > { %s1913_s15 = sshll.u32 (!%p223_p9), %s2237_s9, 6  ;;  %p258_p10 = scmp.lt.s32.totalorder (!%p223_p9), %s1915_s14, 15  ;;  %v2268_v14 = vshrl.u32 (!%p223_p9), %v422_v11, 7 }
  0x15   : > { %s3297_s0 = sld [smem:[#allocation9_spill]] (!%p223_p9)  ;;  %s1914_s20 = sshll.u32 (!%p223_p9), %s2237_s9, 3 }
  0x16   : > { %s2259_s26 = scalar_lea.vmem (!%p223_p9), [#allocation5], %s1914_s20  ;;  %s1926_s10 = sshll.u32 (!%p223_p9), %s2209_s25, 6 }
  0x17   : > { %419 = vst [vmem:[%s2259_s26] sm:$0xff] (!%p223_p9), %v2148_v12  ;;  %s2275_s13 = scalar_lea.vmem (!%p223_p9), [#allocation3], %s1913_s15 }
  0x18   : > { %v272_v0 = vld [vmem:[%s3296_s1] sm:$0xff] (!%p223_p9)  ;;  %v273_v1 = vld [vmem:[%s3296_s1 + $0x8] sm:$0xff] (!%p223_p9) }
  0x19   : > { %v1963_v2 = vpack.c.bf16 (!%p223_p9), %v273_v1, %v272_v0 }
  0x1a   : > { %s3303_s14 = smov (!%p258_p10, %s1915_s14), 15 }
  0x1b   : > { %1964 = vmatprep.subr.bf16.mxu0 %v1963_v2  ;;  %1967 = vmatprep.subr.bf16.mxu1 %v1963_v2  ;;  %s1916_s16 = sshll.u32 %s3303_s14, 3  ;;  %s2277_s14 = smov 0  }
  0x1c   : > { %1966 = vmatpush3.bf16.msra.mxu0 %v1963_v2  ;;  %1968 = vmatpush3.bf16.msra.mxu1 %v1963_v2  ;;  %s261_s19 = scalar_lea.vmem %s3297_s0, %s1916_s16 }
  0x1d   : > { %v264_v3 = vld [vmem:[%s261_s19] sm:$0xff]  ;;  %v265_v5 = vld [vmem:[%s261_s19 + $0x8] sm:$0xff]  ;;  %v266_v7 = vld [vmem:[%s261_s19 + $0x10] sm:$0xff] }
  0x1e   : > { %v268_v4 = vld [vmem:[%s261_s19 + $0x20] sm:$0xff]  ;;  %1951 = vmatprep.mubr.msk.f32.mxu0 %vm281_vm0, %v264_v3  ;;  %v269_v6 = vld [vmem:[%s261_s19 + $0x28] sm:$0xff]  ;;  %v270_v8 = vld [vmem:[%s261_s19 + $0x30] sm:$0xff] }
  0x1f   : > { %1957 = vmatprep.mubr.msk.f32.mxu1 %vm281_vm0, %v268_v4  ;;  %1952 = vmatmul.mubr.msk.f32.vlgmr.msra.gmra.mrb[0].mxu0 %vm281_vm0, %v265_v5  ;;  %v267_v9 = vld [vmem:[%s261_s19 + $0x18] sm:$0xff] }
  0x20   : > { %1958 = vmatmul.mubr.msk.f32.vlgmr.msra.gmra.mrb[0].mxu1 %vm281_vm0, %v269_v6  ;;  %1954 = vmatprep.mubr.msk.f32.mxu0 %vm281_vm0, %v266_v7  ;;  %v271_v10 = vld [vmem:[%s261_s19 + $0x38] sm:$0xff] }
  0x21   : > { %1960 = vmatprep.mubr.msk.f32.mxu1 %vm281_vm0, %v270_v8 }
  0x23   : > { %1955 = vmatmul.mubr.msk.f32.gmra.mrb[2].mxu0 %vm281_vm0, %v267_v9 }
  0x24   : > { %1961 = vmatmul.mubr.msk.f32.gmra.mrb[2].mxu1 %vm281_vm0, %v271_v10 }
  0xf2   : > { %v1953_v16 = vpop.f32.mrb[0].mxu0 }
  0xf3   : > { %v1959_v17 = vpop.f32.mrb[0].mxu1  ;;  %v378_v18 = vadd.f32 %v1953_v16, %v1917_v15  ;;  %v372_v20 = vpop.f32.mrb[1].mxu0 }
  0xf4   : > { %v398_v19 = vadd.f32 %v1959_v17, %v1917_v15  ;;  %v392_v21 = vpop.f32.mrb[1].mxu1  ;;  %v373_v22 = vadd.f32 %v1917_v15, %v372_v20 }
  0xf5   : > { %v393_v23 = vadd.f32 %v1917_v15, %v392_v21  ;;  %412 = vst [vmem:[#allocation2 + $0x8] sm:$0xff] %v378_v18 }
  0xf6   : > { %416 = vst [vmem:[#allocation2 + $0x28] sm:$0xff] %v398_v19  ;;  %411 = vst [vmem:[#allocation2] sm:$0xff] %v373_v22  ;;  %v1956_v24 = vpop.f32.mrb[2].mxu0 }
  0xf7   : > { %415 = vst [vmem:[#allocation2 + $0x20] sm:$0xff] %v393_v23  ;;  %v1962_v25 = vpop.f32.mrb[2].mxu1  ;;  %v388_v26 = vadd.f32 %v1956_v24, %v1917_v15  ;;  %v382_v28 = vpop.f32.mrb[3].mxu0 }
  0xf8   : > { %v408_v27 = vadd.f32 %v1962_v25, %v1917_v15  ;;  %v402_v29 = vpop.f32.mrb[3].mxu1  ;;  %v383_v30 = vadd.f32 %v1917_v15, %v382_v28 }
  0xf9   : > { %v403_v31 = vadd.f32 %v1917_v15, %v402_v29  ;;  %414 = vst [vmem:[#allocation2 + $0x18] sm:$0xff] %v388_v26 }
  0xfa   : > { %418 = vst [vmem:[#allocation2 + $0x38] sm:$0xff] %v408_v27  ;;  %413 = vst [vmem:[#allocation2 + $0x10] sm:$0xff] %v383_v30 }
  0xfb   : > { %417 = vst [vmem:[#allocation2 + $0x30] sm:$0xff] %v403_v31 }
  0xfc LB: >> { %v464_v32 = vld [vmem:[%s3288_s3] sm:$0xff]  ;;  %v2286_v33 = vsub.s32 0, %v2268_v14  ;;  %v2289_v34 = vsub.s32 1, %v2268_v14  ;;  %v2292_v35 = vsub.s32 2, %v2268_v14  ;;  %v2295_v36 = vsub.s32 3, %v2268_v14  ;;  %v561_v41 = vld [vmem:[%s3288_s3 + $0x8] sm:$0xff]  ;;  %s2146_s14 = sphi %s2277_s14, %s429_s14  }
  0xfd   : >> { %v2298_v37 = vsub.s32 4, %v2268_v14  ;;  %v2301_v38 = vsub.s32 5, %v2268_v14  ;;  %v2304_v39 = vsub.s32 6, %v2268_v14  ;;  %v2307_v40 = vsub.s32 7, %v2268_v14  ;;  %s2313_s19 = sshll.u32 %s2146_s14, 5  ;;  %v658_v3 = vld [vmem:[%s3288_s3 + $0x10] sm:$0xff] }
  0xfe   : >> { %v2316_v42 = vrot.slane %v464_v32, %v2286_v33  ;;  %v2319_v43 = vrot.slane %v464_v32, %v2289_v34  ;;  %v2322_v44 = vrot.slane %v464_v32, %v2292_v35  ;;  %v2325_v45 = vrot.slane %v464_v32, %v2295_v36  ;;  %s2340_s20 = scalar_lea.vmem [#allocation2], %s2313_s19  ;;  %v2391_v25 = vld [vmem:[%s3288_s3 + $0x18] sm:$0xff]  ;;  %s1720_s17 = sadd.s32 %s2313_s19, %s1926_s10 }
  0xff   : >> { %v2328_v46 = vrot.slane %v464_v32, %v2298_v37  ;;  %v2331_v47 = vrot.slane %v464_v32, %v2301_v38  ;;  %v2334_v48 = vrot.slane %v464_v32, %v2304_v39  ;;  %v2337_v49 = vrot.slane %v464_v32, %v2307_v40  ;;  %s1715_s15 = scalar_lea.vmem %s2275_s13, %s2313_s19 [#allocation3]  ;;  %s429_s14 = sadd.s32 1, %s2146_s14  }
 0x100   : >> { %v2346_v53 = vrot.slane %v561_v41, %v2286_v33  ;;  %v2349_v54 = vrot.slane %v561_v41, %v2289_v34  ;;  %v2352_v55 = vrot.slane %v561_v41, %v2292_v35  ;;  %v2355_v56 = vrot.slane %v561_v41, %v2295_v36  ;;  %p426_p11 = scmp.ge.s32.totalorder %s429_s14, 2  }
 0x101   : >> { %v2359_v61 = vrot.slane %v561_v41, %v2298_v37  ;;  %v2362_v63 = vrot.slane %v561_v41, %v2301_v38  ;;  %v2365_v0 = vrot.slane %v561_v41, %v2304_v39  ;;  %v2368_v1 = vrot.slane %v561_v41, %v2307_v40  ;;  %s1936_s19 = sshll.u32 (%p426_p11), %s2209_s25, 10  ;;  %s1793_s11 = sshll.u32 (%p426_p11), %s2275_s13, 4  ;;  %s3217_s11 = int_to_ptr.vmem [resolvable:$true] %s1793_s11 }
 0x102   : >> { %v432_v50 = vld [vmem:[%s2340_s20] sm:$0xff]  ;;  %v433_v51 = vld [vmem:[%s2340_s20 + $0x8] sm:$0xff]  ;;  %v434_v52 = vld [vmem:[%s2340_s20 + $0x10] sm:$0xff]  ;;  %v2374_v11 = vrot.slane %v658_v3, %v2286_v33  ;;  %v2377_v12 = vrot.slane %v658_v3, %v2289_v34  ;;  %v2380_v15 = vrot.slane %v658_v3, %v2292_v35  ;;  %v2383_v16 = vrot.slane %v658_v3, %v2295_v36  ;;  %s3214_s29 = scalar_lea.hbm (%p426_p11), %s3290_s5, %s1936_s19  ;;  %s1775_s12 = scalar_lea.sflag (%p426_p11), [#allocation4], %s2237_s9 }
 0x103   : >> { %v435_v57 = vld [vmem:[%s2340_s20 + $0x18] sm:$0xff]  ;;  %v436_v58 = vmul.f32 99.0, %v432_v50  ;;  %v437_v59 = vmul.f32 99.0, %v433_v51  ;;  %v438_v60 = vmul.f32 99.0, %v434_v52  ;;  %v2394_v26 = vrot.slane %v658_v3, %v2298_v37  ;;  %s2149_s10 = smov (%p426_p11), [#allocation3]  }
 0x104   : >> { %v439_v62 = vmul.f32 99.0, %v435_v57  ;;  %v2397_v27 = vrot.slane %v658_v3, %v2301_v38  ;;  %v2400_v28 = vrot.slane %v658_v3, %v2304_v39  ;;  %v2403_v29 = vrot.slane %v658_v3, %v2307_v40  ;;  %s2048_s14 = sshll.u32 (%p426_p11), %s2149_s10, 4  ;;  %s2049_s14 = int_to_ptr.vmem [resolvable:$false] %s2048_s14 }
 0x105   : >> { %vm440_vm1 = vcmp.lt.f32.partialorder %v436_v58, 0.0  ;;  %vm441_vm2 = vcmp.lt.f32.partialorder %v437_v59, 0.0  ;;  %vm442_vm3 = vcmp.lt.f32.partialorder %v438_v60, 0.0  ;;  %v444_v2 = vceil.f32 %v436_v58  ;;  %s2050_s16 = scalar_lea.vmem (%p426_p11), %s2049_s14, 2048  ;;  %p2051_p1 = scmp.lt.s32.totalorder (%p426_p11), %s3217_s11, %s2049_s14 }
 0x106   : >> { %vm443_vm4 = vcmp.lt.f32.partialorder %v439_v62, 0.0  ;;  %v445_v4 = vceil.f32 %v437_v59  ;;  %v446_v5 = vceil.f32 %v438_v60  ;;  %v447_v6 = vceil.f32 %v439_v62 }
 0x107   : >> { %v448_v7 = vfloor.f32 %v436_v58  ;;  %v449_v8 = vfloor.f32 %v437_v59  ;;  %v450_v9 = vfloor.f32 %v438_v60  ;;  %v451_v10 = vfloor.f32 %v439_v62 }
 0x108   : >> { %v2415_v50 = vrot.slane %v2391_v25, %v2286_v33  ;;  %v2419_v51 = vrot.slane %v2391_v25, %v2289_v34  ;;  %v2423_v52 = vrot.slane %v2391_v25, %v2292_v35  ;;  %v2427_v57 = vrot.slane %v2391_v25, %v2295_v36 }
 0x109   : >> { %v452_v17 = vsel %vm440_vm1, %v444_v2, %v448_v7  ;;  %v453_v18 = vsel %vm441_vm2, %v445_v4, %v449_v8  ;;  %v454_v19 = vsel %vm442_vm3, %v446_v5, %v450_v9  ;;  %v455_v20 = vsel %vm443_vm4, %v447_v6, %v451_v10 }
 0x10a   : >> { %v456_v21 = vmax.f32 %v452_v17, 0.0  ;;  %v457_v22 = vmax.f32 %v453_v18, 0.0  ;;  %v458_v23 = vmax.f32 %v454_v19, 0.0  ;;  %v459_v24 = vmax.f32 %v455_v20, 0.0 }
 0x10c   : >> { %v2405_v30 = vmin.f32 %v456_v21, 99.0  ;;  %v2407_v31 = vmin.f32 %v457_v22, 99.0  ;;  %v2409_v32 = vmin.f32 %v458_v23, 99.0  ;;  %v2411_v41 = vmin.f32 %v459_v24, 99.0 }
 0x10e   : >> { %vm465_vm5 = vcmp.eq.f32.partialorder %v2405_v30, 0.0  ;;  %vm466_vm6 = vcmp.eq.f32.partialorder %v2407_v31, 0.0  ;;  %vm467_vm7 = vcmp.eq.f32.partialorder %v2409_v32, 0.0  ;;  %vm468_vm8 = vcmp.eq.f32.partialorder %v2411_v41, 0.0 }
 0x10f   : >> { %v473_v58 = vsel %vm465_vm5, %v2316_v42, 0.0  ;;  %v474_v59 = vsel %vm466_vm6, %v2316_v42, 0.0  ;;  %v475_v60 = vsel %vm467_vm7, %v2316_v42, 0.0  ;;  %v476_v62 = vsel %vm468_vm8, %v2316_v42, 0.0 }
 0x110   : >> { %vm477_vm9 = vcmp.eq.f32.partialorder %v2405_v30, 1.0  ;;  %vm478_vm10 = vcmp.eq.f32.partialorder %v2407_v31, 1.0  ;;  %vm479_vm11 = vcmp.eq.f32.partialorder %v2409_v32, 1.0  ;;  %vm480_vm12 = vcmp.eq.f32.partialorder %v2411_v41, 1.0 }
 0x111   : >> { %v485_v2 = vsel %vm477_vm9, %v2319_v43, %v473_v58  ;;  %v486_v3 = vsel %vm478_vm10, %v2319_v43, %v474_v59  ;;  %v487_v4 = vsel %vm479_vm11, %v2319_v43, %v475_v60  ;;  %v488_v5 = vsel %vm480_vm12, %v2319_v43, %v476_v62 }
 0x112   : >> { %vm489_vm13 = vcmp.eq.f32.partialorder %v2405_v30, 2.0  ;;  %vm490_vm14 = vcmp.eq.f32.partialorder %v2407_v31, 2.0  ;;  %vm491_vm15 = vcmp.eq.f32.partialorder %v2409_v32, 2.0  ;;  %vm492_vm0 = vcmp.eq.f32.partialorder %v2411_v41, 2.0 }
 0x113   : >> { %v497_v42 = vsel %vm489_vm13, %v2322_v44, %v485_v2  ;;  %v498_v6 = vsel %vm490_vm14, %v2322_v44, %v486_v3  ;;  %v499_v7 = vsel %vm491_vm15, %v2322_v44, %v487_v4  ;;  %v500_v8 = vsel %vm492_vm0, %v2322_v44, %v488_v5 }
 0x114   : >> { %vm501_vm1 = vcmp.eq.f32.partialorder %v2405_v30, 3.0  ;;  %vm502_vm2 = vcmp.eq.f32.partialorder %v2407_v31, 3.0  ;;  %vm503_vm3 = vcmp.eq.f32.partialorder %v2409_v32, 3.0  ;;  %vm504_vm4 = vcmp.eq.f32.partialorder %v2411_v41, 3.0 }
 0x115   : >> { %v509_v43 = vsel %vm501_vm1, %v2325_v45, %v497_v42  ;;  %v510_v9 = vsel %vm502_vm2, %v2325_v45, %v498_v6  ;;  %v511_v10 = vsel %vm503_vm3, %v2325_v45, %v499_v7  ;;  %v512_v17 = vsel %vm504_vm4, %v2325_v45, %v500_v8 }
 0x116   : >> { %vm513_vm5 = vcmp.eq.f32.partialorder %v2405_v30, 4.0  ;;  %vm514_vm6 = vcmp.eq.f32.partialorder %v2407_v31, 4.0  ;;  %vm515_vm7 = vcmp.eq.f32.partialorder %v2409_v32, 4.0  ;;  %vm516_vm8 = vcmp.eq.f32.partialorder %v2411_v41, 4.0 }
 0x117   : >> { %v521_v44 = vsel %vm513_vm5, %v2328_v46, %v509_v43  ;;  %v522_v18 = vsel %vm514_vm6, %v2328_v46, %v510_v9  ;;  %v523_v19 = vsel %vm515_vm7, %v2328_v46, %v511_v10  ;;  %v524_v20 = vsel %vm516_vm8, %v2328_v46, %v512_v17 }
 0x118   : >> { %vm525_vm9 = vcmp.eq.f32.partialorder %v2405_v30, 5.0  ;;  %vm526_vm10 = vcmp.eq.f32.partialorder %v2407_v31, 5.0  ;;  %vm527_vm11 = vcmp.eq.f32.partialorder %v2409_v32, 5.0  ;;  %vm528_vm12 = vcmp.eq.f32.partialorder %v2411_v41, 5.0 }
 0x119   : >> { %v533_v45 = vsel %vm525_vm9, %v2331_v47, %v521_v44  ;;  %v534_v21 = vsel %vm526_vm10, %v2331_v47, %v522_v18  ;;  %v535_v22 = vsel %vm527_vm11, %v2331_v47, %v523_v19  ;;  %v536_v23 = vsel %vm528_vm12, %v2331_v47, %v524_v20 }
 0x11a   : >> { %vm537_vm13 = vcmp.eq.f32.partialorder %v2405_v30, 6.0  ;;  %vm538_vm14 = vcmp.eq.f32.partialorder %v2407_v31, 6.0  ;;  %vm539_vm15 = vcmp.eq.f32.partialorder %v2409_v32, 6.0  ;;  %vm540_vm0 = vcmp.eq.f32.partialorder %v2411_v41, 6.0 }
 0x11b   : >> { %v545_v46 = vsel %vm537_vm13, %v2334_v48, %v533_v45  ;;  %v546_v24 = vsel %vm538_vm14, %v2334_v48, %v534_v21  ;;  %v547_v58 = vsel %vm539_vm15, %v2334_v48, %v535_v22  ;;  %v548_v59 = vsel %vm540_vm0, %v2334_v48, %v536_v23 }
 0x11c   : >> { %vm549_vm1 = vcmp.eq.f32.partialorder %v2405_v30, 7.0  ;;  %vm550_vm2 = vcmp.eq.f32.partialorder %v2407_v31, 7.0  ;;  %vm551_vm3 = vcmp.eq.f32.partialorder %v2409_v32, 7.0  ;;  %vm552_vm4 = vcmp.eq.f32.partialorder %v2411_v41, 7.0 }
 0x11d   : >> { %v557_v47 = vsel %vm549_vm1, %v2337_v49, %v545_v46  ;;  %v558_v60 = vsel %vm550_vm2, %v2337_v49, %v546_v24  ;;  %v559_v62 = vsel %vm551_vm3, %v2337_v49, %v547_v58  ;;  %v560_v2 = vsel %vm552_vm4, %v2337_v49, %v548_v59 }
 0x11e   : >> { %vm562_vm5 = vcmp.eq.f32.partialorder %v2405_v30, 8.0  ;;  %vm563_vm6 = vcmp.eq.f32.partialorder %v2407_v31, 8.0  ;;  %vm564_vm7 = vcmp.eq.f32.partialorder %v2409_v32, 8.0  ;;  %vm565_vm8 = vcmp.eq.f32.partialorder %v2411_v41, 8.0 }
 0x11f   : >> { %v570_v48 = vsel %vm562_vm5, %v2346_v53, %v557_v47  ;;  %v571_v3 = vsel %vm563_vm6, %v2346_v53, %v558_v60  ;;  %v572_v4 = vsel %vm564_vm7, %v2346_v53, %v559_v62  ;;  %v573_v5 = vsel %vm565_vm8, %v2346_v53, %v560_v2 }
 0x120   : >> { %vm574_vm9 = vcmp.eq.f32.partialorder %v2405_v30, 9.0  ;;  %vm575_vm10 = vcmp.eq.f32.partialorder %v2407_v31, 9.0  ;;  %vm576_vm11 = vcmp.eq.f32.partialorder %v2409_v32, 9.0  ;;  %vm577_vm12 = vcmp.eq.f32.partialorder %v2411_v41, 9.0 }
 0x121   : >> { %v582_v49 = vsel %vm574_vm9, %v2349_v54, %v570_v48  ;;  %v583_v42 = vsel %vm575_vm10, %v2349_v54, %v571_v3  ;;  %v584_v6 = vsel %vm576_vm11, %v2349_v54, %v572_v4  ;;  %v585_v7 = vsel %vm577_vm12, %v2349_v54, %v573_v5 }
 0x122   : >> { %vm586_vm13 = vcmp.eq.f32.partialorder %v2405_v30, 10.0  ;;  %vm587_vm14 = vcmp.eq.f32.partialorder %v2407_v31, 10.0  ;;  %vm588_vm15 = vcmp.eq.f32.partialorder %v2409_v32, 10.0  ;;  %vm589_vm0 = vcmp.eq.f32.partialorder %v2411_v41, 10.0 }
 0x123   : >> { %v594_v53 = vsel %vm586_vm13, %v2352_v55, %v582_v49  ;;  %v595_v8 = vsel %vm587_vm14, %v2352_v55, %v583_v42  ;;  %v596_v43 = vsel %vm588_vm15, %v2352_v55, %v584_v6  ;;  %v597_v9 = vsel %vm589_vm0, %v2352_v55, %v585_v7 }
 0x124   : >> { %vm598_vm1 = vcmp.eq.f32.partialorder %v2405_v30, 11.0  ;;  %vm599_vm2 = vcmp.eq.f32.partialorder %v2407_v31, 11.0  ;;  %vm600_vm3 = vcmp.eq.f32.partialorder %v2409_v32, 11.0  ;;  %vm601_vm4 = vcmp.eq.f32.partialorder %v2411_v41, 11.0 }
 0x125   : >> { %v606_v54 = vsel %vm598_vm1, %v2355_v56, %v594_v53  ;;  %v607_v10 = vsel %vm599_vm2, %v2355_v56, %v595_v8  ;;  %v608_v17 = vsel %vm600_vm3, %v2355_v56, %v596_v43  ;;  %v609_v44 = vsel %vm601_vm4, %v2355_v56, %v597_v9 }
 0x126   : >> { %vm610_vm5 = vcmp.eq.f32.partialorder %v2405_v30, 12.0  ;;  %vm611_vm6 = vcmp.eq.f32.partialorder %v2407_v31, 12.0  ;;  %vm612_vm7 = vcmp.eq.f32.partialorder %v2409_v32, 12.0  ;;  %vm613_vm8 = vcmp.eq.f32.partialorder %v2411_v41, 12.0 }
 0x127   : >> { %v618_v55 = vsel %vm610_vm5, %v2359_v61, %v606_v54  ;;  %v619_v18 = vsel %vm611_vm6, %v2359_v61, %v607_v10  ;;  %v620_v19 = vsel %vm612_vm7, %v2359_v61, %v608_v17  ;;  %v621_v20 = vsel %vm613_vm8, %v2359_v61, %v609_v44 }
 0x128   : >> { %vm622_vm9 = vcmp.eq.f32.partialorder %v2405_v30, 13.0  ;;  %vm623_vm10 = vcmp.eq.f32.partialorder %v2407_v31, 13.0  ;;  %vm624_vm11 = vcmp.eq.f32.partialorder %v2409_v32, 13.0  ;;  %vm625_vm12 = vcmp.eq.f32.partialorder %v2411_v41, 13.0 }
 0x129   : >> { %v630_v56 = vsel %vm622_vm9, %v2362_v63, %v618_v55  ;;  %v631_v45 = vsel %vm623_vm10, %v2362_v63, %v619_v18  ;;  %v632_v21 = vsel %vm624_vm11, %v2362_v63, %v620_v19  ;;  %v633_v22 = vsel %vm625_vm12, %v2362_v63, %v621_v20 }
 0x12a   : >> { %vm634_vm13 = vcmp.eq.f32.partialorder %v2405_v30, 14.0  ;;  %vm635_vm14 = vcmp.eq.f32.partialorder %v2407_v31, 14.0  ;;  %vm636_vm15 = vcmp.eq.f32.partialorder %v2409_v32, 14.0  ;;  %vm637_vm0 = vcmp.eq.f32.partialorder %v2411_v41, 14.0 }
 0x12b   : >> { %v642_v61 = vsel %vm634_vm13, %v2365_v0, %v630_v56  ;;  %v643_v23 = vsel %vm635_vm14, %v2365_v0, %v631_v45  ;;  %v644_v46 = vsel %vm636_vm15, %v2365_v0, %v632_v21  ;;  %v645_v24 = vsel %vm637_vm0, %v2365_v0, %v633_v22 }
 0x12c   : >> { %vm646_vm1 = vcmp.eq.f32.partialorder %v2405_v30, 15.0  ;;  %vm647_vm2 = vcmp.eq.f32.partialorder %v2407_v31, 15.0  ;;  %vm648_vm3 = vcmp.eq.f32.partialorder %v2409_v32, 15.0  ;;  %vm649_vm4 = vcmp.eq.f32.partialorder %v2411_v41, 15.0 }
 0x12d   : >> { %v654_v63 = vsel %vm646_vm1, %v2368_v1, %v642_v61  ;;  %v655_v58 = vsel %vm647_vm2, %v2368_v1, %v643_v23  ;;  %v656_v59 = vsel %vm648_vm3, %v2368_v1, %v644_v46  ;;  %v657_v47 = vsel %vm649_vm4, %v2368_v1, %v645_v24 }
 0x12e   : >> { %vm659_vm5 = vcmp.eq.f32.partialorder %v2405_v30, 16.0  ;;  %vm660_vm6 = vcmp.eq.f32.partialorder %v2407_v31, 16.0  ;;  %vm661_vm7 = vcmp.eq.f32.partialorder %v2409_v32, 16.0  ;;  %vm662_vm8 = vcmp.eq.f32.partialorder %v2411_v41, 16.0 }
 0x12f   : >> { %v667_v0 = vsel %vm659_vm5, %v2374_v11, %v654_v63  ;;  %v668_v60 = vsel %vm660_vm6, %v2374_v11, %v655_v58  ;;  %v669_v62 = vsel %vm661_vm7, %v2374_v11, %v656_v59  ;;  %v670_v2 = vsel %vm662_vm8, %v2374_v11, %v657_v47 }
 0x130   : >> { %vm671_vm9 = vcmp.eq.f32.partialorder %v2405_v30, 17.0  ;;  %vm672_vm10 = vcmp.eq.f32.partialorder %v2407_v31, 17.0  ;;  %vm673_vm11 = vcmp.eq.f32.partialorder %v2409_v32, 17.0  ;;  %vm674_vm12 = vcmp.eq.f32.partialorder %v2411_v41, 17.0 }
 0x131   : >> { %v679_v1 = vsel %vm671_vm9, %v2377_v12, %v667_v0  ;;  %v680_v48 = vsel %vm672_vm10, %v2377_v12, %v668_v60  ;;  %v681_v3 = vsel %vm673_vm11, %v2377_v12, %v669_v62  ;;  %v682_v4 = vsel %vm674_vm12, %v2377_v12, %v670_v2 }
 0x132   : >> { %vm683_vm13 = vcmp.eq.f32.partialorder %v2405_v30, 18.0  ;;  %vm684_vm14 = vcmp.eq.f32.partialorder %v2407_v31, 18.0  ;;  %vm685_vm15 = vcmp.eq.f32.partialorder %v2409_v32, 18.0  ;;  %vm686_vm0 = vcmp.eq.f32.partialorder %v2411_v41, 18.0 }
 0x133   : >> { %v691_v11 = vsel %vm683_vm13, %v2380_v15, %v679_v1  ;;  %v692_v5 = vsel %vm684_vm14, %v2380_v15, %v680_v48  ;;  %v693_v49 = vsel %vm685_vm15, %v2380_v15, %v681_v3  ;;  %v694_v42 = vsel %vm686_vm0, %v2380_v15, %v682_v4 }
 0x134   : >> { %vm695_vm1 = vcmp.eq.f32.partialorder %v2405_v30, 19.0  ;;  %vm696_vm2 = vcmp.eq.f32.partialorder %v2407_v31, 19.0  ;;  %vm697_vm3 = vcmp.eq.f32.partialorder %v2409_v32, 19.0  ;;  %vm698_vm4 = vcmp.eq.f32.partialorder %v2411_v41, 19.0 }
 0x135   : >> { %v703_v12 = vsel %vm695_vm1, %v2383_v16, %v691_v11  ;;  %v704_v6 = vsel %vm696_vm2, %v2383_v16, %v692_v5  ;;  %v705_v7 = vsel %vm697_vm3, %v2383_v16, %v693_v49  ;;  %v706_v53 = vsel %vm698_vm4, %v2383_v16, %v694_v42 }
 0x136   : >> { %vm707_vm5 = vcmp.eq.f32.partialorder %v2405_v30, 20.0  ;;  %vm708_vm6 = vcmp.eq.f32.partialorder %v2407_v31, 20.0  ;;  %vm709_vm7 = vcmp.eq.f32.partialorder %v2409_v32, 20.0  ;;  %vm710_vm8 = vcmp.eq.f32.partialorder %v2411_v41, 20.0 }
 0x137   : >> { %v715_v15 = vsel %vm707_vm5, %v2394_v26, %v703_v12  ;;  %v716_v8 = vsel %vm708_vm6, %v2394_v26, %v704_v6  ;;  %v717_v43 = vsel %vm709_vm7, %v2394_v26, %v705_v7  ;;  %v718_v9 = vsel %vm710_vm8, %v2394_v26, %v706_v53  ;;  %v2684_v53 = vld [vmem:[%s3288_s3 + $0x20] sm:$0xff] }
 0x138   : >> { %vm719_vm9 = vcmp.eq.f32.partialorder %v2405_v30, 21.0  ;;  %vm720_vm10 = vcmp.eq.f32.partialorder %v2407_v31, 21.0  ;;  %vm721_vm11 = vcmp.eq.f32.partialorder %v2409_v32, 21.0  ;;  %vm722_vm12 = vcmp.eq.f32.partialorder %v2411_v41, 21.0 }
 0x139   : >> { %v727_v16 = vsel %vm719_vm9, %v2397_v27, %v715_v15  ;;  %v728_v54 = vsel %vm720_vm10, %v2397_v27, %v716_v8  ;;  %v729_v10 = vsel %vm721_vm11, %v2397_v27, %v717_v43  ;;  %v730_v17 = vsel %vm722_vm12, %v2397_v27, %v718_v9 }
 0x13a   : >> { %vm731_vm13 = vcmp.eq.f32.partialorder %v2405_v30, 22.0  ;;  %vm732_vm14 = vcmp.eq.f32.partialorder %v2407_v31, 22.0  ;;  %vm733_vm15 = vcmp.eq.f32.partialorder %v2409_v32, 22.0  ;;  %vm734_vm0 = vcmp.eq.f32.partialorder %v2411_v41, 22.0 }
 0x13b   : >> { %v739_v26 = vsel %vm731_vm13, %v2400_v28, %v727_v16  ;;  %v740_v44 = vsel %vm732_vm14, %v2400_v28, %v728_v54  ;;  %v741_v55 = vsel %vm733_vm15, %v2400_v28, %v729_v10  ;;  %v742_v18 = vsel %vm734_vm0, %v2400_v28, %v730_v17 }
 0x13c   : >> { %vm743_vm1 = vcmp.eq.f32.partialorder %v2405_v30, 23.0  ;;  %vm744_vm2 = vcmp.eq.f32.partialorder %v2407_v31, 23.0  ;;  %vm745_vm3 = vcmp.eq.f32.partialorder %v2409_v32, 23.0  ;;  %vm746_vm4 = vcmp.eq.f32.partialorder %v2411_v41, 23.0 }
 0x13d   : >> { %v751_v27 = vsel %vm743_vm1, %v2403_v29, %v739_v26  ;;  %v752_v19 = vsel %vm744_vm2, %v2403_v29, %v740_v44  ;;  %v753_v20 = vsel %vm745_vm3, %v2403_v29, %v741_v55  ;;  %v754_v56 = vsel %vm746_vm4, %v2403_v29, %v742_v18 }
 0x13e   : >> { %vm756_vm5 = vcmp.eq.f32.partialorder %v2405_v30, 24.0  ;;  %vm757_vm6 = vcmp.eq.f32.partialorder %v2407_v31, 24.0  ;;  %vm758_vm7 = vcmp.eq.f32.partialorder %v2409_v32, 24.0  ;;  %vm759_vm8 = vcmp.eq.f32.partialorder %v2411_v41, 24.0 }
 0x13f   : >> { %v764_v28 = vsel %vm756_vm5, %v2415_v50, %v751_v27  ;;  %v765_v45 = vsel %vm757_vm6, %v2415_v50, %v752_v19  ;;  %v766_v21 = vsel %vm758_vm7, %v2415_v50, %v753_v20  ;;  %v767_v22 = vsel %vm759_vm8, %v2415_v50, %v754_v56 }
 0x140   : >> { %vm768_vm9 = vcmp.eq.f32.partialorder %v2405_v30, 25.0  ;;  %vm769_vm10 = vcmp.eq.f32.partialorder %v2407_v31, 25.0  ;;  %vm770_vm11 = vcmp.eq.f32.partialorder %v2409_v32, 25.0  ;;  %vm771_vm12 = vcmp.eq.f32.partialorder %v2411_v41, 25.0 }
 0x141   : >> { %v776_v29 = vsel %vm768_vm9, %v2419_v51, %v764_v28  ;;  %v777_v61 = vsel %vm769_vm10, %v2419_v51, %v765_v45  ;;  %v778_v23 = vsel %vm770_vm11, %v2419_v51, %v766_v21  ;;  %v779_v46 = vsel %vm771_vm12, %v2419_v51, %v767_v22 }
 0x142   : >> { %vm780_vm13 = vcmp.eq.f32.partialorder %v2405_v30, 26.0  ;;  %vm781_vm14 = vcmp.eq.f32.partialorder %v2407_v31, 26.0  ;;  %vm782_vm15 = vcmp.eq.f32.partialorder %v2409_v32, 26.0  ;;  %vm783_vm0 = vcmp.eq.f32.partialorder %v2411_v41, 26.0 }
 0x143   : >> { %v788_v50 = vsel %vm780_vm13, %v2423_v52, %v776_v29  ;;  %v789_v24 = vsel %vm781_vm14, %v2423_v52, %v777_v61  ;;  %v790_v63 = vsel %vm782_vm15, %v2423_v52, %v778_v23  ;;  %v791_v58 = vsel %vm783_vm0, %v2423_v52, %v779_v46 }
 0x144   : >> { %vm792_vm1 = vcmp.eq.f32.partialorder %v2405_v30, 27.0  ;;  %vm793_vm2 = vcmp.eq.f32.partialorder %v2407_v31, 27.0  ;;  %vm794_vm3 = vcmp.eq.f32.partialorder %v2409_v32, 27.0  ;;  %vm795_vm4 = vcmp.eq.f32.partialorder %v2411_v41, 27.0 }
 0x145   : >> { %v800_v51 = vsel %vm792_vm1, %v2427_v57, %v788_v50  ;;  %v801_v59 = vsel %vm793_vm2, %v2427_v57, %v789_v24  ;;  %v802_v47 = vsel %vm794_vm3, %v2427_v57, %v790_v63  ;;  %v803_v0 = vsel %vm795_vm4, %v2427_v57, %v791_v58 }
 0x146   : >> { %vm804_vm5 = vcmp.eq.f32.partialorder %v2405_v30, 28.0  ;;  %vm805_vm6 = vcmp.eq.f32.partialorder %v2407_v31, 28.0  ;;  %vm806_vm7 = vcmp.eq.f32.partialorder %v2409_v32, 28.0  ;;  %vm807_vm8 = vcmp.eq.f32.partialorder %v2411_v41, 28.0 }
 0x147   : >> { %v811_v52 = vrot.slane %v2391_v25, %v2298_v37  ;;  %vm816_vm9 = vcmp.eq.f32.partialorder %v2405_v30, 29.0  ;;  %vm817_vm10 = vcmp.eq.f32.partialorder %v2407_v31, 29.0  ;;  %vm818_vm11 = vcmp.eq.f32.partialorder %v2409_v32, 29.0 }
 0x148   : >> { %vm819_vm12 = vcmp.eq.f32.partialorder %v2411_v41, 29.0  ;;  %v823_v57 = vrot.slane %v2391_v25, %v2301_v38  ;;  %vm828_vm13 = vcmp.eq.f32.partialorder %v2405_v30, 30.0  ;;  %vm829_vm14 = vcmp.eq.f32.partialorder %v2407_v31, 30.0 }
 0x149   : >> { %v812_v60 = vsel %vm804_vm5, %v811_v52, %v800_v51  ;;  %v813_v62 = vsel %vm805_vm6, %v811_v52, %v801_v59  ;;  %v814_v2 = vsel %vm806_vm7, %v811_v52, %v802_v47  ;;  %v815_v1 = vsel %vm807_vm8, %v811_v52, %v803_v0 }
 0x14a   : >> { %v824_v48 = vsel %vm816_vm9, %v823_v57, %v812_v60  ;;  %v825_v3 = vsel %vm817_vm10, %v823_v57, %v813_v62  ;;  %v826_v4 = vsel %vm818_vm11, %v823_v57, %v814_v2  ;;  %v827_v11 = vsel %vm819_vm12, %v823_v57, %v815_v1 }
 0x14b   : >> { %vm830_vm15 = vcmp.eq.f32.partialorder %v2409_v32, 30.0  ;;  %vm831_vm0 = vcmp.eq.f32.partialorder %v2411_v41, 30.0  ;;  %v835_v5 = vrot.slane %v2391_v25, %v2304_v39  ;;  %vm840_vm1 = vcmp.eq.f32.partialorder %v2405_v30, 31.0 }
 0x14c   : >> { %vm841_vm2 = vcmp.eq.f32.partialorder %v2407_v31, 31.0  ;;  %vm842_vm3 = vcmp.eq.f32.partialorder %v2409_v32, 31.0  ;;  %vm843_vm4 = vcmp.eq.f32.partialorder %v2411_v41, 31.0  ;;  %v847_v49 = vrot.slane %v2391_v25, %v2307_v40 }
 0x14d   : >> { %v836_v42 = vsel %vm828_vm13, %v835_v5, %v824_v48  ;;  %v837_v12 = vsel %vm829_vm14, %v835_v5, %v825_v3  ;;  %v838_v6 = vsel %vm830_vm15, %v835_v5, %v826_v4  ;;  %v839_v7 = vsel %vm831_vm0, %v835_v5, %v827_v11  ;;  %v2745_v3 = vld [vmem:[%s3288_s3 + $0x28] sm:$0xff] }
 0x14e   : >> { %v848_v15 = vsel %vm840_vm1, %v847_v49, %v836_v42  ;;  %v849_v8 = vsel %vm841_vm2, %v847_v49, %v837_v12  ;;  %v850_v43 = vsel %vm842_vm3, %v847_v49, %v838_v6  ;;  %v851_v9 = vsel %vm843_vm4, %v847_v49, %v839_v7 }
 0x14f   : >> { %vm853_vm5 = vcmp.eq.f32.partialorder %v2405_v30, 32.0  ;;  %vm854_vm6 = vcmp.eq.f32.partialorder %v2407_v31, 32.0  ;;  %vm855_vm7 = vcmp.eq.f32.partialorder %v2409_v32, 32.0  ;;  %vm856_vm8 = vcmp.eq.f32.partialorder %v2411_v41, 32.0 }
 0x150   : >> { %v860_v25 = vrot.slane %v2684_v53, %v2286_v33  ;;  %vm865_vm9 = vcmp.eq.f32.partialorder %v2405_v30, 33.0  ;;  %vm866_vm10 = vcmp.eq.f32.partialorder %v2407_v31, 33.0  ;;  %vm867_vm11 = vcmp.eq.f32.partialorder %v2409_v32, 33.0 }
 0x151   : >> { %vm868_vm12 = vcmp.eq.f32.partialorder %v2411_v41, 33.0  ;;  %v872_v16 = vrot.slane %v2684_v53, %v2289_v34  ;;  %vm877_vm13 = vcmp.eq.f32.partialorder %v2405_v30, 34.0  ;;  %vm878_vm14 = vcmp.eq.f32.partialorder %v2407_v31, 34.0 }
 0x152   : >> { %v861_v54 = vsel %vm853_vm5, %v860_v25, %v848_v15  ;;  %v862_v10 = vsel %vm854_vm6, %v860_v25, %v849_v8  ;;  %v863_v17 = vsel %vm855_vm7, %v860_v25, %v850_v43  ;;  %v864_v26 = vsel %vm856_vm8, %v860_v25, %v851_v9 }
 0x153   : >> { %v873_v44 = vsel %vm865_vm9, %v872_v16, %v861_v54  ;;  %v874_v55 = vsel %vm866_vm10, %v872_v16, %v862_v10  ;;  %v875_v18 = vsel %vm867_vm11, %v872_v16, %v863_v17  ;;  %v876_v27 = vsel %vm868_vm12, %v872_v16, %v864_v26 }
 0x154   : >> { %vm879_vm15 = vcmp.eq.f32.partialorder %v2409_v32, 34.0  ;;  %vm880_vm0 = vcmp.eq.f32.partialorder %v2411_v41, 34.0  ;;  %v884_v19 = vrot.slane %v2684_v53, %v2292_v35  ;;  %vm889_vm1 = vcmp.eq.f32.partialorder %v2405_v30, 35.0 }
 0x155   : >> { %vm890_vm2 = vcmp.eq.f32.partialorder %v2407_v31, 35.0  ;;  %vm891_vm3 = vcmp.eq.f32.partialorder %v2409_v32, 35.0  ;;  %vm892_vm4 = vcmp.eq.f32.partialorder %v2411_v41, 35.0  ;;  %v896_v20 = vrot.slane %v2684_v53, %v2295_v36 }
 0x156   : >> { %v885_v56 = vsel %vm877_vm13, %v884_v19, %v873_v44  ;;  %v886_v28 = vsel %vm878_vm14, %v884_v19, %v874_v55  ;;  %v887_v45 = vsel %vm879_vm15, %v884_v19, %v875_v18  ;;  %v888_v21 = vsel %vm880_vm0, %v884_v19, %v876_v27 }
 0x157   : >> { %v897_v22 = vsel %vm889_vm1, %v896_v20, %v885_v56  ;;  %v898_v29 = vsel %vm890_vm2, %v896_v20, %v886_v28  ;;  %v899_v61 = vsel %vm891_vm3, %v896_v20, %v887_v45  ;;  %v900_v23 = vsel %vm892_vm4, %v896_v20, %v888_v21 }
 0x158   : >> { %vm901_vm5 = vcmp.eq.f32.partialorder %v2405_v30, 36.0  ;;  %vm902_vm6 = vcmp.eq.f32.partialorder %v2407_v31, 36.0  ;;  %vm903_vm7 = vcmp.eq.f32.partialorder %v2409_v32, 36.0  ;;  %vm904_vm8 = vcmp.eq.f32.partialorder %v2411_v41, 36.0 }
 0x159   : >> { %v908_v46 = vrot.slane %v2684_v53, %v2298_v37  ;;  %vm913_vm9 = vcmp.eq.f32.partialorder %v2405_v30, 37.0  ;;  %vm914_vm10 = vcmp.eq.f32.partialorder %v2407_v31, 37.0  ;;  %vm915_vm11 = vcmp.eq.f32.partialorder %v2409_v32, 37.0 }
 0x15a   : >> { %vm916_vm12 = vcmp.eq.f32.partialorder %v2411_v41, 37.0  ;;  %v920_v50 = vrot.slane %v2684_v53, %v2301_v38  ;;  %vm925_vm13 = vcmp.eq.f32.partialorder %v2405_v30, 38.0  ;;  %vm926_vm14 = vcmp.eq.f32.partialorder %v2407_v31, 38.0 }
 0x15b   : >> { %v909_v24 = vsel %vm901_vm5, %v908_v46, %v897_v22  ;;  %v910_v63 = vsel %vm902_vm6, %v908_v46, %v898_v29  ;;  %v911_v58 = vsel %vm903_vm7, %v908_v46, %v899_v61  ;;  %v912_v51 = vsel %vm904_vm8, %v908_v46, %v900_v23 }
 0x15c   : >> { %v921_v59 = vsel %vm913_vm9, %v920_v50, %v909_v24  ;;  %v922_v47 = vsel %vm914_vm10, %v920_v50, %v910_v63  ;;  %v923_v0 = vsel %vm915_vm11, %v920_v50, %v911_v58  ;;  %v924_v52 = vsel %vm916_vm12, %v920_v50, %v912_v51 }
 0x15d   : >> { %vm927_vm15 = vcmp.eq.f32.partialorder %v2409_v32, 38.0  ;;  %vm928_vm0 = vcmp.eq.f32.partialorder %v2411_v41, 38.0  ;;  %v932_v57 = vrot.slane %v2684_v53, %v2304_v39  ;;  %vm937_vm1 = vcmp.eq.f32.partialorder %v2405_v30, 39.0 }
 0x15e   : >> { %vm938_vm2 = vcmp.eq.f32.partialorder %v2407_v31, 39.0  ;;  %vm939_vm3 = vcmp.eq.f32.partialorder %v2409_v32, 39.0  ;;  %vm940_vm4 = vcmp.eq.f32.partialorder %v2411_v41, 39.0  ;;  %v944_v60 = vrot.slane %v2684_v53, %v2307_v40 }
 0x15f   : >> { %v933_v62 = vsel %vm925_vm13, %v932_v57, %v921_v59  ;;  %v934_v2 = vsel %vm926_vm14, %v932_v57, %v922_v47  ;;  %v935_v1 = vsel %vm927_vm15, %v932_v57, %v923_v0  ;;  %v936_v48 = vsel %vm928_vm0, %v932_v57, %v924_v52  ;;  %v2806_v47 = vld [vmem:[%s3288_s3 + $0x30] sm:$0xff] }
 0x160   : >> { %v945_v4 = vsel %vm937_vm1, %v944_v60, %v933_v62  ;;  %v946_v11 = vsel %vm938_vm2, %v944_v60, %v934_v2  ;;  %v947_v5 = vsel %vm939_vm3, %v944_v60, %v935_v1  ;;  %v948_v49 = vsel %vm940_vm4, %v944_v60, %v936_v48 }
 0x161   : >> { %vm950_vm5 = vcmp.eq.f32.partialorder %v2405_v30, 40.0  ;;  %vm951_vm6 = vcmp.eq.f32.partialorder %v2407_v31, 40.0  ;;  %vm952_vm7 = vcmp.eq.f32.partialorder %v2409_v32, 40.0  ;;  %vm953_vm8 = vcmp.eq.f32.partialorder %v2411_v41, 40.0 }
 0x162   : >> { %v957_v42 = vrot.slane %v2745_v3, %v2286_v33  ;;  %vm962_vm9 = vcmp.eq.f32.partialorder %v2405_v30, 41.0  ;;  %vm963_vm10 = vcmp.eq.f32.partialorder %v2407_v31, 41.0  ;;  %vm964_vm11 = vcmp.eq.f32.partialorder %v2409_v32, 41.0 }
 0x163   : >> { %vm965_vm12 = vcmp.eq.f32.partialorder %v2411_v41, 41.0  ;;  %v969_v12 = vrot.slane %v2745_v3, %v2289_v34  ;;  %vm974_vm13 = vcmp.eq.f32.partialorder %v2405_v30, 42.0  ;;  %vm975_vm14 = vcmp.eq.f32.partialorder %v2407_v31, 42.0 }
 0x164   : >> { %v958_v6 = vsel %vm950_vm5, %v957_v42, %v945_v4  ;;  %v959_v7 = vsel %vm951_vm6, %v957_v42, %v946_v11  ;;  %v960_v53 = vsel %vm952_vm7, %v957_v42, %v947_v5  ;;  %v961_v15 = vsel %vm953_vm8, %v957_v42, %v948_v49 }
 0x165   : >> { %v970_v8 = vsel %vm962_vm9, %v969_v12, %v958_v6  ;;  %v971_v43 = vsel %vm963_vm10, %v969_v12, %v959_v7  ;;  %v972_v9 = vsel %vm964_vm11, %v969_v12, %v960_v53  ;;  %v973_v25 = vsel %vm965_vm12, %v969_v12, %v961_v15 }
 0x166   : >> { %vm976_vm15 = vcmp.eq.f32.partialorder %v2409_v32, 42.0  ;;  %vm977_vm0 = vcmp.eq.f32.partialorder %v2411_v41, 42.0  ;;  %v981_v16 = vrot.slane %v2745_v3, %v2292_v35  ;;  %vm986_vm1 = vcmp.eq.f32.partialorder %v2405_v30, 43.0 }
 0x167   : >> { %vm987_vm2 = vcmp.eq.f32.partialorder %v2407_v31, 43.0  ;;  %vm988_vm3 = vcmp.eq.f32.partialorder %v2409_v32, 43.0  ;;  %vm989_vm4 = vcmp.eq.f32.partialorder %v2411_v41, 43.0  ;;  %v993_v54 = vrot.slane %v2745_v3, %v2295_v36 }
 0x168   : >> { %v982_v10 = vsel %vm974_vm13, %v981_v16, %v970_v8  ;;  %v983_v17 = vsel %vm975_vm14, %v981_v16, %v971_v43  ;;  %v984_v26 = vsel %vm976_vm15, %v981_v16, %v972_v9  ;;  %v985_v44 = vsel %vm977_vm0, %v981_v16, %v973_v25 }
 0x169   : >> { %v994_v55 = vsel %vm986_vm1, %v993_v54, %v982_v10  ;;  %v995_v18 = vsel %vm987_vm2, %v993_v54, %v983_v17  ;;  %v996_v27 = vsel %vm988_vm3, %v993_v54, %v984_v26  ;;  %v997_v19 = vsel %vm989_vm4, %v993_v54, %v985_v44 }
 0x16a   : >> { %vm998_vm5 = vcmp.eq.f32.partialorder %v2405_v30, 44.0  ;;  %vm999_vm6 = vcmp.eq.f32.partialorder %v2407_v31, 44.0  ;;  %vm1000_vm7 = vcmp.eq.f32.partialorder %v2409_v32, 44.0  ;;  %vm1001_vm8 = vcmp.eq.f32.partialorder %v2411_v41, 44.0 }
 0x16b   : >> { %v1005_v20 = vrot.slane %v2745_v3, %v2298_v37  ;;  %vm1010_vm9 = vcmp.eq.f32.partialorder %v2405_v30, 45.0  ;;  %vm1011_vm10 = vcmp.eq.f32.partialorder %v2407_v31, 45.0  ;;  %vm1012_vm11 = vcmp.eq.f32.partialorder %v2409_v32, 45.0 }
 0x16c   : >> { %vm1013_vm12 = vcmp.eq.f32.partialorder %v2411_v41, 45.0  ;;  %v1017_v56 = vrot.slane %v2745_v3, %v2301_v38  ;;  %vm1022_vm13 = vcmp.eq.f32.partialorder %v2405_v30, 46.0  ;;  %vm1023_vm14 = vcmp.eq.f32.partialorder %v2407_v31, 46.0 }
 0x16d   : >> { %v1006_v28 = vsel %vm998_vm5, %v1005_v20, %v994_v55  ;;  %v1007_v45 = vsel %vm999_vm6, %v1005_v20, %v995_v18  ;;  %v1008_v21 = vsel %vm1000_vm7, %v1005_v20, %v996_v27  ;;  %v1009_v22 = vsel %vm1001_vm8, %v1005_v20, %v997_v19 }
 0x16e   : >> { %v1018_v29 = vsel %vm1010_vm9, %v1017_v56, %v1006_v28  ;;  %v1019_v61 = vsel %vm1011_vm10, %v1017_v56, %v1007_v45  ;;  %v1020_v23 = vsel %vm1012_vm11, %v1017_v56, %v1008_v21  ;;  %v1021_v46 = vsel %vm1013_vm12, %v1017_v56, %v1009_v22 }
 0x16f   : >> { %vm1024_vm15 = vcmp.eq.f32.partialorder %v2409_v32, 46.0  ;;  %vm1025_vm0 = vcmp.eq.f32.partialorder %v2411_v41, 46.0  ;;  %v1029_v50 = vrot.slane %v2745_v3, %v2304_v39  ;;  %vm1034_vm1 = vcmp.eq.f32.partialorder %v2405_v30, 47.0 }
 0x170   : >> { %vm1035_vm2 = vcmp.eq.f32.partialorder %v2407_v31, 47.0  ;;  %vm1036_vm3 = vcmp.eq.f32.partialorder %v2409_v32, 47.0  ;;  %vm1037_vm4 = vcmp.eq.f32.partialorder %v2411_v41, 47.0  ;;  %v1041_v24 = vrot.slane %v2745_v3, %v2307_v40 }
 0x171   : >> { %v1030_v63 = vsel %vm1022_vm13, %v1029_v50, %v1018_v29  ;;  %v1031_v58 = vsel %vm1023_vm14, %v1029_v50, %v1019_v61  ;;  %v1032_v51 = vsel %vm1024_vm15, %v1029_v50, %v1020_v23  ;;  %v1033_v59 = vsel %vm1025_vm0, %v1029_v50, %v1021_v46  ;;  %v2867_v61 = vld [vmem:[%s3288_s3 + $0x38] sm:$0xff] }
 0x172   : >> { %v1042_v0 = vsel %vm1034_vm1, %v1041_v24, %v1030_v63  ;;  %v1043_v52 = vsel %vm1035_vm2, %v1041_v24, %v1031_v58  ;;  %v1044_v57 = vsel %vm1036_vm3, %v1041_v24, %v1032_v51  ;;  %v1045_v60 = vsel %vm1037_vm4, %v1041_v24, %v1033_v59 }
 0x173   : >> { %vm1047_vm5 = vcmp.eq.f32.partialorder %v2405_v30, 48.0  ;;  %vm1048_vm6 = vcmp.eq.f32.partialorder %v2407_v31, 48.0  ;;  %vm1049_vm7 = vcmp.eq.f32.partialorder %v2409_v32, 48.0  ;;  %vm1050_vm8 = vcmp.eq.f32.partialorder %v2411_v41, 48.0 }
 0x174   : >> { %v1054_v62 = vrot.slane %v2806_v47, %v2286_v33  ;;  %vm1059_vm9 = vcmp.eq.f32.partialorder %v2405_v30, 49.0  ;;  %vm1060_vm10 = vcmp.eq.f32.partialorder %v2407_v31, 49.0  ;;  %vm1061_vm11 = vcmp.eq.f32.partialorder %v2409_v32, 49.0 }
 0x175   : >> { %vm1062_vm12 = vcmp.eq.f32.partialorder %v2411_v41, 49.0  ;;  %v1066_v2 = vrot.slane %v2806_v47, %v2289_v34  ;;  %vm1071_vm13 = vcmp.eq.f32.partialorder %v2405_v30, 50.0  ;;  %vm1072_vm14 = vcmp.eq.f32.partialorder %v2407_v31, 50.0 }
 0x176   : >> { %v1055_v1 = vsel %vm1047_vm5, %v1054_v62, %v1042_v0  ;;  %v1056_v48 = vsel %vm1048_vm6, %v1054_v62, %v1043_v52  ;;  %v1057_v3 = vsel %vm1049_vm7, %v1054_v62, %v1044_v57  ;;  %v1058_v4 = vsel %vm1050_vm8, %v1054_v62, %v1045_v60 }
 0x177   : >> { %v1067_v11 = vsel %vm1059_vm9, %v1066_v2, %v1055_v1  ;;  %v1068_v5 = vsel %vm1060_vm10, %v1066_v2, %v1056_v48  ;;  %v1069_v49 = vsel %vm1061_vm11, %v1066_v2, %v1057_v3  ;;  %v1070_v42 = vsel %vm1062_vm12, %v1066_v2, %v1058_v4 }
 0x178   : >> { %vm1073_vm15 = vcmp.eq.f32.partialorder %v2409_v32, 50.0  ;;  %vm1074_vm0 = vcmp.eq.f32.partialorder %v2411_v41, 50.0  ;;  %v1078_v12 = vrot.slane %v2806_v47, %v2292_v35  ;;  %vm1083_vm1 = vcmp.eq.f32.partialorder %v2405_v30, 51.0 }
 0x179   : >> { %vm1084_vm2 = vcmp.eq.f32.partialorder %v2407_v31, 51.0  ;;  %vm1085_vm3 = vcmp.eq.f32.partialorder %v2409_v32, 51.0  ;;  %vm1086_vm4 = vcmp.eq.f32.partialorder %v2411_v41, 51.0  ;;  %v1090_v6 = vrot.slane %v2806_v47, %v2295_v36 }
 0x17a   : >> { %v1079_v7 = vsel %vm1071_vm13, %v1078_v12, %v1067_v11  ;;  %v1080_v53 = vsel %vm1072_vm14, %v1078_v12, %v1068_v5  ;;  %v1081_v15 = vsel %vm1073_vm15, %v1078_v12, %v1069_v49  ;;  %v1082_v8 = vsel %vm1074_vm0, %v1078_v12, %v1070_v42 }
 0x17b   : >> { %v1091_v43 = vsel %vm1083_vm1, %v1090_v6, %v1079_v7  ;;  %v1092_v9 = vsel %vm1084_vm2, %v1090_v6, %v1080_v53  ;;  %v1093_v25 = vsel %vm1085_vm3, %v1090_v6, %v1081_v15  ;;  %v1094_v16 = vsel %vm1086_vm4, %v1090_v6, %v1082_v8 }
 0x17c   : >> { %vm1095_vm5 = vcmp.eq.f32.partialorder %v2405_v30, 52.0  ;;  %vm1096_vm6 = vcmp.eq.f32.partialorder %v2407_v31, 52.0  ;;  %vm1097_vm7 = vcmp.eq.f32.partialorder %v2409_v32, 52.0  ;;  %vm1098_vm8 = vcmp.eq.f32.partialorder %v2411_v41, 52.0 }
 0x17d   : >> { %v1102_v54 = vrot.slane %v2806_v47, %v2298_v37  ;;  %vm1107_vm9 = vcmp.eq.f32.partialorder %v2405_v30, 53.0  ;;  %vm1108_vm10 = vcmp.eq.f32.partialorder %v2407_v31, 53.0  ;;  %vm1109_vm11 = vcmp.eq.f32.partialorder %v2409_v32, 53.0 }
 0x17e   : >> { %vm1110_vm12 = vcmp.eq.f32.partialorder %v2411_v41, 53.0  ;;  %v1114_v10 = vrot.slane %v2806_v47, %v2301_v38  ;;  %vm1119_vm13 = vcmp.eq.f32.partialorder %v2405_v30, 54.0  ;;  %vm1120_vm14 = vcmp.eq.f32.partialorder %v2407_v31, 54.0 }
 0x17f   : >> { %v1103_v17 = vsel %vm1095_vm5, %v1102_v54, %v1091_v43  ;;  %v1104_v26 = vsel %vm1096_vm6, %v1102_v54, %v1092_v9  ;;  %v1105_v44 = vsel %vm1097_vm7, %v1102_v54, %v1093_v25  ;;  %v1106_v55 = vsel %vm1098_vm8, %v1102_v54, %v1094_v16 }
 0x180   : >> { %v1115_v18 = vsel %vm1107_vm9, %v1114_v10, %v1103_v17  ;;  %v1116_v27 = vsel %vm1108_vm10, %v1114_v10, %v1104_v26  ;;  %v1117_v19 = vsel %vm1109_vm11, %v1114_v10, %v1105_v44  ;;  %v1118_v20 = vsel %vm1110_vm12, %v1114_v10, %v1106_v55 }
 0x181   : >> { %vm1121_vm15 = vcmp.eq.f32.partialorder %v2409_v32, 54.0  ;;  %vm1122_vm0 = vcmp.eq.f32.partialorder %v2411_v41, 54.0  ;;  %v1126_v56 = vrot.slane %v2806_v47, %v2304_v39  ;;  %vm1131_vm1 = vcmp.eq.f32.partialorder %v2405_v30, 55.0 }
 0x182   : >> { %vm1132_vm2 = vcmp.eq.f32.partialorder %v2407_v31, 55.0  ;;  %vm1133_vm3 = vcmp.eq.f32.partialorder %v2409_v32, 55.0  ;;  %vm1134_vm4 = vcmp.eq.f32.partialorder %v2411_v41, 55.0  ;;  %v1138_v28 = vrot.slane %v2806_v47, %v2307_v40 }
 0x183   : >> { %v1127_v45 = vsel %vm1119_vm13, %v1126_v56, %v1115_v18  ;;  %v1128_v21 = vsel %vm1120_vm14, %v1126_v56, %v1116_v27  ;;  %v1129_v22 = vsel %vm1121_vm15, %v1126_v56, %v1117_v19  ;;  %v1130_v29 = vsel %vm1122_vm0, %v1126_v56, %v1118_v20  ;;  %v2928_v27 = vld [vmem:[%s3288_s3 + $0x40] sm:$0xff] }
 0x184   : >> { %v1139_v23 = vsel %vm1131_vm1, %v1138_v28, %v1127_v45  ;;  %v1140_v46 = vsel %vm1132_vm2, %v1138_v28, %v1128_v21  ;;  %v1141_v50 = vsel %vm1133_vm3, %v1138_v28, %v1129_v22  ;;  %v1142_v24 = vsel %vm1134_vm4, %v1138_v28, %v1130_v29 }
 0x185   : >> { %vm1144_vm5 = vcmp.eq.f32.partialorder %v2405_v30, 56.0  ;;  %vm1145_vm6 = vcmp.eq.f32.partialorder %v2407_v31, 56.0  ;;  %vm1146_vm7 = vcmp.eq.f32.partialorder %v2409_v32, 56.0  ;;  %vm1147_vm8 = vcmp.eq.f32.partialorder %v2411_v41, 56.0 }
 0x186   : >> { %v1151_v63 = vrot.slane %v2867_v61, %v2286_v33  ;;  %vm1156_vm9 = vcmp.eq.f32.partialorder %v2405_v30, 57.0  ;;  %vm1157_vm10 = vcmp.eq.f32.partialorder %v2407_v31, 57.0  ;;  %vm1158_vm11 = vcmp.eq.f32.partialorder %v2409_v32, 57.0 }
 0x187   : >> { %vm1159_vm12 = vcmp.eq.f32.partialorder %v2411_v41, 57.0  ;;  %v1163_v58 = vrot.slane %v2867_v61, %v2289_v34  ;;  %vm1168_vm13 = vcmp.eq.f32.partialorder %v2405_v30, 58.0  ;;  %vm1169_vm14 = vcmp.eq.f32.partialorder %v2407_v31, 58.0 }
 0x188   : >> { %v1152_v51 = vsel %vm1144_vm5, %v1151_v63, %v1139_v23  ;;  %v1153_v59 = vsel %vm1145_vm6, %v1151_v63, %v1140_v46  ;;  %v1154_v47 = vsel %vm1146_vm7, %v1151_v63, %v1141_v50  ;;  %v1155_v0 = vsel %vm1147_vm8, %v1151_v63, %v1142_v24 }
 0x189   : >> { %v1164_v52 = vsel %vm1156_vm9, %v1163_v58, %v1152_v51  ;;  %v1165_v57 = vsel %vm1157_vm10, %v1163_v58, %v1153_v59  ;;  %v1166_v60 = vsel %vm1158_vm11, %v1163_v58, %v1154_v47  ;;  %v1167_v62 = vsel %vm1159_vm12, %v1163_v58, %v1155_v0 }
 0x18a   : >> { %vm1170_vm15 = vcmp.eq.f32.partialorder %v2409_v32, 58.0  ;;  %vm1171_vm0 = vcmp.eq.f32.partialorder %v2411_v41, 58.0  ;;  %v1175_v2 = vrot.slane %v2867_v61, %v2292_v35  ;;  %vm1180_vm1 = vcmp.eq.f32.partialorder %v2405_v30, 59.0 }
 0x18b   : >> { %vm1181_vm2 = vcmp.eq.f32.partialorder %v2407_v31, 59.0  ;;  %vm1182_vm3 = vcmp.eq.f32.partialorder %v2409_v32, 59.0  ;;  %vm1183_vm4 = vcmp.eq.f32.partialorder %v2411_v41, 59.0  ;;  %v1187_v1 = vrot.slane %v2867_v61, %v2295_v36 }
 0x18c   : >> { %v1176_v48 = vsel %vm1168_vm13, %v1175_v2, %v1164_v52  ;;  %v1177_v3 = vsel %vm1169_vm14, %v1175_v2, %v1165_v57  ;;  %v1178_v4 = vsel %vm1170_vm15, %v1175_v2, %v1166_v60  ;;  %v1179_v11 = vsel %vm1171_vm0, %v1175_v2, %v1167_v62 }
 0x18d   : >> { %v1188_v5 = vsel %vm1180_vm1, %v1187_v1, %v1176_v48  ;;  %v1189_v49 = vsel %vm1181_vm2, %v1187_v1, %v1177_v3  ;;  %v1190_v42 = vsel %vm1182_vm3, %v1187_v1, %v1178_v4  ;;  %v1191_v12 = vsel %vm1183_vm4, %v1187_v1, %v1179_v11 }
 0x18e   : >> { %vm1192_vm5 = vcmp.eq.f32.partialorder %v2405_v30, 60.0  ;;  %vm1193_vm6 = vcmp.eq.f32.partialorder %v2407_v31, 60.0  ;;  %vm1194_vm7 = vcmp.eq.f32.partialorder %v2409_v32, 60.0  ;;  %vm1195_vm8 = vcmp.eq.f32.partialorder %v2411_v41, 60.0 }
 0x18f   : >> { %v1199_v6 = vrot.slane %v2867_v61, %v2298_v37  ;;  %vm1204_vm9 = vcmp.eq.f32.partialorder %v2405_v30, 61.0  ;;  %vm1205_vm10 = vcmp.eq.f32.partialorder %v2407_v31, 61.0  ;;  %vm1206_vm11 = vcmp.eq.f32.partialorder %v2409_v32, 61.0 }
 0x190   : >> { %vm1207_vm12 = vcmp.eq.f32.partialorder %v2411_v41, 61.0  ;;  %v1211_v7 = vrot.slane %v2867_v61, %v2301_v38  ;;  %vm1216_vm13 = vcmp.eq.f32.partialorder %v2405_v30, 62.0  ;;  %vm1217_vm14 = vcmp.eq.f32.partialorder %v2407_v31, 62.0 }
 0x191   : >> { %v1200_v53 = vsel %vm1192_vm5, %v1199_v6, %v1188_v5  ;;  %v1201_v15 = vsel %vm1193_vm6, %v1199_v6, %v1189_v49  ;;  %v1202_v8 = vsel %vm1194_vm7, %v1199_v6, %v1190_v42  ;;  %v1203_v43 = vsel %vm1195_vm8, %v1199_v6, %v1191_v12 }
 0x192   : >> { %v1212_v9 = vsel %vm1204_vm9, %v1211_v7, %v1200_v53  ;;  %v1213_v25 = vsel %vm1205_vm10, %v1211_v7, %v1201_v15  ;;  %v1214_v16 = vsel %vm1206_vm11, %v1211_v7, %v1202_v8  ;;  %v1215_v54 = vsel %vm1207_vm12, %v1211_v7, %v1203_v43  ;;  %v2981_v15 = vld [vmem:[%s3288_s3 + $0x48] sm:$0xff] }
 0x193   : >> { %vm1218_vm15 = vcmp.eq.f32.partialorder %v2409_v32, 62.0  ;;  %vm1219_vm0 = vcmp.eq.f32.partialorder %v2411_v41, 62.0  ;;  %v1223_v10 = vrot.slane %v2867_v61, %v2304_v39  ;;  %vm1228_vm1 = vcmp.eq.f32.partialorder %v2405_v30, 63.0 }
 0x194   : >> { %vm1229_vm2 = vcmp.eq.f32.partialorder %v2407_v31, 63.0  ;;  %vm1230_vm3 = vcmp.eq.f32.partialorder %v2409_v32, 63.0  ;;  %vm1231_vm4 = vcmp.eq.f32.partialorder %v2411_v41, 63.0  ;;  %v1235_v17 = vrot.slane %v2867_v61, %v2307_v40 }
 0x195   : >> { %v1224_v26 = vsel %vm1216_vm13, %v1223_v10, %v1212_v9  ;;  %v1225_v44 = vsel %vm1217_vm14, %v1223_v10, %v1213_v25  ;;  %v1226_v55 = vsel %vm1218_vm15, %v1223_v10, %v1214_v16  ;;  %v1227_v18 = vsel %vm1219_vm0, %v1223_v10, %v1215_v54 }
 0x196   : >> { %v1236_v19 = vsel %vm1228_vm1, %v1235_v17, %v1224_v26  ;;  %v1237_v20 = vsel %vm1229_vm2, %v1235_v17, %v1225_v44  ;;  %v1238_v56 = vsel %vm1230_vm3, %v1235_v17, %v1226_v55  ;;  %v1239_v28 = vsel %vm1231_vm4, %v1235_v17, %v1227_v18 }
 0x197   : >> { %vm1241_vm5 = vcmp.eq.f32.partialorder %v2405_v30, 64.0  ;;  %vm1242_vm6 = vcmp.eq.f32.partialorder %v2407_v31, 64.0  ;;  %vm1243_vm7 = vcmp.eq.f32.partialorder %v2409_v32, 64.0  ;;  %vm1244_vm8 = vcmp.eq.f32.partialorder %v2411_v41, 64.0 }
 0x198   : >> { %v1248_v45 = vrot.slane %v2928_v27, %v2286_v33  ;;  %vm1253_vm9 = vcmp.eq.f32.partialorder %v2405_v30, 65.0  ;;  %vm1254_vm10 = vcmp.eq.f32.partialorder %v2407_v31, 65.0  ;;  %vm1255_vm11 = vcmp.eq.f32.partialorder %v2409_v32, 65.0 }
 0x199   : >> { %vm1256_vm12 = vcmp.eq.f32.partialorder %v2411_v41, 65.0  ;;  %v1260_v21 = vrot.slane %v2928_v27, %v2289_v34  ;;  %vm1265_vm13 = vcmp.eq.f32.partialorder %v2405_v30, 66.0  ;;  %vm1266_vm14 = vcmp.eq.f32.partialorder %v2407_v31, 66.0 }
 0x19a   : >> { %v1249_v22 = vsel %vm1241_vm5, %v1248_v45, %v1236_v19  ;;  %v1250_v29 = vsel %vm1242_vm6, %v1248_v45, %v1237_v20  ;;  %v1251_v61 = vsel %vm1243_vm7, %v1248_v45, %v1238_v56  ;;  %v1252_v23 = vsel %vm1244_vm8, %v1248_v45, %v1239_v28 }
 0x19b   : >> { %v1261_v46 = vsel %vm1253_vm9, %v1260_v21, %v1249_v22  ;;  %v1262_v50 = vsel %vm1254_vm10, %v1260_v21, %v1250_v29  ;;  %v1263_v24 = vsel %vm1255_vm11, %v1260_v21, %v1251_v61  ;;  %v1264_v63 = vsel %vm1256_vm12, %v1260_v21, %v1252_v23 }
 0x19c   : >> { %vm1267_vm15 = vcmp.eq.f32.partialorder %v2409_v32, 66.0  ;;  %vm1268_vm0 = vcmp.eq.f32.partialorder %v2411_v41, 66.0  ;;  %v1272_v58 = vrot.slane %v2928_v27, %v2292_v35  ;;  %vm1277_vm1 = vcmp.eq.f32.partialorder %v2405_v30, 67.0 }
 0x19d   : >> { %vm1278_vm2 = vcmp.eq.f32.partialorder %v2407_v31, 67.0  ;;  %vm1279_vm3 = vcmp.eq.f32.partialorder %v2409_v32, 67.0  ;;  %vm1280_vm4 = vcmp.eq.f32.partialorder %v2411_v41, 67.0  ;;  %v1284_v51 = vrot.slane %v2928_v27, %v2295_v36 }
 0x19e   : >> { %v1273_v59 = vsel %vm1265_vm13, %v1272_v58, %v1261_v46  ;;  %v1274_v47 = vsel %vm1266_vm14, %v1272_v58, %v1262_v50  ;;  %v1275_v0 = vsel %vm1267_vm15, %v1272_v58, %v1263_v24  ;;  %v1276_v52 = vsel %vm1268_vm0, %v1272_v58, %v1264_v63 }
 0x19f   : >> { %v1285_v57 = vsel %vm1277_vm1, %v1284_v51, %v1273_v59  ;;  %v1286_v60 = vsel %vm1278_vm2, %v1284_v51, %v1274_v47  ;;  %v1287_v62 = vsel %vm1279_vm3, %v1284_v51, %v1275_v0  ;;  %v1288_v2 = vsel %vm1280_vm4, %v1284_v51, %v1276_v52 }
 0x1a0   : >> { %vm1289_vm5 = vcmp.eq.f32.partialorder %v2405_v30, 68.0  ;;  %vm1290_vm6 = vcmp.eq.f32.partialorder %v2407_v31, 68.0  ;;  %vm1291_vm7 = vcmp.eq.f32.partialorder %v2409_v32, 68.0  ;;  %vm1292_vm8 = vcmp.eq.f32.partialorder %v2411_v41, 68.0 }
 0x1a1   : >> { %v1296_v1 = vrot.slane %v2928_v27, %v2298_v37  ;;  %vm1301_vm9 = vcmp.eq.f32.partialorder %v2405_v30, 69.0  ;;  %vm1302_vm10 = vcmp.eq.f32.partialorder %v2407_v31, 69.0  ;;  %vm1303_vm11 = vcmp.eq.f32.partialorder %v2409_v32, 69.0 }
 0x1a2   : >> { %vm1304_vm12 = vcmp.eq.f32.partialorder %v2411_v41, 69.0  ;;  %v1308_v48 = vrot.slane %v2928_v27, %v2301_v38  ;;  %vm1313_vm13 = vcmp.eq.f32.partialorder %v2405_v30, 70.0  ;;  %vm1314_vm14 = vcmp.eq.f32.partialorder %v2407_v31, 70.0 }
 0x1a3   : >> { %v1297_v3 = vsel %vm1289_vm5, %v1296_v1, %v1285_v57  ;;  %v1298_v4 = vsel %vm1290_vm6, %v1296_v1, %v1286_v60  ;;  %v1299_v11 = vsel %vm1291_vm7, %v1296_v1, %v1287_v62  ;;  %v1300_v5 = vsel %vm1292_vm8, %v1296_v1, %v1288_v2 }
 0x1a4   : >> { %v1309_v49 = vsel %vm1301_vm9, %v1308_v48, %v1297_v3  ;;  %v1310_v42 = vsel %vm1302_vm10, %v1308_v48, %v1298_v4  ;;  %v1320_v12 = vrot.slane %v2928_v27, %v2304_v39  ;;  %v1311_v6 = vsel %vm1303_vm11, %v1308_v48, %v1299_v11  ;;  %v3034_v4 = vld [vmem:[%s3288_s3 + $0x50] sm:$0xff] }
 0x1a5   : >> { %v1312_v7 = vsel %vm1304_vm12, %v1308_v48, %v1300_v5  ;;  %vm1315_vm15 = vcmp.eq.f32.partialorder %v2409_v32, 70.0  ;;  %vm1316_vm0 = vcmp.eq.f32.partialorder %v2411_v41, 70.0  ;;  %v1332_v53 = vrot.slane %v2928_v27, %v2307_v40 }
 0x1a6   : >> { %v1321_v8 = vsel %vm1313_vm13, %v1320_v12, %v1309_v49  ;;  %v1322_v43 = vsel %vm1314_vm14, %v1320_v12, %v1310_v42  ;;  %vm1325_vm1 = vcmp.eq.f32.partialorder %v2405_v30, 71.0  ;;  %vm1326_vm2 = vcmp.eq.f32.partialorder %v2407_v31, 71.0 }
 0x1a7   : >> { %v1323_v9 = vsel %vm1315_vm15, %v1320_v12, %v1311_v6  ;;  %v1324_v25 = vsel %vm1316_vm0, %v1320_v12, %v1312_v7  ;;  %vm1327_vm3 = vcmp.eq.f32.partialorder %v2409_v32, 71.0  ;;  %vm1328_vm4 = vcmp.eq.f32.partialorder %v2411_v41, 71.0 }
 0x1a8   : >> { %v1345_v16 = vrot.slane %v2981_v15, %v2286_v33  ;;  %v1333_v54 = vsel %vm1325_vm1, %v1332_v53, %v1321_v8  ;;  %v1334_v10 = vsel %vm1326_vm2, %v1332_v53, %v1322_v43  ;;  %vm1338_vm5 = vcmp.eq.f32.partialorder %v2405_v30, 72.0 }
 0x1a9   : >> { %vm1339_vm6 = vcmp.eq.f32.partialorder %v2407_v31, 72.0  ;;  %v1335_v17 = vsel %vm1327_vm3, %v1332_v53, %v1323_v9  ;;  %v1336_v26 = vsel %vm1328_vm4, %v1332_v53, %v1324_v25  ;;  %vm1340_vm7 = vcmp.eq.f32.partialorder %v2409_v32, 72.0 }
 0x1aa   : >> { %vm1341_vm8 = vcmp.eq.f32.partialorder %v2411_v41, 72.0  ;;  %v1357_v44 = vrot.slane %v2981_v15, %v2289_v34  ;;  %v1346_v55 = vsel %vm1338_vm5, %v1345_v16, %v1333_v54  ;;  %v1347_v18 = vsel %vm1339_vm6, %v1345_v16, %v1334_v10 }
 0x1ab   : >> { %vm1350_vm9 = vcmp.eq.f32.partialorder %v2405_v30, 73.0  ;;  %vm1351_vm10 = vcmp.eq.f32.partialorder %v2407_v31, 73.0  ;;  %v1348_v27 = vsel %vm1340_vm7, %v1345_v16, %v1335_v17  ;;  %v1349_v19 = vsel %vm1341_vm8, %v1345_v16, %v1336_v26 }
 0x1ac   : >> { %vm1352_vm11 = vcmp.eq.f32.partialorder %v2409_v32, 73.0  ;;  %vm1353_vm12 = vcmp.eq.f32.partialorder %v2411_v41, 73.0  ;;  %v1369_v20 = vrot.slane %v2981_v15, %v2292_v35  ;;  %v1358_v56 = vsel %vm1350_vm9, %v1357_v44, %v1346_v55 }
 0x1ad   : >> { %v1359_v28 = vsel %vm1351_vm10, %v1357_v44, %v1347_v18  ;;  %vm1362_vm13 = vcmp.eq.f32.partialorder %v2405_v30, 74.0  ;;  %vm1363_vm14 = vcmp.eq.f32.partialorder %v2407_v31, 74.0  ;;  %v1360_v45 = vsel %vm1352_vm11, %v1357_v44, %v1348_v27 }
 0x1ae   : >> { %v1361_v21 = vsel %vm1353_vm12, %v1357_v44, %v1349_v19  ;;  %vm1364_vm15 = vcmp.eq.f32.partialorder %v2409_v32, 74.0  ;;  %vm1365_vm0 = vcmp.eq.f32.partialorder %v2411_v41, 74.0  ;;  %v1381_v22 = vrot.slane %v2981_v15, %v2295_v36 }
 0x1af   : >> { %v1370_v29 = vsel %vm1362_vm13, %v1369_v20, %v1358_v56  ;;  %v1371_v61 = vsel %vm1363_vm14, %v1369_v20, %v1359_v28  ;;  %vm1374_vm1 = vcmp.eq.f32.partialorder %v2405_v30, 75.0  ;;  %vm1375_vm2 = vcmp.eq.f32.partialorder %v2407_v31, 75.0 }
 0x1b0   : >> { %v1372_v23 = vsel %vm1364_vm15, %v1369_v20, %v1360_v45  ;;  %v1373_v46 = vsel %vm1365_vm0, %v1369_v20, %v1361_v21  ;;  %vm1376_vm3 = vcmp.eq.f32.partialorder %v2409_v32, 75.0  ;;  %vm1377_vm4 = vcmp.eq.f32.partialorder %v2411_v41, 75.0 }
 0x1b1   : >> { %v1393_v50 = vrot.slane %v2981_v15, %v2298_v37  ;;  %v1382_v24 = vsel %vm1374_vm1, %v1381_v22, %v1370_v29  ;;  %v1383_v63 = vsel %vm1375_vm2, %v1381_v22, %v1371_v61  ;;  %vm1386_vm5 = vcmp.eq.f32.partialorder %v2405_v30, 76.0 }
 0x1b2   : >> { %vm1387_vm6 = vcmp.eq.f32.partialorder %v2407_v31, 76.0  ;;  %v1384_v58 = vsel %vm1376_vm3, %v1381_v22, %v1372_v23  ;;  %v1385_v51 = vsel %vm1377_vm4, %v1381_v22, %v1373_v46  ;;  %vm1388_vm7 = vcmp.eq.f32.partialorder %v2409_v32, 76.0 }
 0x1b3   : >> { %vm1389_vm8 = vcmp.eq.f32.partialorder %v2411_v41, 76.0  ;;  %v1405_v59 = vrot.slane %v2981_v15, %v2301_v38  ;;  %v1394_v47 = vsel %vm1386_vm5, %v1393_v50, %v1382_v24  ;;  %v1395_v0 = vsel %vm1387_vm6, %v1393_v50, %v1383_v63 }
 0x1b4   : >> { %vm1398_vm9 = vcmp.eq.f32.partialorder %v2405_v30, 77.0  ;;  %vm1399_vm10 = vcmp.eq.f32.partialorder %v2407_v31, 77.0  ;;  %v1396_v52 = vsel %vm1388_vm7, %v1393_v50, %v1384_v58  ;;  %v1397_v57 = vsel %vm1389_vm8, %v1393_v50, %v1385_v51 }
 0x1b5   : >> { %vm1400_vm11 = vcmp.eq.f32.partialorder %v2409_v32, 77.0  ;;  %vm1401_vm12 = vcmp.eq.f32.partialorder %v2411_v41, 77.0  ;;  %v1417_v60 = vrot.slane %v2981_v15, %v2304_v39  ;;  %v1406_v62 = vsel %vm1398_vm9, %v1405_v59, %v1394_v47 }
 0x1b6   : >> { %v1407_v2 = vsel %vm1399_vm10, %v1405_v59, %v1395_v0  ;;  %vm1410_vm13 = vcmp.eq.f32.partialorder %v2405_v30, 78.0  ;;  %vm1411_vm14 = vcmp.eq.f32.partialorder %v2407_v31, 78.0  ;;  %v1408_v1 = vsel %vm1400_vm11, %v1405_v59, %v1396_v52  ;;  %v3087_v0 = vld [vmem:[%s3288_s3 + $0x58] sm:$0xff] }
 0x1b7   : >> { %v1409_v48 = vsel %vm1401_vm12, %v1405_v59, %v1397_v57  ;;  %vm1412_vm15 = vcmp.eq.f32.partialorder %v2409_v32, 78.0  ;;  %vm1413_vm0 = vcmp.eq.f32.partialorder %v2411_v41, 78.0  ;;  %v1429_v3 = vrot.slane %v2981_v15, %v2307_v40 }
 0x1b8   : >> { %v1418_v11 = vsel %vm1410_vm13, %v1417_v60, %v1406_v62  ;;  %v1419_v5 = vsel %vm1411_vm14, %v1417_v60, %v1407_v2  ;;  %vm1422_vm1 = vcmp.eq.f32.partialorder %v2405_v30, 79.0  ;;  %vm1423_vm2 = vcmp.eq.f32.partialorder %v2407_v31, 79.0 }
 0x1b9   : >> { %v1420_v49 = vsel %vm1412_vm15, %v1417_v60, %v1408_v1  ;;  %v1421_v42 = vsel %vm1413_vm0, %v1417_v60, %v1409_v48  ;;  %vm1424_vm3 = vcmp.eq.f32.partialorder %v2409_v32, 79.0  ;;  %vm1425_vm4 = vcmp.eq.f32.partialorder %v2411_v41, 79.0 }
 0x1ba   : >> { %v1442_v12 = vrot.slane %v3034_v4, %v2286_v33  ;;  %v1430_v6 = vsel %vm1422_vm1, %v1429_v3, %v1418_v11  ;;  %v1431_v7 = vsel %vm1423_vm2, %v1429_v3, %v1419_v5  ;;  %vm1435_vm5 = vcmp.eq.f32.partialorder %v2405_v30, 80.0 }
 0x1bb   : >> { %vm1436_vm6 = vcmp.eq.f32.partialorder %v2407_v31, 80.0  ;;  %v1432_v53 = vsel %vm1424_vm3, %v1429_v3, %v1420_v49  ;;  %v1433_v15 = vsel %vm1425_vm4, %v1429_v3, %v1421_v42  ;;  %vm1437_vm7 = vcmp.eq.f32.partialorder %v2409_v32, 80.0 }
 0x1bc   : >> { %vm1438_vm8 = vcmp.eq.f32.partialorder %v2411_v41, 80.0  ;;  %v1454_v8 = vrot.slane %v3034_v4, %v2289_v34  ;;  %v1443_v43 = vsel %vm1435_vm5, %v1442_v12, %v1430_v6  ;;  %v1444_v9 = vsel %vm1436_vm6, %v1442_v12, %v1431_v7 }
 0x1bd   : >> { %vm1447_vm9 = vcmp.eq.f32.partialorder %v2405_v30, 81.0  ;;  %vm1448_vm10 = vcmp.eq.f32.partialorder %v2407_v31, 81.0  ;;  %v1445_v25 = vsel %vm1437_vm7, %v1442_v12, %v1432_v53  ;;  %v1446_v16 = vsel %vm1438_vm8, %v1442_v12, %v1433_v15 }
 0x1be   : >> { %vm1449_vm11 = vcmp.eq.f32.partialorder %v2409_v32, 81.0  ;;  %vm1450_vm12 = vcmp.eq.f32.partialorder %v2411_v41, 81.0  ;;  %v1466_v54 = vrot.slane %v3034_v4, %v2292_v35  ;;  %v1455_v10 = vsel %vm1447_vm9, %v1454_v8, %v1443_v43 }
 0x1bf   : >> { %v1456_v17 = vsel %vm1448_vm10, %v1454_v8, %v1444_v9  ;;  %vm1459_vm13 = vcmp.eq.f32.partialorder %v2405_v30, 82.0  ;;  %vm1460_vm14 = vcmp.eq.f32.partialorder %v2407_v31, 82.0  ;;  %v1457_v26 = vsel %vm1449_vm11, %v1454_v8, %v1445_v25 }
 0x1c0   : >> { %v1458_v44 = vsel %vm1450_vm12, %v1454_v8, %v1446_v16  ;;  %vm1461_vm15 = vcmp.eq.f32.partialorder %v2409_v32, 82.0  ;;  %vm1462_vm0 = vcmp.eq.f32.partialorder %v2411_v41, 82.0  ;;  %v1478_v55 = vrot.slane %v3034_v4, %v2295_v36 }
 0x1c1   : >> { %v1467_v18 = vsel %vm1459_vm13, %v1466_v54, %v1455_v10  ;;  %v1468_v27 = vsel %vm1460_vm14, %v1466_v54, %v1456_v17  ;;  %vm1471_vm1 = vcmp.eq.f32.partialorder %v2405_v30, 83.0  ;;  %vm1472_vm2 = vcmp.eq.f32.partialorder %v2407_v31, 83.0  ;;  %v3118_v17 = vld [vmem:[%s2340_s20] sm:$0xff] }
 0x1c2   : >> { %v1469_v19 = vsel %vm1461_vm15, %v1466_v54, %v1457_v26  ;;  %v1470_v20 = vsel %vm1462_vm0, %v1466_v54, %v1458_v44  ;;  %vm1473_vm3 = vcmp.eq.f32.partialorder %v2409_v32, 83.0  ;;  %vm1474_vm4 = vcmp.eq.f32.partialorder %v2411_v41, 83.0  ;;  %v3122_v44 = vld [vmem:[%s2340_s20 + $0x8] sm:$0xff] }
 0x1c3   : >> { %v1490_v56 = vrot.slane %v3034_v4, %v2298_v37  ;;  %v1479_v28 = vsel %vm1471_vm1, %v1478_v55, %v1467_v18  ;;  %v1480_v45 = vsel %vm1472_vm2, %v1478_v55, %v1468_v27  ;;  %vm1483_vm5 = vcmp.eq.f32.partialorder %v2405_v30, 84.0  ;;  %v3126_v18 = vld [vmem:[%s2340_s20 + $0x10] sm:$0xff] }
 0x1c4   : >> { %vm1484_vm6 = vcmp.eq.f32.partialorder %v2407_v31, 84.0  ;;  %v1481_v21 = vsel %vm1473_vm3, %v1478_v55, %v1469_v19  ;;  %v1482_v22 = vsel %vm1474_vm4, %v1478_v55, %v1470_v20  ;;  %vm1485_vm7 = vcmp.eq.f32.partialorder %v2409_v32, 84.0  ;;  %v3130_v19 = vld [vmem:[%s2340_s20 + $0x18] sm:$0xff]  ;;  %s2044_s20 = scalar_lea.vmem (%p426_p11), %s3217_s11, 1024 }
 0x1c5   : >> { %vm1486_vm8 = vcmp.eq.f32.partialorder %v2411_v41, 84.0  ;;  %v1502_v29 = vrot.slane %v3034_v4, %v2301_v38  ;;  %v1491_v61 = vsel %vm1483_vm5, %v1490_v56, %v1479_v28  ;;  %v1492_v23 = vsel %vm1484_vm6, %v1490_v56, %v1480_v45  ;;  %p2045_p12 = scmp.ne.s32.totalorder (%p426_p11), %s3217_s11, %s2044_s20  ;;  %p2052_p2 = scmp.lt.s32.totalorder (%p426_p11), %s2050_s16, %s2044_s20 }
 0x1c6   : >> { %vm1495_vm9 = vcmp.eq.f32.partialorder %v2405_v30, 85.0  ;;  %vm1496_vm10 = vcmp.eq.f32.partialorder %v2407_v31, 85.0  ;;  %v1493_v46 = vsel %vm1485_vm7, %v1490_v56, %v1481_v21  ;;  %v1494_v50 = vsel %vm1486_vm8, %v1490_v56, %v1482_v22 }
 0x1c7   : >> { %vm1497_vm11 = vcmp.eq.f32.partialorder %v2409_v32, 85.0  ;;  %vm1498_vm12 = vcmp.eq.f32.partialorder %v2411_v41, 85.0  ;;  %v1514_v24 = vrot.slane %v3034_v4, %v2304_v39  ;;  %v1503_v63 = vsel %vm1495_vm9, %v1502_v29, %v1491_v61  ;;  %p2046_p13 = pnand (%p426_p11), %p2045_p12, %p2226_p5  ;;  %p2053_p3 = por (%p426_p11), %p2052_p2, %p2051_p1 }
 0x1c8   : >> { %v1504_v58 = vsel %vm1496_vm10, %v1502_v29, %v1492_v23  ;;  %vm1507_vm13 = vcmp.eq.f32.partialorder %v2405_v30, 86.0  ;;  %vm1508_vm14 = vcmp.eq.f32.partialorder %v2407_v31, 86.0  ;;  %v1505_v51 = vsel %vm1497_vm11, %v1502_v29, %v1493_v46 }
 0x1c9   : >> { %v1506_v59 = vsel %vm1498_vm12, %v1502_v29, %v1494_v50  ;;  %vm1509_vm15 = vcmp.eq.f32.partialorder %v2409_v32, 86.0  ;;  %vm1510_vm0 = vcmp.eq.f32.partialorder %v2411_v41, 86.0  ;;  %v1526_v47 = vrot.slane %v3034_v4, %v2307_v40  ;;  %p2047_p0 = pneg (%p426_p11), %p2046_p13 }
 0x1ca   : >> { %v1515_v52 = vsel %vm1507_vm13, %v1514_v24, %v1503_v63  ;;  %vm1519_vm1 = vcmp.eq.f32.partialorder %v2405_v30, 87.0  ;;  %vm1520_vm2 = vcmp.eq.f32.partialorder %v2407_v31, 87.0  ;;  %vm1521_vm3 = vcmp.eq.f32.partialorder %v2409_v32, 87.0 }
 0x1cb   : >> { %v1516_v57 = vsel %vm1508_vm14, %v1514_v24, %v1504_v58  ;;  %v1517_v60 = vsel %vm1509_vm15, %v1514_v24, %v1505_v51  ;;  %v1518_v62 = vsel %vm1510_vm0, %v1514_v24, %v1506_v59  ;;  %vm1522_vm4 = vcmp.eq.f32.partialorder %v2411_v41, 87.0  ;;  %p2054_p4 = pnand (%p426_p11), %p2053_p3, %p2047_p0 }
 0x1cc   : >> { %v1539_v2 = vrot.slane %v3087_v0, %v2286_v33  ;;  %v1527_v1 = vsel %vm1519_vm1, %v1526_v47, %v1515_v52  ;;  %vm1532_vm5 = vcmp.eq.f32.partialorder %v2405_v30, 88.0  ;;  %v1528_v48 = vsel %vm1520_vm2, %v1526_v47, %v1516_v57 }
 0x1cd   : >> { %v1529_v3 = vsel %vm1521_vm3, %v1526_v47, %v1517_v60  ;;  %v1530_v4 = vsel %vm1522_vm4, %v1526_v47, %v1518_v62  ;;  %vm1533_vm6 = vcmp.eq.f32.partialorder %v2407_v31, 88.0  ;;  %vm1534_vm7 = vcmp.eq.f32.partialorder %v2409_v32, 88.0 }
 0x1ce   : >> { %vm1535_vm8 = vcmp.eq.f32.partialorder %v2411_v41, 88.0  ;;  %v1551_v11 = vrot.slane %v3087_v0, %v2289_v34  ;;  %v1540_v5 = vsel %vm1532_vm5, %v1539_v2, %v1527_v1  ;;  %vm1544_vm9 = vcmp.eq.f32.partialorder %v2405_v30, 89.0 }
 0x1cf   : >> { %vm1545_vm10 = vcmp.eq.f32.partialorder %v2407_v31, 89.0  ;;  %vm1546_vm11 = vcmp.eq.f32.partialorder %v2409_v32, 89.0  ;;  %vm1547_vm12 = vcmp.eq.f32.partialorder %v2411_v41, 89.0  ;;  %v1541_v49 = vsel %vm1533_vm6, %v1539_v2, %v1528_v48 }
 0x1d0   : >> { %v1542_v42 = vsel %vm1534_vm7, %v1539_v2, %v1529_v3  ;;  %v1543_v12 = vsel %vm1535_vm8, %v1539_v2, %v1530_v4  ;;  %v1563_v6 = vrot.slane %v3087_v0, %v2292_v35  ;;  %v1552_v7 = vsel %vm1544_vm9, %v1551_v11, %v1540_v5 }
 0x1d1   : >> { %vm1556_vm13 = vcmp.eq.f32.partialorder %v2405_v30, 90.0  ;;  %vm1557_vm14 = vcmp.eq.f32.partialorder %v2407_v31, 90.0  ;;  %v1553_v53 = vsel %vm1545_vm10, %v1551_v11, %v1541_v49  ;;  %v1554_v15 = vsel %vm1546_vm11, %v1551_v11, %v1542_v42 }
 0x1d2   : >> { %v1555_v8 = vsel %vm1547_vm12, %v1551_v11, %v1543_v12  ;;  %v1575_v43 = vrot.slane %v3087_v0, %v2295_v36  ;;  %vm1558_vm15 = vcmp.eq.f32.partialorder %v2409_v32, 90.0  ;;  %vm1559_vm0 = vcmp.eq.f32.partialorder %v2411_v41, 90.0 }
 0x1d3   : >> { %v1564_v9 = vsel %vm1556_vm13, %v1563_v6, %v1552_v7  ;;  %vm1568_vm1 = vcmp.eq.f32.partialorder %v2405_v30, 91.0  ;;  %v1565_v25 = vsel %vm1557_vm14, %v1563_v6, %v1553_v53  ;;  %vm1569_vm2 = vcmp.eq.f32.partialorder %v2407_v31, 91.0 }
 0x1d4   : >> { %vm1570_vm3 = vcmp.eq.f32.partialorder %v2409_v32, 91.0  ;;  %v1566_v16 = vsel %vm1558_vm15, %v1563_v6, %v1554_v15  ;;  %v1567_v54 = vsel %vm1559_vm0, %v1563_v6, %v1555_v8  ;;  %vm1571_vm4 = vcmp.eq.f32.partialorder %v2411_v41, 91.0 }
 0x1d5   : >> { %v1576_v10 = vsel %vm1568_vm1, %v1575_v43, %v1564_v9  ;;  %v1677_v26 = vsub.f32 0.0, %v3118_v17  ;;  %v1678_v55 = vsub.f32 0.0, %v3122_v44  ;;  %v1679_v27 = vsub.f32 0.0, %v3126_v18 }
 0x1d6   : >> { %v1680_v20 = vsub.f32 0.0, %v3130_v19  ;;  %v1577_v56 = vsel %vm1569_vm2, %v1575_v43, %v1565_v25  ;;  %vm1580_vm5 = vcmp.eq.f32.partialorder %v2405_v30, 92.0  ;;  %vm1581_vm6 = vcmp.eq.f32.partialorder %v2407_v31, 92.0 }
 0x1d7   : >> { %v1587_v28 = vrot.slane %v3087_v0, %v2298_v37  ;;  %v1578_v45 = vsel %vm1570_vm3, %v1575_v43, %v1566_v16  ;;  %v1681_v21 = vmul.f32 1.442695, %v1677_v26  ;;  %v1683_v22 = vmul.f32 1.442695, %v1678_v55 }
 0x1d8   : >> { %v1685_v29 = vmul.f32 1.442695, %v1679_v27  ;;  %v1579_v61 = vsel %vm1571_vm4, %v1575_v43, %v1567_v54  ;;  %vm1582_vm7 = vcmp.eq.f32.partialorder %v2409_v32, 92.0  ;;  %vm1583_vm8 = vcmp.eq.f32.partialorder %v2411_v41, 92.0 }
 0x1d9   : >> { %v1687_v23 = vmul.f32 1.442695, %v1680_v20  ;;  %vm1592_vm9 = vcmp.eq.f32.partialorder %v2405_v30, 93.0  ;;  %vm1593_vm10 = vcmp.eq.f32.partialorder %v2407_v31, 93.0  ;;  %v1599_v37 = vrot.slane %v3087_v0, %v2301_v38 }
 0x1da   : >> { %2024 = vpow2.f32 %v1681_v21  ;;  %v1588_v46 = vsel %vm1580_vm5, %v1587_v28, %v1576_v10  ;;  %v1589_v50 = vsel %vm1581_vm6, %v1587_v28, %v1577_v56  ;;  %vm1594_vm11 = vcmp.eq.f32.partialorder %v2409_v32, 93.0 }
 0x1db   : >> { %2026 = vpow2.f32 %v1683_v22  ;;  %v1590_v24 = vsel %vm1582_vm7, %v1587_v28, %v1578_v45  ;;  %v1591_v63 = vsel %vm1583_vm8, %v1587_v28, %v1579_v61  ;;  %vm1595_vm12 = vcmp.eq.f32.partialorder %v2411_v41, 93.0 }
 0x1dc   : >> { %2028 = vpow2.f32 %v1685_v29  ;;  %v1611_v58 = vrot.slane %v3087_v0, %v2304_v39  ;;  %v1600_v51 = vsel %vm1592_vm9, %v1599_v37, %v1588_v46  ;;  %v1601_v59 = vsel %vm1593_vm10, %v1599_v37, %v1589_v50  ;;  %v1628_v39 = vld [vmem:[%s3288_s3 + $0x60] sm:$0xff] }
 0x1dd   : >> { %2030 = vpow2.f32 %v1687_v23  ;;  %vm1604_vm13 = vcmp.eq.f32.partialorder %v2405_v30, 94.0  ;;  %vm1605_vm14 = vcmp.eq.f32.partialorder %v2407_v31, 94.0  ;;  %v1602_v38 = vsel %vm1594_vm11, %v1599_v37, %v1590_v24 }
 0x1de   : >> { %v1603_v47 = vsel %vm1595_vm12, %v1599_v37, %v1591_v63  ;;  %vm1606_vm15 = vcmp.eq.f32.partialorder %v2409_v32, 94.0  ;;  %vm1607_vm0 = vcmp.eq.f32.partialorder %v2411_v41, 94.0  ;;  %v1623_v52 = vrot.slane %v3087_v0, %v2307_v40 }
 0x1df   : >> { %v1612_v57 = vsel %vm1604_vm13, %v1611_v58, %v1600_v51  ;;  %v1613_v60 = vsel %vm1605_vm14, %v1611_v58, %v1601_v59  ;;  %vm1616_vm1 = vcmp.eq.f32.partialorder %v2405_v30, 95.0  ;;  %vm1617_vm2 = vcmp.eq.f32.partialorder %v2407_v31, 95.0 }
 0x1e0   : >> { %v1614_v62 = vsel %vm1606_vm15, %v1611_v58, %v1602_v38  ;;  %v1615_v2 = vsel %vm1607_vm0, %v1611_v58, %v1603_v47  ;;  %vm1618_vm3 = vcmp.eq.f32.partialorder %v2409_v32, 95.0  ;;  %vm1619_vm4 = vcmp.eq.f32.partialorder %v2411_v41, 95.0 }
 0x1e1   : >> { %v1624_v48 = vsel %vm1616_vm1, %v1623_v52, %v1612_v57  ;;  %v1625_v3 = vsel %vm1617_vm2, %v1623_v52, %v1613_v60  ;;  %v1636_v40 = vrot.slane %v1628_v39, %v2286_v33  ;;  %v1626_v4 = vsel %vm1618_vm3, %v1623_v52, %v1614_v62 }
 0x1e2   : >> { %v1627_v11 = vsel %vm1619_vm4, %v1623_v52, %v1615_v2  ;;  %vm1629_vm5 = vcmp.eq.f32.partialorder %v2405_v30, 96.0  ;;  %vm1630_vm6 = vcmp.eq.f32.partialorder %v2407_v31, 96.0  ;;  %vm1631_vm7 = vcmp.eq.f32.partialorder %v2409_v32, 96.0 }
 0x1e3   : >> { %vm1632_vm8 = vcmp.eq.f32.partialorder %v2411_v41, 96.0  ;;  %vm1641_vm9 = vcmp.eq.f32.partialorder %v2405_v30, 97.0  ;;  %v1648_v6 = vrot.slane %v1628_v39, %v2289_v34  ;;  %v1637_v7 = vsel %vm1629_vm5, %v1636_v40, %v1624_v48 }
 0x1e4   : >> { %v2025_v1 = vpop.eup %2024  ;;  %vm1642_vm10 = vcmp.eq.f32.partialorder %v2407_v31, 97.0  ;;  %v1638_v15 = vsel %vm1630_vm6, %v1636_v40, %v1625_v3  ;;  %v1639_v8 = vsel %vm1631_vm7, %v1636_v40, %v1626_v4  ;;  %vm1643_vm11 = vcmp.eq.f32.partialorder %v2409_v32, 97.0 }
 0x1e5   : >> { %v2027_v0 = vpop.eup %2026  ;;  %v1689_v5 = vadd.f32 1.0, %v2025_v1  ;;  %v1640_v43 = vsel %vm1632_vm8, %v1636_v40, %v1627_v11  ;;  %vm1644_vm12 = vcmp.eq.f32.partialorder %v2411_v41, 97.0  ;;  %v1660_v9 = vrot.slane %v1628_v39, %v2292_v35 }
 0x1e6   : >> { %v2029_v49 = vpop.eup %2028  ;;  %v1690_v42 = vadd.f32 1.0, %v2027_v0  ;;  %v1649_v34 = vsel %vm1641_vm9, %v1648_v6, %v1637_v7  ;;  %vm1653_vm13 = vcmp.eq.f32.partialorder %v2405_v30, 98.0  ;;  %v1650_v25 = vsel %vm1642_vm10, %v1648_v6, %v1638_v15 }
 0x1e7   : >> { %v2031_v12 = vpop.eup %2030  ;;  %v1691_v33 = vadd.f32 1.0, %v2029_v49  ;;  %2032 = vrcp.f32 %v1689_v5  ;;  %v1651_v16 = vsel %vm1643_vm11, %v1648_v6, %v1639_v8  ;;  %vm1654_vm14 = vcmp.eq.f32.partialorder %v2407_v31, 98.0 }
 0x1e8   : >> { %v1692_v53 = vadd.f32 1.0, %v2031_v12  ;;  %2034 = vrcp.f32 %v1690_v42  ;;  %v1652_v54 = vsel %vm1644_vm12, %v1648_v6, %v1640_v43  ;;  %vm1655_vm15 = vcmp.eq.f32.partialorder %v2409_v32, 98.0 }
 0x1e9   : >> { %2036 = vrcp.f32 %v1691_v33  ;;  %vm1656_vm0 = vcmp.eq.f32.partialorder %v2411_v41, 98.0  ;;  %v1672_v10 = vrot.slane %v1628_v39, %v2295_v36  ;;  %v1661_v35 = vsel %vm1653_vm13, %v1660_v9, %v1649_v34 }
 0x1ea   : >> { %2038 = vrcp.f32 %v1692_v53  ;;  %vm1665_vm1 = vcmp.eq.f32.partialorder %v2405_v30, 99.0  ;;  %v1721_v26 = vadd.s32 8, %v2268_v14  ;;  %v1724_v55 = vstv %s1720_s17 }
 0x1eb   : >> { %v1662_v27 = vsel %vm1654_vm14, %v1660_v9, %v1650_v25  ;;  %vm1666_vm2 = vcmp.eq.f32.partialorder %v2407_v31, 99.0  ;;  %v1722_v20 = vadd.s32 16, %v2268_v14  ;;  %v1663_v56 = vsel %vm1655_vm15, %v1660_v9, %v1651_v16  ;;  %v1767_v25 = vld [vmem:[%s2259_s26] sm:$0xff] }
 0x1ec   : >> { %vm1667_vm3 = vcmp.eq.f32.partialorder %v2409_v32, 99.0  ;;  %v1723_v28 = vadd.s32 24, %v2268_v14  ;;  %v1664_v21 = vsel %vm1656_vm0, %v1660_v9, %v1652_v54  ;;  %vm1668_vm4 = vcmp.eq.f32.partialorder %v2411_v41, 99.0 }
 0x1ed   : >> { %v1673_v36 = vsel %vm1665_vm1, %v1672_v10, %v1661_v35  ;;  %v1725_v30 = vadd.s32 %v1724_v55, %v2268_v14  ;;  %v1674_v29 = vsel %vm1666_vm2, %v1672_v10, %v1662_v27  ;;  %v1726_v61 = vadd.s32 %v1724_v55, %v1721_v26 }
 0x1ee   : >> { %v1675_v37 = vsel %vm1667_vm3, %v1672_v10, %v1663_v56  ;;  %v1727_v46 = vadd.s32 %v1724_v55, %v1722_v20  ;;  %v1676_v24 = vsel %vm1668_vm4, %v1672_v10, %v1664_v21  ;;  %v1728_v58 = vadd.s32 %v1724_v55, %v1723_v28 }
 0x1ef   : >> { %vm1729_vm5 = vcmp.lt.s32.totalorder %v1725_v30, 100  ;;  %vm1730_vm6 = vcmp.lt.s32.totalorder %v1726_v61, 100  ;;  %vm1769_vm9 = vcmp.eq.s32.totalorder %v2268_v14, 1  ;;  %vm1768_vm10 = vcmp.eq.s32.totalorder %v2268_v14, 0 }
 0x1f0   : >> { %vm1731_vm7 = vcmp.lt.s32.totalorder %v1727_v46, 100  ;;  %vm1732_vm8 = vcmp.lt.s32.totalorder %v1728_v58, 100 }
 0x1f1   : >> { %v2033_v45 = vpop.eup %2032 }
 0x1f2   : >> { %v2035_v22 = vpop.eup %2034  ;;  %v1694_v31 = vmul.f32 %v3118_v17, %v2033_v45 }
 0x1f3   : >> { %v2037_v23 = vpop.eup %2036  ;;  %v1696_v32 = vmul.f32 %v3122_v44, %v2035_v22 }
 0x1f4   : >> { %v2039_v50 = vpop.eup %2038  ;;  %v1698_v63 = vmul.f32 %v3126_v18, %v2037_v23  ;;  %v1701_v41 = vadd.f32 %v1694_v31, %v1673_v36 }
 0x1f5   : >> { %v1700_v51 = vmul.f32 %v3130_v19, %v2039_v50  ;;  %v1702_v59 = vadd.f32 %v1696_v32, %v1674_v29 }
 0x1f6   : >> { %v1703_v38 = vadd.f32 %v1698_v63, %v1675_v37  ;;  %v1711_v17 = vmul.f32 %v2265_v13, %v1701_v41 }
 0x1f7   : >> { %v1704_v47 = vadd.f32 %v1700_v51, %v1676_v24  ;;  %v1712_v52 = vmul.f32 %v2265_v13, %v1702_v59 }
 0x1f8   : >> { %v1713_v44 = vmul.f32 %v2265_v13, %v1703_v38  ;;  %1716 = vst [vmem:[%s1715_s15] sm:$0xff] %v1711_v17  ;;  %v1741_v18 = vsel %vm1729_vm5, %v1711_v17, 0.0 }
 0x1f9   : >> { %v1714_v57 = vmul.f32 %v2265_v13, %v1704_v47  ;;  %1717 = vst [vmem:[%s1715_s15 + $0x8] sm:$0xff] %v1712_v52  ;;  %v1742_v19 = vsel %vm1730_vm6, %v1712_v52, 0.0  ;;  %v1754_v60 = vmul.f32 %v1741_v18, %v1741_v18 }
 0x1fa   : >> { %1718 = vst [vmem:[%s1715_s15 + $0x10] sm:$0xff] %v1713_v44  ;;  %v1743_v39 = vsel %vm1731_vm7, %v1713_v44, 0.0  ;;  %v1745_v62 = vadd.f32 %v1742_v19, %v1741_v18  ;;  %v1755_v2 = vmul.f32 %v1742_v19, %v1742_v19 }
 0x1fb   : >> { %1719 = vst [vmem:[%s1715_s15 + $0x18] sm:$0xff] %v1714_v57  ;;  %v1744_v1 = vsel %vm1732_vm8, %v1714_v57, 0.0  ;;  %v1756_v48 = vmul.f32 %v1743_v39, %v1743_v39 }
 0x1fc   : >> { %v1746_v3 = vadd.f32 %v1745_v62, %v1743_v39  ;;  %v1757_v40 = vmul.f32 %v1744_v1, %v1744_v1  ;;  %v1758_v0 = vadd.f32 %v1755_v2, %v1754_v60 }
 0x1fe   : >> { %v1747_v4 = vadd.f32 %v1746_v3, %v1744_v1  ;;  %v1759_v11 = vadd.f32 %v1758_v0, %v1756_v48 }
 0x200   : >> { %v1748_v5 = vrot.slane %v1747_v4, 4  ;;  %v1760_v49 = vadd.f32 %v1759_v11, %v1757_v40 }
 0x202   : >> { %v1749_v42 = vadd.f32 %v1748_v5, %v1747_v4  ;;  %v1761_v12 = vrot.slane %v1760_v49, 4 }
 0x204   : >> { %v1750_v6 = vrot.slane %v1749_v42, 2  ;;  %v1762_v33 = vadd.f32 %v1761_v12, %v1760_v49 }
 0x206   : >> { %v1751_v7 = vadd.f32 %v1750_v6, %v1749_v42  ;;  %v1763_v53 = vrot.slane %v1762_v33, 2 }
 0x208   : >> { %v1752_v15 = vrot.slane %v1751_v7, 1  ;;  %v1764_v8 = vadd.f32 %v1763_v53, %v1762_v33 }
 0x20a   : >> { %v1765_v43 = vrot.slane %v1764_v8, 1  ;;  %v1753_v9 = vadd.f32 %v1752_v15, %v1751_v7 }
 0x20c   : >> { %v1766_v34 = vadd.f32 %v1765_v43, %v1764_v8  ;;  %428 = sbr.rel (!%p426_p11) target bundleno = 252 (0xfc), region = 101 }
 0x20e   : >> { %v1770_v16 = vsel %vm1769_vm9, %v1766_v34, 0.0 }
 0x20f   : >> { %v1771_v54 = vsel %vm1768_vm10, %v1753_v9, %v1770_v16 }
 0x210   : >> { %v1772_v10 = vadd.f32 %v1771_v54, %v1767_v25 }
 0x212   : >> { %1773 = vst [vmem:[%s2259_s26] sm:$0xff] %v1772_v10 }
 0x213   : > { %2057 = shalt.err (!%p2054_p4)
}
 0x214   : > { %s2058_s13 = scalar_lea.hbm %s3214_s29, 1024  ;;  %s2062_s19 = scalar_lea.hbm %s3290_s5, 2048 }
 0x215   : > { %p2059_p7 = scmp.ne.s32.totalorder %s3214_s29, %s2058_s13  ;;  %p2063_p10 = scmp.lt.u32.totalorder %s3214_s29, %s3290_s5 }
 0x216   : > { %p2064_p11 = scmp.lt.u32.totalorder %s2062_s19, %s2058_s13  ;;  %p2066_p13 = scmp.lt.u32.totalorder %s2058_s13, %s3214_s29 }
 0x217   : > { %p2060_p8 = pnand %p2059_p7, %p2226_p5 }
 0x218   : > { %p2065_p12 = por %p2064_p11, %p2063_p10 }
 0x219   : > { %p2061_p9 = pneg %p2060_p8 }
 0x21a   : > { %p2067_p0 = por %p2066_p13, %p2065_p12 }
 0x21c   : > { %p2068_p1 = pnand %p2067_p0, %p2061_p9 }
 0x21e   : > { %2071 = shalt.err (!%p2068_p1)
}
 0x21f   : > { %s2150_s20 = smov 128   ;;  %s2151_s10 = smov 8  }
 0x220   : > { %1969 = dma.vmem_to_hbm [thread:$0]  (%p2226_p5), %s3217_s11, 1024, %s3214_s29, %s1775_s12, %s2150_s20, %s2150_s20, %s2151_s10  }
 0x221   : > { %s1933_s14 = sshll.u32 %s2209_s25, 7  ;;  %s1809_s16 = sshll.u32 %s2259_s26, 4  ;;  %s1810_s16 = int_to_ptr.vmem [resolvable:$true] %s1809_s16 }
 0x222   : > { %s3248_s15 = scalar_lea.hbm %s3291_s6, %s1933_s14  ;;  %s1780_s19 = scalar_lea.sflag [#allocation6], %s2237_s9 }
 0x223   : > { %s2072_s18 = scalar_lea.vmem %s1810_s16, 128  ;;  %s2152_s28 = smov [#allocation5]  }
 0x224   : > { %p2073_p2 = scmp.ne.s32.totalorder %s1810_s16, %s2072_s18  ;;  %s2076_s0 = sshll.u32 %s2152_s28, 4  ;;  %s2077_s0 = int_to_ptr.vmem [resolvable:$false] %s2076_s0 }
 0x225   : > { %s2078_s1 = scalar_lea.vmem %s2077_s0, 256  ;;  %p2079_p7 = scmp.lt.s32.totalorder %s1810_s16, %s2077_s0 }
 0x226   : > { %p2074_p3 = pnand %p2073_p2, %p2226_p5  ;;  %p2080_p8 = scmp.lt.s32.totalorder %s2078_s1, %s2072_s18 }
 0x228   : > { %p2075_p4 = pneg %p2074_p3  ;;  %p2081_p9 = por %p2080_p8, %p2079_p7 }
 0x22a   : > { %p2082_p10 = pnand %p2081_p9, %p2075_p4 }
 0x22c   : > { %2085 = shalt.err (!%p2082_p10)
}
 0x22d   : > { %s2086_s25 = scalar_lea.hbm %s3248_s15, 128  ;;  %s2090_s29 = scalar_lea.hbm %s3291_s6, 256 }
 0x22e   : > { %p2087_p11 = scmp.ne.s32.totalorder %s3248_s15, %s2086_s25  ;;  %p2091_p0 = scmp.lt.u32.totalorder %s3248_s15, %s3291_s6 }
 0x22f   : > { %p2092_p1 = scmp.lt.u32.totalorder %s2090_s29, %s2086_s25  ;;  %p2094_p3 = scmp.lt.u32.totalorder %s2086_s25, %s3248_s15 }
 0x230   : > { %p2088_p12 = pnand %p2087_p11, %p2226_p5 }
 0x231   : > { %p2093_p2 = por %p2092_p1, %p2091_p0 }
 0x232   : > { %p2089_p13 = pneg %p2088_p12 }
 0x233   : > { %p2095_p4 = por %p2094_p3, %p2093_p2 }
 0x235   : > { %p2096_p7 = pnand %p2095_p4, %p2089_p13 }
 0x237   : > { %2099 = shalt.err (!%p2096_p7)
}
 0x238   : > { %1970 = dma.vmem_to_hbm [thread:$0]  (%p2226_p5), %s1810_s16, 128, %s3248_s15, %s1780_s19  }
 0x239 PF: > { %p1980_p8 = scmp.ge.s32.totalorder %s2142_s24, 2  ;;  %s1821_s1 = sand.u32 1, %s2130_s21  }
 0x23a   : > { %s1822_s12 = scalar_lea.sflag [#allocation4], %s1821_s1 }
 0x23b   : > { %p1974_p9 = pnand %p1980_p8, %p2230_p6 }
 0x23d   : > { %2121 = dma.done.wait (!%p1974_p9), %s1822_s12, 1024  }
 0x23e   : > { %2123 = vsyncadd (!%p1974_p9), %s1822_s12, 4294966272  ;;  %s1831_s20 = scalar_lea.sflag [#allocation6], %s1821_s1 }
 0x23f   : > { %2125 = dma.done.wait (!%p1974_p9), %s1831_s20, 128  }
 0x240   : > { %2127 = vsyncadd (!%p1974_p9), %s1831_s20, 4294967168  ;;  %p20_p5 = scmp.ge.s32.totalorder %s2213_s27, 4   ;;  %s3298_s21 = smov %s2134_s22 }
 0x241   : > { %s3299_s22 = smov %s2138_s23  ;;  %s3300_s23 = smov %s2224_s30 }
 0x242   : > { %s3301_s24 = smov %s2213_s27  ;;  %22 = sbr.rel (!%p20_p5) target bundleno = 8 (0x8), region = 112 }
 0x249   :  { %1836 = vsyncpa [#allocation4], 1 }
 0x24a   :  { %1838 = vsyncpa [#allocation4 + $0x1], 1 }
 0x24b   :  { %1839 = vsyncpa [#allocation6], 1 }
 0x24c   :  { %1841 = vsyncpa [#allocation6 + $0x1], 1 }

</bundles_post_ra>
